<compile_context>
chip_gen: v7x
topology: tpu7x:2x2x1
jax: 0.10.0
libtpu: 0.0.40
codegen_flags: <defaults>
</compile_context>

<pallas_src>
import functools

import numpy as np
import jax
import jax.numpy as jnp
from jax.experimental import pallas as pl
from jax.experimental.pallas import tpu as pltpu


# ----------------------------------------------------------------------------
# Fused kernel: one grid step == one image of the batch.
# ----------------------------------------------------------------------------
def _basic_block_kernel(xp_ref, w1_ref, b1_ref, w2_ref, wd_ref, bsum_ref,
                        o_ref, out1_sc, *, H, W, Cin, Cout):
    """Whole BasicBlock forward for one image.

    xp_ref  : (1, H+2, W+2, Cin)  bf16  polar-padded input (NHWC)
    w1_ref  : (9, Cin, Cout)      bf16  conv1 weight, BN1 scale folded in
    b1_ref  : (1, Cout)           f32   BN1 bias
    w2_ref  : (9, Cout, Cout)     bf16  conv2 weight, BN2 scale folded in
    wd_ref  : (9, Cin, Cout)      bf16  downsample weight, BNd scale folded in
    bsum_ref: (1, Cout)           f32   BN2 bias + BNd bias
    o_ref   : (1, H-2, W-2, Cout) f32   block output
    out1_sc : (H+2, W+2, Cout)    f32   VMEM scratch holding out1 in a 0-ring
    """
    HW = H * W

    # --- conv1 (+BN1) and the downsample conv (+BNd): both consume the same
    # nine shifted (H, W) windows of the padded input, flattened to
    # (H*W, Cin) so each tap is a single MXU matmul.  f32 accumulation.
    acc1 = jnp.zeros((HW, Cout), jnp.float32)
    accd = jnp.zeros((HW, Cout), jnp.float32)
    for dy in range(3):
        for dx in range(3):
            tap = 3 * dy + dx
            xs = xp_ref[0, dy:dy + H, dx:dx + W, :].reshape(HW, Cin)
            acc1 += jnp.dot(xs, w1_ref[tap], preferred_element_type=jnp.float32)
            accd += jnp.dot(xs, wd_ref[tap], preferred_element_type=jnp.float32)

    # out1 = relu(bn1(conv1(polar_pad(x)))) stays resident in VMEM.  It is
    # parked inside a one-pixel zero ring so that conv2 below can reuse the
    # same tile-aligned (H, W) window slices; the ring only feeds border
    # outputs that are discarded before the store.
    out1 = jnp.maximum(acc1 + b1_ref[...], 0.0)                  # (H*W, Cout) f32
    out1_sc[...] = jnp.zeros_like(out1_sc)
    out1_sc[1:H + 1, 1:W + 1, :] = out1.reshape(H, W, Cout)

    # --- conv2 (+BN2) over out1, fused with the residual (downsample) path.
    acc = accd
    for dy in range(3):
        for dx in range(3):
            tap = 3 * dy + dx
            os_ = out1_sc[dy:dy + H, dx:dx + W, :].reshape(HW, Cout)
            acc += jnp.dot(os_.astype(jnp.bfloat16), w2_ref[tap],
                           preferred_element_type=jnp.float32)

    y = jnp.maximum(acc + bsum_ref[...], 0.0)                    # (H*W, Cout) f32
    # Keep only the interior: rows/cols [1, H-1) of the (H, W) grid are the
    # valid 3x3 outputs of both conv2 and the downsample conv.
    y = y.reshape(H, W, Cout)[1:H - 1, 1:W - 1, :]
    # NOTE: with the test's Cout=8 this store is lane-masked (8/128 lanes);
    # at production channel counts (planes >= 128) the same layout is already
    # lane-dense.  TODO(synk): for small Cout, pack (Wo*Cout) onto the lane
    # axis before storing.
    o_ref[...] = y[None].astype(o_ref.dtype)


# ----------------------------------------------------------------------------
# Parameter prep (run once at init, hoisted out of the forward).
# ----------------------------------------------------------------------------
def fold_bn(gamma, beta, mean, var, eps=1e-5):
    scale = gamma / jnp.sqrt(var + eps)
    return scale, beta - mean * scale


def _weight_taps(w_oihw):
    """(O, I, 3, 3) -> (9, I, O); tap index = 3*dy + dx."""
    o, i = w_oihw.shape[0], w_oihw.shape[1]
    return jnp.transpose(w_oihw, (2, 3, 1, 0)).reshape(9, i, o)


def prepare_params(params, eps=1e-5):
    s1, b1 = fold_bn(*params["bn1"], eps)
    s2, b2 = fold_bn(*params["bn2"], eps)
    sd, bd = fold_bn(*params["bnd"], eps)
    return {
        "w1": (_weight_taps(params["w1"]) * s1).astype(jnp.bfloat16),
        "b1": b1.reshape(1, -1).astype(jnp.float32),
        "w2": (_weight_taps(params["w2"]) * s2).astype(jnp.bfloat16),
        "wd": (_weight_taps(params["wd"]) * sd).astype(jnp.bfloat16),
        "bsum": (b2 + bd).reshape(1, -1).astype(jnp.float32),
    }


# ----------------------------------------------------------------------------
# Forward wrapper
# ----------------------------------------------------------------------------
def polar_pad(x_nchw, p=1):
    """F.pad(x, (p, p, 0, 0)) then wrap rows (dim -2): cat(bottom, x, top)."""
    x = jnp.pad(x_nchw, ((0, 0), (0, 0), (0, 0), (p, p)))
    top = x[..., 0:p, :]
    bottom = x[..., x.shape[-2] - p:, :]
    return jnp.concatenate([bottom, x, top], axis=-2)


def basic_block_forward(x_nchw, prep):
    n, cin, h, w = x_nchw.shape
    cout = prep["w1"].shape[-1]
    ho, wo = h - 2, w - 2
    hp, wp = h + 2, w + 2

    # NHWC (channels on the 128-lane axis) + polar pad + bf16 cast; the only
    # activation traffic the kernel sees is this single padded copy of x.
    xp = jnp.transpose(polar_pad(x_nchw, 1), (0, 2, 3, 1)).astype(jnp.bfloat16)

    kernel = functools.partial(_basic_block_kernel, H=h, W=w, Cin=cin, Cout=cout)
    out_nhwc = pl.pallas_call(
        kernel,
        out_shape=jax.ShapeDtypeStruct((n, ho, wo, cout), jnp.float32),
        grid=(n,),
        in_specs=[
            pl.BlockSpec((1, hp, wp, cin), lambda i: (i, 0, 0, 0)),   # padded x
            pl.BlockSpec((9, cin, cout), lambda i: (0, 0, 0)),        # w1*s1
            pl.BlockSpec((1, cout), lambda i: (0, 0)),                # b1
            pl.BlockSpec((9, cout, cout), lambda i: (0, 0, 0)),       # w2*s2
            pl.BlockSpec((9, cin, cout), lambda i: (0, 0, 0)),        # wd*sd
            pl.BlockSpec((1, cout), lambda i: (0, 0)),                # b2+bd
        ],
        out_specs=pl.BlockSpec((1, ho, wo, cout), lambda i: (i, 0, 0, 0)),
        scratch_shapes=[pltpu.VMEM((hp, wp, cout), jnp.float32)],
        compiler_params=pltpu.CompilerParams(
            dimension_semantics=("parallel",)),
    )(xp, prep["w1"], prep["b1"], prep["w2"], prep["wd"], prep["bsum"])
    return jnp.transpose(out_nhwc, (0, 3, 1, 2))                      # back to NCHW


# ----------------------------------------------------------------------------
# Pure-JAX f32 reference (module semantics) for numerical verification.
# ----------------------------------------------------------------------------
def _conv3x3_ref(x, w):
    return jax.lax.conv_general_dilated(
        x, w, window_strides=(1, 1), padding="VALID",
        dimension_numbers=("NCHW", "OIHW", "NCHW"),
        precision=jax.lax.Precision.HIGHEST)


def ref_forward(x, params):
    s1, b1 = fold_bn(*params["bn1"])
    s2, b2 = fold_bn(*params["bn2"])
    sd, bd = fold_bn(*params["bnd"])

    def bn(y, s, b):
        return y * s[None, :, None, None] + b[None, :, None, None]

    out = jnp.maximum(bn(_conv3x3_ref(polar_pad(x, 1), params["w1"]), s1, b1), 0.0)
    out = bn(_conv3x3_ref(out, params["w2"]), s2, b2)
    identity = bn(_conv3x3_ref(x, params["wd"]), sd, bd)
    return jnp.maximum(out + identity, 0.0)


# ----------------------------------------------------------------------------
if __name__ == "__main__":
    N, inplanes, planes, H, W = 2, 4, 8, 16, 16
    key = jax.random.PRNGKey(0)
    ks = jax.random.split(key, 8)

    def bn_params(k, c):
        k1, k2, k3, k4 = jax.random.split(k, 4)
        gamma = jax.random.uniform(k1, (c,), jnp.float32, 0.5, 1.5)
        beta = 0.1 * jax.random.normal(k2, (c,), jnp.float32)
        mean = 0.1 * jax.random.normal(k3, (c,), jnp.float32)
        var = jax.random.uniform(k4, (c,), jnp.float32, 0.5, 1.5)
        return (gamma, beta, mean, var)

    params = {
        "w1": 0.1 * jax.random.normal(ks[0], (planes, inplanes, 3, 3), jnp.float32),
        "bn1": bn_params(ks[1], planes),
        "w2": 0.1 * jax.random.normal(ks[2], (planes, planes, 3, 3), jnp.float32),
        "bn2": bn_params(ks[3], planes),
        # downsample = conv3x3(pad=0) + BN, required for the residual add (see note above)
        "wd": 0.1 * jax.random.normal(ks[4], (planes, inplanes, 3, 3), jnp.float32),
        "bnd": bn_params(ks[5], planes),
    }

    x = jax.random.normal(ks[6], (N, inplanes, H, W), jnp.float32)

    prep = prepare_params(params)                 # hoisted: runs once at init
    fwd = jax.jit(basic_block_forward)

    out = jax.block_until_ready(fwd(x, prep))
    ref = jax.block_until_ready(ref_forward(x, params))

    assert out.shape == (N, planes, H - 2, W - 2), out.shape
    # Tolerance sized for bf16 MXU operands (two chained 3x3 convs) compared
    # against a pure-f32 (HIGHEST precision) reference; real bugs (wrong tap
    # order / BN fold / padding) would produce O(1) errors.
    np.testing.assert_allclose(np.asarray(out), np.asarray(ref), rtol=2e-2, atol=2e-2)
    print("KERNEL_OK")
</pallas_src>

<mosaic_0001>
module attributes {stable_mosaic.version = 11 : i64} {
  func.func @_basic_block_kernel(%arg0: i32, %arg1: memref<1x18x18x4xbf16, #tpu.memory_space<vmem>>, %arg2: memref<9x4x8xbf16, #tpu.memory_space<vmem>>, %arg3: memref<1x8xf32, #tpu.memory_space<vmem>>, %arg4: memref<9x8x8xbf16, #tpu.memory_space<vmem>>, %arg5: memref<9x4x8xbf16, #tpu.memory_space<vmem>>, %arg6: memref<1x8xf32, #tpu.memory_space<vmem>>, %arg7: memref<1x14x14x8xf32, #tpu.memory_space<vmem>>, %arg8: memref<18x18x8xf32, #tpu.memory_space<vmem>>) attributes {dimension_semantics = [#tpu.dimension_semantics<parallel>], iteration_bounds = array<i64: 2>, scalar_prefetch = 0 : i64, scratch_operands = 1 : i64, tpu.core_type = #tpu.core_type<tc>, window_params = [{transform_indices = @transform_0, window_bounds = array<i64: 1, 18, 18, 4>}, {pipeline_mode = #tpu.pipeline_mode<synchronous>, transform_indices = @transform_1, window_bounds = array<i64: 9, 4, 8>}, {pipeline_mode = #tpu.pipeline_mode<synchronous>, transform_indices = @transform_2, window_bounds = array<i64: 1, 8>}, {pipeline_mode = #tpu.pipeline_mode<synchronous>, transform_indices = @transform_3, window_bounds = array<i64: 9, 8, 8>}, {pipeline_mode = #tpu.pipeline_mode<synchronous>, transform_indices = @transform_4, window_bounds = array<i64: 9, 4, 8>}, {pipeline_mode = #tpu.pipeline_mode<synchronous>, transform_indices = @transform_5, window_bounds = array<i64: 1, 8>}, {transform_indices = @transform_6, window_bounds = array<i64: 1, 14, 14, 8>}]} {
    %cst = arith.constant 0.000000e+00 : f32
    %0 = vector.broadcast %cst : f32 to vector<256x8xf32>
    %cst_0 = arith.constant 0.000000e+00 : f32
    %1 = vector.broadcast %cst_0 : f32 to vector<256x8xf32>
    %c0 = arith.constant 0 : index
    %c0_1 = arith.constant 0 : index
    %c0_2 = arith.constant 0 : index
    %c0_3 = arith.constant 0 : index
    %2 = vector.load %arg1[%c0, %c0_1, %c0_2, %c0_3] : memref<1x18x18x4xbf16, #tpu.memory_space<vmem>>, vector<1x16x16x4xbf16>
    %3 = vector.shape_cast %2 : vector<1x16x16x4xbf16> to vector<16x16x4xbf16>
    %4 = vector.shape_cast %3 : vector<16x16x4xbf16> to vector<256x4xbf16>
    %c0_4 = arith.constant 0 : index
    %c0_5 = arith.constant 0 : index
    %c0_6 = arith.constant 0 : index
    %5 = vector.load %arg2[%c0_4, %c0_5, %c0_6] : memref<9x4x8xbf16, #tpu.memory_space<vmem>>, vector<1x4x8xbf16>
    %6 = vector.shape_cast %5 : vector<1x4x8xbf16> to vector<4x8xbf16>
    %cst_7 = arith.constant dense<0.000000e+00> : vector<256x8xf32>
    %7 = tpu.matmul %4, %6, %cst_7 {dimension_numbers = #tpu.dot_dimension_numbers<[1], [0], [0], [1], [0, 0, 1, 1], [], []>} : vector<256x4xbf16>, vector<4x8xbf16>, vector<256x8xf32> -> vector<256x8xf32>
    %8 = arith.addf %0, %7 : vector<256x8xf32>
    %c0_8 = arith.constant 0 : index
    %c0_9 = arith.constant 0 : index
    %c0_10 = arith.constant 0 : index
    %9 = vector.load %arg5[%c0_8, %c0_9, %c0_10] : memref<9x4x8xbf16, #tpu.memory_space<vmem>>, vector<1x4x8xbf16>
    %10 = vector.shape_cast %9 : vector<1x4x8xbf16> to vector<4x8xbf16>
    %cst_11 = arith.constant dense<0.000000e+00> : vector<256x8xf32>
    %11 = tpu.matmul %4, %10, %cst_11 {dimension_numbers = #tpu.dot_dimension_numbers<[1], [0], [0], [1], [0, 0, 1, 1], [], []>} : vector<256x4xbf16>, vector<4x8xbf16>, vector<256x8xf32> -> vector<256x8xf32>
    %12 = arith.addf %1, %11 : vector<256x8xf32>
    %c0_12 = arith.constant 0 : index
    %c0_13 = arith.constant 0 : index
    %c1 = arith.constant 1 : index
    %c0_14 = arith.constant 0 : index
    %13 = vector.load %arg1[%c0_12, %c0_13, %c1, %c0_14] : memref<1x18x18x4xbf16, #tpu.memory_space<vmem>>, vector<1x16x16x4xbf16>
    %14 = vector.shape_cast %13 : vector<1x16x16x4xbf16> to vector<16x16x4xbf16>
    %15 = vector.shape_cast %14 : vector<16x16x4xbf16> to vector<256x4xbf16>
    %c1_15 = arith.constant 1 : index
    %c0_16 = arith.constant 0 : index
    %c0_17 = arith.constant 0 : index
    %16 = vector.load %arg2[%c1_15, %c0_16, %c0_17] : memref<9x4x8xbf16, #tpu.memory_space<vmem>>, vector<1x4x8xbf16>
    %17 = vector.shape_cast %16 : vector<1x4x8xbf16> to vector<4x8xbf16>
    %cst_18 = arith.constant dense<0.000000e+00> : vector<256x8xf32>
    %18 = tpu.matmul %15, %17, %cst_18 {dimension_numbers = #tpu.dot_dimension_numbers<[1], [0], [0], [1], [0, 0, 1, 1], [], []>} : vector<256x4xbf16>, vector<4x8xbf16>, vector<256x8xf32> -> vector<256x8xf32>
    %19 = arith.addf %8, %18 : vector<256x8xf32>
    %c1_19 = arith.constant 1 : index
    %c0_20 = arith.constant 0 : index
    %c0_21 = arith.constant 0 : index
    %20 = vector.load %arg5[%c1_19, %c0_20, %c0_21] : memref<9x4x8xbf16, #tpu.memory_space<vmem>>, vector<1x4x8xbf16>
    %21 = vector.shape_cast %20 : vector<1x4x8xbf16> to vector<4x8xbf16>
    %cst_22 = arith.constant dense<0.000000e+00> : vector<256x8xf32>
    %22 = tpu.matmul %15, %21, %cst_22 {dimension_numbers = #tpu.dot_dimension_numbers<[1], [0], [0], [1], [0, 0, 1, 1], [], []>} : vector<256x4xbf16>, vector<4x8xbf16>, vector<256x8xf32> -> vector<256x8xf32>
    %23 = arith.addf %12, %22 : vector<256x8xf32>
    %c0_23 = arith.constant 0 : index
    %c0_24 = arith.constant 0 : index
    %c2 = arith.constant 2 : index
    %c0_25 = arith.constant 0 : index
    %24 = vector.load %arg1[%c0_23, %c0_24, %c2, %c0_25] : memref<1x18x18x4xbf16, #tpu.memory_space<vmem>>, vector<1x16x16x4xbf16>
    %25 = vector.shape_cast %24 : vector<1x16x16x4xbf16> to vector<16x16x4xbf16>
    %26 = vector.shape_cast %25 : vector<16x16x4xbf16> to vector<256x4xbf16>
    %c2_26 = arith.constant 2 : index
    %c0_27 = arith.constant 0 : index
    %c0_28 = arith.constant 0 : index
    %27 = vector.load %arg2[%c2_26, %c0_27, %c0_28] : memref<9x4x8xbf16, #tpu.memory_space<vmem>>, vector<1x4x8xbf16>
    %28 = vector.shape_cast %27 : vector<1x4x8xbf16> to vector<4x8xbf16>
    %cst_29 = arith.constant dense<0.000000e+00> : vector<256x8xf32>
    %29 = tpu.matmul %26, %28, %cst_29 {dimension_numbers = #tpu.dot_dimension_numbers<[1], [0], [0], [1], [0, 0, 1, 1], [], []>} : vector<256x4xbf16>, vector<4x8xbf16>, vector<256x8xf32> -> vector<256x8xf32>
    %30 = arith.addf %19, %29 : vector<256x8xf32>
    %c2_30 = arith.constant 2 : index
    %c0_31 = arith.constant 0 : index
    %c0_32 = arith.constant 0 : index
    %31 = vector.load %arg5[%c2_30, %c0_31, %c0_32] : memref<9x4x8xbf16, #tpu.memory_space<vmem>>, vector<1x4x8xbf16>
    %32 = vector.shape_cast %31 : vector<1x4x8xbf16> to vector<4x8xbf16>
    %cst_33 = arith.constant dense<0.000000e+00> : vector<256x8xf32>
    %33 = tpu.matmul %26, %32, %cst_33 {dimension_numbers = #tpu.dot_dimension_numbers<[1], [0], [0], [1], [0, 0, 1, 1], [], []>} : vector<256x4xbf16>, vector<4x8xbf16>, vector<256x8xf32> -> vector<256x8xf32>
    %34 = arith.addf %23, %33 : vector<256x8xf32>
    %c0_34 = arith.constant 0 : index
    %c1_35 = arith.constant 1 : index
    %c0_36 = arith.constant 0 : index
    %c0_37 = arith.constant 0 : index
    %35 = vector.load %arg1[%c0_34, %c1_35, %c0_36, %c0_37] : memref<1x18x18x4xbf16, #tpu.memory_space<vmem>>, vector<1x16x16x4xbf16>
    %36 = vector.shape_cast %35 : vector<1x16x16x4xbf16> to vector<16x16x4xbf16>
    %37 = vector.shape_cast %36 : vector<16x16x4xbf16> to vector<256x4xbf16>
    %c3 = arith.constant 3 : index
    %c0_38 = arith.constant 0 : index
    %c0_39 = arith.constant 0 : index
    %38 = vector.load %arg2[%c3, %c0_38, %c0_39] : memref<9x4x8xbf16, #tpu.memory_space<vmem>>, vector<1x4x8xbf16>
    %39 = vector.shape_cast %38 : vector<1x4x8xbf16> to vector<4x8xbf16>
    %cst_40 = arith.constant dense<0.000000e+00> : vector<256x8xf32>
    %40 = tpu.matmul %37, %39, %cst_40 {dimension_numbers = #tpu.dot_dimension_numbers<[1], [0], [0], [1], [0, 0, 1, 1], [], []>} : vector<256x4xbf16>, vector<4x8xbf16>, vector<256x8xf32> -> vector<256x8xf32>
    %41 = arith.addf %30, %40 : vector<256x8xf32>
    %c3_41 = arith.constant 3 : index
    %c0_42 = arith.constant 0 : index
    %c0_43 = arith.constant 0 : index
    %42 = vector.load %arg5[%c3_41, %c0_42, %c0_43] : memref<9x4x8xbf16, #tpu.memory_space<vmem>>, vector<1x4x8xbf16>
    %43 = vector.shape_cast %42 : vector<1x4x8xbf16> to vector<4x8xbf16>
    %cst_44 = arith.constant dense<0.000000e+00> : vector<256x8xf32>
    %44 = tpu.matmul %37, %43, %cst_44 {dimension_numbers = #tpu.dot_dimension_numbers<[1], [0], [0], [1], [0, 0, 1, 1], [], []>} : vector<256x4xbf16>, vector<4x8xbf16>, vector<256x8xf32> -> vector<256x8xf32>
    %45 = arith.addf %34, %44 : vector<256x8xf32>
    %c0_45 = arith.constant 0 : index
    %c1_46 = arith.constant 1 : index
    %c1_47 = arith.constant 1 : index
    %c0_48 = arith.constant 0 : index
    %46 = vector.load %arg1[%c0_45, %c1_46, %c1_47, %c0_48] : memref<1x18x18x4xbf16, #tpu.memory_space<vmem>>, vector<1x16x16x4xbf16>
    %47 = vector.shape_cast %46 : vector<1x16x16x4xbf16> to vector<16x16x4xbf16>
    %48 = vector.shape_cast %47 : vector<16x16x4xbf16> to vector<256x4xbf16>
    %c4 = arith.constant 4 : index
    %c0_49 = arith.constant 0 : index
    %c0_50 = arith.constant 0 : index
    %49 = vector.load %arg2[%c4, %c0_49, %c0_50] : memref<9x4x8xbf16, #tpu.memory_space<vmem>>, vector<1x4x8xbf16>
    %50 = vector.shape_cast %49 : vector<1x4x8xbf16> to vector<4x8xbf16>
    %cst_51 = arith.constant dense<0.000000e+00> : vector<256x8xf32>
    %51 = tpu.matmul %48, %50, %cst_51 {dimension_numbers = #tpu.dot_dimension_numbers<[1], [0], [0], [1], [0, 0, 1, 1], [], []>} : vector<256x4xbf16>, vector<4x8xbf16>, vector<256x8xf32> -> vector<256x8xf32>
    %52 = arith.addf %41, %51 : vector<256x8xf32>
    %c4_52 = arith.constant 4 : index
    %c0_53 = arith.constant 0 : index
    %c0_54 = arith.constant 0 : index
    %53 = vector.load %arg5[%c4_52, %c0_53, %c0_54] : memref<9x4x8xbf16, #tpu.memory_space<vmem>>, vector<1x4x8xbf16>
    %54 = vector.shape_cast %53 : vector<1x4x8xbf16> to vector<4x8xbf16>
    %cst_55 = arith.constant dense<0.000000e+00> : vector<256x8xf32>
    %55 = tpu.matmul %48, %54, %cst_55 {dimension_numbers = #tpu.dot_dimension_numbers<[1], [0], [0], [1], [0, 0, 1, 1], [], []>} : vector<256x4xbf16>, vector<4x8xbf16>, vector<256x8xf32> -> vector<256x8xf32>
    %56 = arith.addf %45, %55 : vector<256x8xf32>
    %c0_56 = arith.constant 0 : index
    %c1_57 = arith.constant 1 : index
    %c2_58 = arith.constant 2 : index
    %c0_59 = arith.constant 0 : index
    %57 = vector.load %arg1[%c0_56, %c1_57, %c2_58, %c0_59] : memref<1x18x18x4xbf16, #tpu.memory_space<vmem>>, vector<1x16x16x4xbf16>
    %58 = vector.shape_cast %57 : vector<1x16x16x4xbf16> to vector<16x16x4xbf16>
    %59 = vector.shape_cast %58 : vector<16x16x4xbf16> to vector<256x4xbf16>
    %c5 = arith.constant 5 : index
    %c0_60 = arith.constant 0 : index
    %c0_61 = arith.constant 0 : index
    %60 = vector.load %arg2[%c5, %c0_60, %c0_61] : memref<9x4x8xbf16, #tpu.memory_space<vmem>>, vector<1x4x8xbf16>
    %61 = vector.shape_cast %60 : vector<1x4x8xbf16> to vector<4x8xbf16>
    %cst_62 = arith.constant dense<0.000000e+00> : vector<256x8xf32>
    %62 = tpu.matmul %59, %61, %cst_62 {dimension_numbers = #tpu.dot_dimension_numbers<[1], [0], [0], [1], [0, 0, 1, 1], [], []>} : vector<256x4xbf16>, vector<4x8xbf16>, vector<256x8xf32> -> vector<256x8xf32>
    %63 = arith.addf %52, %62 : vector<256x8xf32>
    %c5_63 = arith.constant 5 : index
    %c0_64 = arith.constant 0 : index
    %c0_65 = arith.constant 0 : index
    %64 = vector.load %arg5[%c5_63, %c0_64, %c0_65] : memref<9x4x8xbf16, #tpu.memory_space<vmem>>, vector<1x4x8xbf16>
    %65 = vector.shape_cast %64 : vector<1x4x8xbf16> to vector<4x8xbf16>
    %cst_66 = arith.constant dense<0.000000e+00> : vector<256x8xf32>
    %66 = tpu.matmul %59, %65, %cst_66 {dimension_numbers = #tpu.dot_dimension_numbers<[1], [0], [0], [1], [0, 0, 1, 1], [], []>} : vector<256x4xbf16>, vector<4x8xbf16>, vector<256x8xf32> -> vector<256x8xf32>
    %67 = arith.addf %56, %66 : vector<256x8xf32>
    %c0_67 = arith.constant 0 : index
    %c2_68 = arith.constant 2 : index
    %c0_69 = arith.constant 0 : index
    %c0_70 = arith.constant 0 : index
    %68 = vector.load %arg1[%c0_67, %c2_68, %c0_69, %c0_70] : memref<1x18x18x4xbf16, #tpu.memory_space<vmem>>, vector<1x16x16x4xbf16>
    %69 = vector.shape_cast %68 : vector<1x16x16x4xbf16> to vector<16x16x4xbf16>
    %70 = vector.shape_cast %69 : vector<16x16x4xbf16> to vector<256x4xbf16>
    %c6 = arith.constant 6 : index
    %c0_71 = arith.constant 0 : index
    %c0_72 = arith.constant 0 : index
    %71 = vector.load %arg2[%c6, %c0_71, %c0_72] : memref<9x4x8xbf16, #tpu.memory_space<vmem>>, vector<1x4x8xbf16>
    %72 = vector.shape_cast %71 : vector<1x4x8xbf16> to vector<4x8xbf16>
    %cst_73 = arith.constant dense<0.000000e+00> : vector<256x8xf32>
    %73 = tpu.matmul %70, %72, %cst_73 {dimension_numbers = #tpu.dot_dimension_numbers<[1], [0], [0], [1], [0, 0, 1, 1], [], []>} : vector<256x4xbf16>, vector<4x8xbf16>, vector<256x8xf32> -> vector<256x8xf32>
    %74 = arith.addf %63, %73 : vector<256x8xf32>
    %c6_74 = arith.constant 6 : index
    %c0_75 = arith.constant 0 : index
    %c0_76 = arith.constant 0 : index
    %75 = vector.load %arg5[%c6_74, %c0_75, %c0_76] : memref<9x4x8xbf16, #tpu.memory_space<vmem>>, vector<1x4x8xbf16>
    %76 = vector.shape_cast %75 : vector<1x4x8xbf16> to vector<4x8xbf16>
    %cst_77 = arith.constant dense<0.000000e+00> : vector<256x8xf32>
    %77 = tpu.matmul %70, %76, %cst_77 {dimension_numbers = #tpu.dot_dimension_numbers<[1], [0], [0], [1], [0, 0, 1, 1], [], []>} : vector<256x4xbf16>, vector<4x8xbf16>, vector<256x8xf32> -> vector<256x8xf32>
    %78 = arith.addf %67, %77 : vector<256x8xf32>
    %c0_78 = arith.constant 0 : index
    %c2_79 = arith.constant 2 : index
    %c1_80 = arith.constant 1 : index
    %c0_81 = arith.constant 0 : index
    %79 = vector.load %arg1[%c0_78, %c2_79, %c1_80, %c0_81] : memref<1x18x18x4xbf16, #tpu.memory_space<vmem>>, vector<1x16x16x4xbf16>
    %80 = vector.shape_cast %79 : vector<1x16x16x4xbf16> to vector<16x16x4xbf16>
    %81 = vector.shape_cast %80 : vector<16x16x4xbf16> to vector<256x4xbf16>
    %c7 = arith.constant 7 : index
    %c0_82 = arith.constant 0 : index
    %c0_83 = arith.constant 0 : index
    %82 = vector.load %arg2[%c7, %c0_82, %c0_83] : memref<9x4x8xbf16, #tpu.memory_space<vmem>>, vector<1x4x8xbf16>
    %83 = vector.shape_cast %82 : vector<1x4x8xbf16> to vector<4x8xbf16>
    %cst_84 = arith.constant dense<0.000000e+00> : vector<256x8xf32>
    %84 = tpu.matmul %81, %83, %cst_84 {dimension_numbers = #tpu.dot_dimension_numbers<[1], [0], [0], [1], [0, 0, 1, 1], [], []>} : vector<256x4xbf16>, vector<4x8xbf16>, vector<256x8xf32> -> vector<256x8xf32>
    %85 = arith.addf %74, %84 : vector<256x8xf32>
    %c7_85 = arith.constant 7 : index
    %c0_86 = arith.constant 0 : index
    %c0_87 = arith.constant 0 : index
    %86 = vector.load %arg5[%c7_85, %c0_86, %c0_87] : memref<9x4x8xbf16, #tpu.memory_space<vmem>>, vector<1x4x8xbf16>
    %87 = vector.shape_cast %86 : vector<1x4x8xbf16> to vector<4x8xbf16>
    %cst_88 = arith.constant dense<0.000000e+00> : vector<256x8xf32>
    %88 = tpu.matmul %81, %87, %cst_88 {dimension_numbers = #tpu.dot_dimension_numbers<[1], [0], [0], [1], [0, 0, 1, 1], [], []>} : vector<256x4xbf16>, vector<4x8xbf16>, vector<256x8xf32> -> vector<256x8xf32>
    %89 = arith.addf %78, %88 : vector<256x8xf32>
    %c0_89 = arith.constant 0 : index
    %c2_90 = arith.constant 2 : index
    %c2_91 = arith.constant 2 : index
    %c0_92 = arith.constant 0 : index
    %90 = vector.load %arg1[%c0_89, %c2_90, %c2_91, %c0_92] : memref<1x18x18x4xbf16, #tpu.memory_space<vmem>>, vector<1x16x16x4xbf16>
    %91 = vector.shape_cast %90 : vector<1x16x16x4xbf16> to vector<16x16x4xbf16>
    %92 = vector.shape_cast %91 : vector<16x16x4xbf16> to vector<256x4xbf16>
    %c8 = arith.constant 8 : index
    %c0_93 = arith.constant 0 : index
    %c0_94 = arith.constant 0 : index
    %93 = vector.load %arg2[%c8, %c0_93, %c0_94] : memref<9x4x8xbf16, #tpu.memory_space<vmem>>, vector<1x4x8xbf16>
    %94 = vector.shape_cast %93 : vector<1x4x8xbf16> to vector<4x8xbf16>
    %cst_95 = arith.constant dense<0.000000e+00> : vector<256x8xf32>
    %95 = tpu.matmul %92, %94, %cst_95 {dimension_numbers = #tpu.dot_dimension_numbers<[1], [0], [0], [1], [0, 0, 1, 1], [], []>} : vector<256x4xbf16>, vector<4x8xbf16>, vector<256x8xf32> -> vector<256x8xf32>
    %96 = arith.addf %85, %95 : vector<256x8xf32>
    %c8_96 = arith.constant 8 : index
    %c0_97 = arith.constant 0 : index
    %c0_98 = arith.constant 0 : index
    %97 = vector.load %arg5[%c8_96, %c0_97, %c0_98] : memref<9x4x8xbf16, #tpu.memory_space<vmem>>, vector<1x4x8xbf16>
    %98 = vector.shape_cast %97 : vector<1x4x8xbf16> to vector<4x8xbf16>
    %cst_99 = arith.constant dense<0.000000e+00> : vector<256x8xf32>
    %99 = tpu.matmul %92, %98, %cst_99 {dimension_numbers = #tpu.dot_dimension_numbers<[1], [0], [0], [1], [0, 0, 1, 1], [], []>} : vector<256x4xbf16>, vector<4x8xbf16>, vector<256x8xf32> -> vector<256x8xf32>
    %100 = arith.addf %89, %99 : vector<256x8xf32>
    %c0_100 = arith.constant 0 : index
    %c0_101 = arith.constant 0 : index
    %101 = vector.load %arg3[%c0_100, %c0_101] : memref<1x8xf32, #tpu.memory_space<vmem>>, vector<1x8xf32>
    %102 = vector.broadcast %101 : vector<1x8xf32> to vector<256x8xf32>
    %103 = arith.addf %96, %102 : vector<256x8xf32>
    %cst_102 = arith.constant 0.000000e+00 : f32
    %104 = vector.broadcast %cst_102 : f32 to vector<256x8xf32>
    %105 = arith.maximumf %103, %104 : vector<256x8xf32>
    %cst_103 = arith.constant 0.000000e+00 : f32
    %106 = vector.broadcast %cst_103 : f32 to vector<18x18x8xf32>
    %c0_104 = arith.constant 0 : index
    %c0_105 = arith.constant 0 : index
    %c0_106 = arith.constant 0 : index
    %107 = vector.load %arg8[%c0_104, %c0_105, %c0_106] : memref<18x18x8xf32, #tpu.memory_space<vmem>>, vector<18x18x8xf32>
    tpu.vector_store %arg8[%c0_104, %c0_105, %c0_106], %106 {strides = array<i32>} : memref<18x18x8xf32, #tpu.memory_space<vmem>>, vector<18x18x8xf32>,
    %108 = vector.shape_cast %105 : vector<256x8xf32> to vector<16x16x8xf32>
    %c1_107 = arith.constant 1 : index
    %c1_108 = arith.constant 1 : index
    %c0_109 = arith.constant 0 : index
    %109 = vector.load %arg8[%c1_107, %c1_108, %c0_109] : memref<18x18x8xf32, #tpu.memory_space<vmem>>, vector<16x16x8xf32>
    tpu.vector_store %arg8[%c1_107, %c1_108, %c0_109], %108 {strides = array<i32>} : memref<18x18x8xf32, #tpu.memory_space<vmem>>, vector<16x16x8xf32>,
    %c0_110 = arith.constant 0 : index
    %c0_111 = arith.constant 0 : index
    %c0_112 = arith.constant 0 : index
    %110 = vector.load %arg8[%c0_110, %c0_111, %c0_112] : memref<18x18x8xf32, #tpu.memory_space<vmem>>, vector<16x16x8xf32>
    %111 = vector.shape_cast %110 : vector<16x16x8xf32> to vector<256x8xf32>
    %112 = arith.truncf %111 : vector<256x8xf32> to vector<256x8xbf16>
    %c0_113 = arith.constant 0 : index
    %c0_114 = arith.constant 0 : index
    %c0_115 = arith.constant 0 : index
    %113 = vector.load %arg4[%c0_113, %c0_114, %c0_115] : memref<9x8x8xbf16, #tpu.memory_space<vmem>>, vector<1x8x8xbf16>
    %114 = vector.shape_cast %113 : vector<1x8x8xbf16> to vector<8x8xbf16>
    %cst_116 = arith.constant dense<0.000000e+00> : vector<256x8xf32>
    %115 = tpu.matmul %112, %114, %cst_116 {dimension_numbers = #tpu.dot_dimension_numbers<[1], [0], [0], [1], [0, 0, 1, 1], [], []>} : vector<256x8xbf16>, vector<8x8xbf16>, vector<256x8xf32> -> vector<256x8xf32>
    %116 = arith.addf %100, %115 : vector<256x8xf32>
    %c0_117 = arith.constant 0 : index
    %c1_118 = arith.constant 1 : index
    %c0_119 = arith.constant 0 : index
    %117 = vector.load %arg8[%c0_117, %c1_118, %c0_119] : memref<18x18x8xf32, #tpu.memory_space<vmem>>, vector<16x16x8xf32>
    %118 = vector.shape_cast %117 : vector<16x16x8xf32> to vector<256x8xf32>
    %119 = arith.truncf %118 : vector<256x8xf32> to vector<256x8xbf16>
    %c1_120 = arith.constant 1 : index
    %c0_121 = arith.constant 0 : index
    %c0_122 = arith.constant 0 : index
    %120 = vector.load %arg4[%c1_120, %c0_121, %c0_122] : memref<9x8x8xbf16, #tpu.memory_space<vmem>>, vector<1x8x8xbf16>
    %121 = vector.shape_cast %120 : vector<1x8x8xbf16> to vector<8x8xbf16>
    %cst_123 = arith.constant dense<0.000000e+00> : vector<256x8xf32>
    %122 = tpu.matmul %119, %121, %cst_123 {dimension_numbers = #tpu.dot_dimension_numbers<[1], [0], [0], [1], [0, 0, 1, 1], [], []>} : vector<256x8xbf16>, vector<8x8xbf16>, vector<256x8xf32> -> vector<256x8xf32>
    %123 = arith.addf %116, %122 : vector<256x8xf32>
    %c0_124 = arith.constant 0 : index
    %c2_125 = arith.constant 2 : index
    %c0_126 = arith.constant 0 : index
    %124 = vector.load %arg8[%c0_124, %c2_125, %c0_126] : memref<18x18x8xf32, #tpu.memory_space<vmem>>, vector<16x16x8xf32>
    %125 = vector.shape_cast %124 : vector<16x16x8xf32> to vector<256x8xf32>
    %126 = arith.truncf %125 : vector<256x8xf32> to vector<256x8xbf16>
    %c2_127 = arith.constant 2 : index
    %c0_128 = arith.constant 0 : index
    %c0_129 = arith.constant 0 : index
    %127 = vector.load %arg4[%c2_127, %c0_128, %c0_129] : memref<9x8x8xbf16, #tpu.memory_space<vmem>>, vector<1x8x8xbf16>
    %128 = vector.shape_cast %127 : vector<1x8x8xbf16> to vector<8x8xbf16>
    %cst_130 = arith.constant dense<0.000000e+00> : vector<256x8xf32>
    %129 = tpu.matmul %126, %128, %cst_130 {dimension_numbers = #tpu.dot_dimension_numbers<[1], [0], [0], [1], [0, 0, 1, 1], [], []>} : vector<256x8xbf16>, vector<8x8xbf16>, vector<256x8xf32> -> vector<256x8xf32>
    %130 = arith.addf %123, %129 : vector<256x8xf32>
    %c1_131 = arith.constant 1 : index
    %c0_132 = arith.constant 0 : index
    %c0_133 = arith.constant 0 : index
    %131 = vector.load %arg8[%c1_131, %c0_132, %c0_133] : memref<18x18x8xf32, #tpu.memory_space<vmem>>, vector<16x16x8xf32>
    %132 = vector.shape_cast %131 : vector<16x16x8xf32> to vector<256x8xf32>
    %133 = arith.truncf %132 : vector<256x8xf32> to vector<256x8xbf16>
    %c3_134 = arith.constant 3 : index
    %c0_135 = arith.constant 0 : index
    %c0_136 = arith.constant 0 : index
    %134 = vector.load %arg4[%c3_134, %c0_135, %c0_136] : memref<9x8x8xbf16, #tpu.memory_space<vmem>>, vector<1x8x8xbf16>
    %135 = vector.shape_cast %134 : vector<1x8x8xbf16> to vector<8x8xbf16>
    %cst_137 = arith.constant dense<0.000000e+00> : vector<256x8xf32>
    %136 = tpu.matmul %133, %135, %cst_137 {dimension_numbers = #tpu.dot_dimension_numbers<[1], [0], [0], [1], [0, 0, 1, 1], [], []>} : vector<256x8xbf16>, vector<8x8xbf16>, vector<256x8xf32> -> vector<256x8xf32>
    %137 = arith.addf %130, %136 : vector<256x8xf32>
    %c1_138 = arith.constant 1 : index
    %c1_139 = arith.constant 1 : index
    %c0_140 = arith.constant 0 : index
    %138 = vector.load %arg8[%c1_138, %c1_139, %c0_140] : memref<18x18x8xf32, #tpu.memory_space<vmem>>, vector<16x16x8xf32>
    %139 = vector.shape_cast %138 : vector<16x16x8xf32> to vector<256x8xf32>
    %140 = arith.truncf %139 : vector<256x8xf32> to vector<256x8xbf16>
    %c4_141 = arith.constant 4 : index
    %c0_142 = arith.constant 0 : index
    %c0_143 = arith.constant 0 : index
    %141 = vector.load %arg4[%c4_141, %c0_142, %c0_143] : memref<9x8x8xbf16, #tpu.memory_space<vmem>>, vector<1x8x8xbf16>
    %142 = vector.shape_cast %141 : vector<1x8x8xbf16> to vector<8x8xbf16>
    %cst_144 = arith.constant dense<0.000000e+00> : vector<256x8xf32>
    %143 = tpu.matmul %140, %142, %cst_144 {dimension_numbers = #tpu.dot_dimension_numbers<[1], [0], [0], [1], [0, 0, 1, 1], [], []>} : vector<256x8xbf16>, vector<8x8xbf16>, vector<256x8xf32> -> vector<256x8xf32>
    %144 = arith.addf %137, %143 : vector<256x8xf32>
    %c1_145 = arith.constant 1 : index
    %c2_146 = arith.constant 2 : index
    %c0_147 = arith.constant 0 : index
    %145 = vector.load %arg8[%c1_145, %c2_146, %c0_147] : memref<18x18x8xf32, #tpu.memory_space<vmem>>, vector<16x16x8xf32>
    %146 = vector.shape_cast %145 : vector<16x16x8xf32> to vector<256x8xf32>
    %147 = arith.truncf %146 : vector<256x8xf32> to vector<256x8xbf16>
    %c5_148 = arith.constant 5 : index
    %c0_149 = arith.constant 0 : index
    %c0_150 = arith.constant 0 : index
    %148 = vector.load %arg4[%c5_148, %c0_149, %c0_150] : memref<9x8x8xbf16, #tpu.memory_space<vmem>>, vector<1x8x8xbf16>
    %149 = vector.shape_cast %148 : vector<1x8x8xbf16> to vector<8x8xbf16>
    %cst_151 = arith.constant dense<0.000000e+00> : vector<256x8xf32>
    %150 = tpu.matmul %147, %149, %cst_151 {dimension_numbers = #tpu.dot_dimension_numbers<[1], [0], [0], [1], [0, 0, 1, 1], [], []>} : vector<256x8xbf16>, vector<8x8xbf16>, vector<256x8xf32> -> vector<256x8xf32>
    %151 = arith.addf %144, %150 : vector<256x8xf32>
    %c2_152 = arith.constant 2 : index
    %c0_153 = arith.constant 0 : index
    %c0_154 = arith.constant 0 : index
    %152 = vector.load %arg8[%c2_152, %c0_153, %c0_154] : memref<18x18x8xf32, #tpu.memory_space<vmem>>, vector<16x16x8xf32>
    %153 = vector.shape_cast %152 : vector<16x16x8xf32> to vector<256x8xf32>
    %154 = arith.truncf %153 : vector<256x8xf32> to vector<256x8xbf16>
    %c6_155 = arith.constant 6 : index
    %c0_156 = arith.constant 0 : index
    %c0_157 = arith.constant 0 : index
    %155 = vector.load %arg4[%c6_155, %c0_156, %c0_157] : memref<9x8x8xbf16, #tpu.memory_space<vmem>>, vector<1x8x8xbf16>
    %156 = vector.shape_cast %155 : vector<1x8x8xbf16> to vector<8x8xbf16>
    %cst_158 = arith.constant dense<0.000000e+00> : vector<256x8xf32>
    %157 = tpu.matmul %154, %156, %cst_158 {dimension_numbers = #tpu.dot_dimension_numbers<[1], [0], [0], [1], [0, 0, 1, 1], [], []>} : vector<256x8xbf16>, vector<8x8xbf16>, vector<256x8xf32> -> vector<256x8xf32>
    %158 = arith.addf %151, %157 : vector<256x8xf32>
    %c2_159 = arith.constant 2 : index
    %c1_160 = arith.constant 1 : index
    %c0_161 = arith.constant 0 : index
    %159 = vector.load %arg8[%c2_159, %c1_160, %c0_161] : memref<18x18x8xf32, #tpu.memory_space<vmem>>, vector<16x16x8xf32>
    %160 = vector.shape_cast %159 : vector<16x16x8xf32> to vector<256x8xf32>
    %161 = arith.truncf %160 : vector<256x8xf32> to vector<256x8xbf16>
    %c7_162 = arith.constant 7 : index
    %c0_163 = arith.constant 0 : index
    %c0_164 = arith.constant 0 : index
    %162 = vector.load %arg4[%c7_162, %c0_163, %c0_164] : memref<9x8x8xbf16, #tpu.memory_space<vmem>>, vector<1x8x8xbf16>
    %163 = vector.shape_cast %162 : vector<1x8x8xbf16> to vector<8x8xbf16>
    %cst_165 = arith.constant dense<0.000000e+00> : vector<256x8xf32>
    %164 = tpu.matmul %161, %163, %cst_165 {dimension_numbers = #tpu.dot_dimension_numbers<[1], [0], [0], [1], [0, 0, 1, 1], [], []>} : vector<256x8xbf16>, vector<8x8xbf16>, vector<256x8xf32> -> vector<256x8xf32>
    %165 = arith.addf %158, %164 : vector<256x8xf32>
    %c2_166 = arith.constant 2 : index
    %c2_167 = arith.constant 2 : index
    %c0_168 = arith.constant 0 : index
    %166 = vector.load %arg8[%c2_166, %c2_167, %c0_168] : memref<18x18x8xf32, #tpu.memory_space<vmem>>, vector<16x16x8xf32>
    %167 = vector.shape_cast %166 : vector<16x16x8xf32> to vector<256x8xf32>
    %168 = arith.truncf %167 : vector<256x8xf32> to vector<256x8xbf16>
    %c8_169 = arith.constant 8 : index
    %c0_170 = arith.constant 0 : index
    %c0_171 = arith.constant 0 : index
    %169 = vector.load %arg4[%c8_169, %c0_170, %c0_171] : memref<9x8x8xbf16, #tpu.memory_space<vmem>>, vector<1x8x8xbf16>
    %170 = vector.shape_cast %169 : vector<1x8x8xbf16> to vector<8x8xbf16>
    %cst_172 = arith.constant dense<0.000000e+00> : vector<256x8xf32>
    %171 = tpu.matmul %168, %170, %cst_172 {dimension_numbers = #tpu.dot_dimension_numbers<[1], [0], [0], [1], [0, 0, 1, 1], [], []>} : vector<256x8xbf16>, vector<8x8xbf16>, vector<256x8xf32> -> vector<256x8xf32>
    %172 = arith.addf %165, %171 : vector<256x8xf32>
    %c0_173 = arith.constant 0 : index
    %c0_174 = arith.constant 0 : index
    %173 = vector.load %arg6[%c0_173, %c0_174] : memref<1x8xf32, #tpu.memory_space<vmem>>, vector<1x8xf32>
    %174 = vector.broadcast %173 : vector<1x8xf32> to vector<256x8xf32>
    %175 = arith.addf %172, %174 : vector<256x8xf32>
    %cst_175 = arith.constant 0.000000e+00 : f32
    %176 = vector.broadcast %cst_175 : f32 to vector<256x8xf32>
    %177 = arith.maximumf %175, %176 : vector<256x8xf32>
    %178 = vector.shape_cast %177 : vector<256x8xf32> to vector<16x16x8xf32>
    %179 = vector.extract_strided_slice %178 {offsets = [1, 1, 0], sizes = [14, 14, 8], strides = [1, 1, 1]} : vector<16x16x8xf32> to vector<14x14x8xf32>
    %180 = vector.shape_cast %179 : vector<14x14x8xf32> to vector<1x14x14x8xf32>
    %c0_176 = arith.constant 0 : index
    %c0_177 = arith.constant 0 : index
    %c0_178 = arith.constant 0 : index
    %c0_179 = arith.constant 0 : index
    %181 = vector.load %arg7[%c0_176, %c0_177, %c0_178, %c0_179] : memref<1x14x14x8xf32, #tpu.memory_space<vmem>>, vector<1x14x14x8xf32>
    tpu.vector_store %arg7[%c0_176, %c0_177, %c0_178, %c0_179], %180 {strides = array<i32>} : memref<1x14x14x8xf32, #tpu.memory_space<vmem>>, vector<1x14x14x8xf32>,
    return
  }
  func.func @transform_0(%arg0: i32) -> (i32, i32, i32, i32) {
    %c0_i32 = arith.constant 0 : i32
    %c0_i32_0 = arith.constant 0 : i32
    %c0_i32_1 = arith.constant 0 : i32
    %c0_i32_2 = arith.constant 0 : i32
    return %arg0, %c0_i32, %c0_i32_0, %c0_i32_1 : i32, i32, i32, i32
  }
  func.func @transform_1(%arg0: i32) -> (i32, i32, i32) {
    %c0_i32 = arith.constant 0 : i32
    %c0_i32_0 = arith.constant 0 : i32
    %c0_i32_1 = arith.constant 0 : i32
    %c0_i32_2 = arith.constant 0 : i32
    return %c0_i32, %c0_i32_0, %c0_i32_1 : i32, i32, i32
  }
  func.func @transform_2(%arg0: i32) -> (i32, i32) {
    %c0_i32 = arith.constant 0 : i32
    %c0_i32_0 = arith.constant 0 : i32
    %c0_i32_1 = arith.constant 0 : i32
    return %c0_i32, %c0_i32_0 : i32, i32
  }
  func.func @transform_3(%arg0: i32) -> (i32, i32, i32) {
    %c0_i32 = arith.constant 0 : i32
    %c0_i32_0 = arith.constant 0 : i32
    %c0_i32_1 = arith.constant 0 : i32
    %c0_i32_2 = arith.constant 0 : i32
    return %c0_i32, %c0_i32_0, %c0_i32_1 : i32, i32, i32
  }
  func.func @transform_4(%arg0: i32) -> (i32, i32, i32) {
    %c0_i32 = arith.constant 0 : i32
    %c0_i32_0 = arith.constant 0 : i32
    %c0_i32_1 = arith.constant 0 : i32
    %c0_i32_2 = arith.constant 0 : i32
    return %c0_i32, %c0_i32_0, %c0_i32_1 : i32, i32, i32
  }
  func.func @transform_5(%arg0: i32) -> (i32, i32) {
    %c0_i32 = arith.constant 0 : i32
    %c0_i32_0 = arith.constant 0 : i32
    %c0_i32_1 = arith.constant 0 : i32
    return %c0_i32, %c0_i32_0 : i32, i32
  }
  func.func @transform_6(%arg0: i32) -> (i32, i32, i32, i32) {
    %c0_i32 = arith.constant 0 : i32
    %c0_i32_0 = arith.constant 0 : i32
    %c0_i32_1 = arith.constant 0 : i32
    %c0_i32_2 = arith.constant 0 : i32
    return %arg0, %c0_i32, %c0_i32_0, %c0_i32_1 : i32, i32, i32, i32
  }
}

</mosaic_0001>

<bundles_post_ra>
// kernel: basic_block_forward.1
= control target key start
LH: loop header
LB: loop body
LE: loop exit
PB: predicated region body
PF: predicated region fallthrough
CT: control target
= control target key end

     0   :  { %s12436_s21 = smov 0   ;;  %s15270_s0 = inlined_call_operand.vmem [shape: bf16[2,18,18,4], index: 0, kind: input, shape index: {}]   ;;  %s15271_s1 = inlined_call_operand.vmem [shape: bf16[9,4,8], index: 1, kind: input, shape index: {}]   ;;  %s15272_s2 = inlined_call_operand.vmem [shape: f32[1,8], index: 2, kind: input, shape index: {}]   ;;  %s15273_s3 = inlined_call_operand.vmem [shape: bf16[9,8,8], index: 3, kind: input, shape index: {}]   ;;  %s15274_s4 = inlined_call_operand.vmem [shape: bf16[9,4,8], index: 4, kind: input, shape index: {}]   ;;  %s15275_s5 = inlined_call_operand.vmem [shape: f32[1,8], index: 5, kind: input, shape index: {}]   ;;  %s15276_s6 = inlined_call_operand.vmem [shape: f32[2,14,14,8], index: 6, kind: output, shape index: {}]  }
   0x1 LB: > { %s9348_s22 = sadd.s32 4294967295, %s12398_s21   ;;  %p9352_p0 = scmp.ge.s32.totalorder %s12398_s21, 1  ;;  %s12398_s21 = sphi %s12436_s21, %s16_s21  }
   0x2   : > { %p212_p1 = scmp.lt.s32.totalorder %s12398_s21, 3 }
   0x4   : > { %p213_p2 = pnand %p9352_p0, %p212_p1 }
   0x6   : > { %216 = sbr.rel (%p213_p2) target bundleno = 1857 (0x741), region = 44 }
   0xd   : > { %v9355_v0 = vld [vmem:[%s15271_s1 + $0x2] sm:$0x3]  ;;  %vm789_vm0 = vcmask 1041408   ;;  %p242_p3 = scmp.lt.s32.totalorder %s9348_s22, 1  ;;  %v285_v2 = vld [vmem:[%s15271_s1] sm:$0x3] }
   0xe   : > { %12242 = vmatprep.subr.msk.bf16.mxu0 %vm789_vm0, %v9355_v0  ;;  %v791_v1 = vsel %vm789_vm0, %v9355_v0, 0  ;;  %vm303_vm1 = vsmask.f32 3328  ;;  %vm304_vm2 = vsmask.f32 7440  ;;  %vm740_vm4 = vcmask 31744  }
   0xf   : > { %10659 = vmatpush3.bf16.msra.mxu0 %v791_v1  ;;  %s15490_s22 = smov (!%p242_p3, %s9348_s22), 1  ;;  %vm12491_vm3 = vmor %vm303_vm1, %vm304_vm2  ;;  %v1083_v35 = vsel %vm789_vm0, %v285_v2, 0  ;;  %vm1616_vm5 = vcmask 1042432   ;;  %vm1617_vm6 = vcmask 1046532   ;;  %vm6722_vm8 = vcmask 1043456  }
  0x10   : > { %12243 = vmatprep.subr.msk.bf16.mxu0 %vm789_vm0, %v285_v2  ;;  %s12270_s27 = smul.u32 216, %s15490_s22  ;;  %vm12996_vm7 = vmor %vm1616_vm5, %vm1617_vm6  ;;  %vm6536_vm9 = vcmask 64512   ;;  %vm6539_vm10 = vcmask 58368   ;;  %vm9263_vm11 = vcmask 64513   ;;  %vm9265_vm12 = vcmask 63488  }
  0x11   : > { %s12271_s18 = smul.u32 224, %s15490_s22 }
  0x12   : > { %s12459_s30 = scalar_lea.vmem %s15270_s0, %s12270_s27 }
  0x13   : > { %v12462_v3 = vld [vmem:[%s12459_s30] sm:$0xf]  ;;  %v12465_v4 = vld [vmem:[%s12459_s30 + $0x4] sm:$0xf]  ;;  %v287_v5 = vld [vmem:[%s12459_s30 + $0x8] sm:$0x1]  ;;  %s15156_s24 = scalar_lea.vmem %s15276_s6, %s12271_s18 }
  0x14   : > { %v307_v6 = vshrl.u32 %v12462_v3, 16  ;;  %v310_v7 = vshll.u32 %v12462_v3, 16  ;;  %v316_v8 = vshll.u32 %v12465_v4, 16  ;;  %v320_v9 = vshrl.u32 %v12465_v4, 16  ;;  %v12473_v10 = vld [vmem:[%s12459_s30 + $0xc] sm:$0xf] }
  0x15   : > { %v326_v11 = vshll.u32 %v287_v5, 16  ;;  %v12476_v12 = vld [vmem:[%s12459_s30 + $0x10] sm:$0xf]  ;;  %v12479_v13 = vld [vmem:[%s12459_s30 + $0x14] sm:$0x1]  ;;  %v331_v19 = vshrl.u32 %v12473_v10, 16 }
  0x16   : > { %v309_v14 = vrot.slane %v307_v6, 4  ;;  %v312_v15 = vrot.slane %v310_v7, 5  ;;  %v318_v16 = vrot.slane %v316_v8, 5  ;;  %v322_v17 = vrot.slane %v320_v9, 4  ;;  %v12487_v26 = vld [vmem:[%s12459_s30 + $0x18] sm:$0xf] }
  0x17   : > { %v328_v18 = vrot.slane %v326_v11, 5  ;;  %v334_v20 = vshll.u32 %v12473_v10, 16  ;;  %v340_v21 = vshll.u32 %v12476_v12, 16  ;;  %v344_v24 = vshrl.u32 %v12476_v12, 16  ;;  %v12496_v31 = vld [vmem:[%s12459_s30 + $0x1c] sm:$0xf] }
  0x18   : > { %v313_v22 = vor.u32 %v312_v15, %v309_v14  ;;  %v323_v23 = vor.u32 %v322_v17, %v318_v16  ;;  %v350_v25 = vshll.u32 %v12479_v13, 16  ;;  %v333_v28 = vrot.slane %v331_v19, 4  ;;  %v289_v38 = vld [vmem:[%s12459_s30 + $0x20] sm:$0x1]  ;;  %v12508_v45 = vld [vmem:[%s12459_s30 + $0x24] sm:$0xf] }
  0x19   : > { %v336_v29 = vrot.slane %v334_v20, 5  ;;  %v342_v30 = vrot.slane %v340_v21, 5  ;;  %v346_v34 = vrot.slane %v344_v24, 4  ;;  %v355_v39 = vshrl.u32 %v12487_v26, 16  ;;  %v12513_v50 = vld [vmem:[%s12459_s30 + $0x28] sm:$0xf] }
  0x1a   : > { %v314_v32 = vrot.slane %v313_v22, 4  ;;  %v324_v33 = vrot.slane %v323_v23, 4  ;;  %v352_v37 = vrot.slane %v350_v25, 5  ;;  %v358_v40 = vshll.u32 %v12487_v26, 16  ;;  %v290_v57 = vld [vmem:[%s12459_s30 + $0x2c] sm:$0x1] }
  0x1b   : > { %v337_v36 = vor.u32 %v336_v29, %v333_v28  ;;  %v347_v43 = vor.u32 %v346_v34, %v342_v30  ;;  %v364_v44 = vshll.u32 %v12496_v31, 16  ;;  %v357_v48 = vrot.slane %v355_v39, 4  ;;  %v12527_v0 = vld [vmem:[%s12459_s30 + $0x30] sm:$0xf]  ;;  %v12532_v7 = vld [vmem:[%s12459_s30 + $0x34] sm:$0xf] }
  0x1c   : > { %v319_v41 = vsel %vm12491_vm3, %v314_v32, %v318_v16  ;;  %v329_v42 = vsel %vm12491_vm3, %v324_v33, %v328_v18  ;;  %v360_v49 = vrot.slane %v358_v40, 5  ;;  %v368_v53 = vshrl.u32 %v12496_v31, 16  ;;  %v12538_v15 = vld [vmem:[%s15274_s4 + $0x2] sm:$0x3]  ;;  %v291_v18 = vld [vmem:[%s12459_s30 + $0x38] sm:$0x1] }
  0x1d   : > { %v12510_v46 = vcombine.low %v319_v41, %v329_v42  ;;  %v338_v47 = vrot.slane %v337_v36, 4  ;;  %v348_v51 = vrot.slane %v347_v43, 4  ;;  %v366_v52 = vrot.slane %v364_v44, 5  ;;  %v12550_v32 = vld [vmem:[%s12459_s30 + $0x3c] sm:$0xf] }
  0x1e   : > { %v374_v54 = vshll.u32 %v289_v38, 16  ;;  %v361_v56 = vor.u32 %v360_v49, %v357_v48  ;;  %v379_v58 = vshrl.u32 %v12508_v45, 16  ;;  %v382_v59 = vshll.u32 %v12508_v45, 16  ;;  %v292_v42 = vld [vmem:[%s12459_s30 + $0x44] sm:$0x1] }
  0x1f   : > { %10660 = vmatprep.mubr.msk.bf16.mxu0 %vm740_vm4, %v12510_v46  ;;  %v343_v55 = vsel %vm12491_vm3, %v338_v47, %v342_v30  ;;  %v353_v60 = vsel %vm12491_vm3, %v348_v51, %v352_v37  ;;  %v370_v61 = vrot.slane %v368_v53, 4  ;;  %v388_v63 = vshll.u32 %v12513_v50, 16  ;;  %v12557_v37 = vld [vmem:[%s12459_s30 + $0x40] sm:$0xf] }
  0x20   : > { %v376_v62 = vrot.slane %v374_v54, 5  ;;  %v12529_v1 = vcombine.low %v343_v55, %v353_v60  ;;  %v362_v2 = vrot.slane %v361_v56, 4  ;;  %v381_v5 = vrot.slane %v379_v58, 4  ;;  %v12571_v54 = vld [vmem:[%s12459_s30 + $0x48] sm:$0xf] }
  0x21   : > { %v384_v6 = vrot.slane %v382_v59, 5  ;;  %v371_v8 = vor.u32 %v370_v61, %v366_v52  ;;  %v390_v9 = vrot.slane %v388_v63, 5  ;;  %v392_v11 = vshrl.u32 %v12513_v50, 16  ;;  %v12576_v59 = vld [vmem:[%s12459_s30 + $0x4c] sm:$0xf] }
  0x22   : > { %v398_v14 = vshll.u32 %v290_v57, 16  ;;  %10661 = vmatmul.mubr.msk.bf16.vlgmr.msra.gmra.mrb[0].mxu0 %vm740_vm4, %v12529_v1  ;;  %v367_v16 = vsel %vm12491_vm3, %v362_v2, %v366_v52  ;;  %v403_v19 = vshrl.u32 %v12527_v0, 16  ;;  %v406_v20 = vshll.u32 %v12527_v0, 16 }
  0x23   : > { %v385_v17 = vor.u32 %v384_v6, %v381_v5  ;;  %10693 = vmatpush3.bf16.msra.mxu0 %v1083_v35  ;;  %v372_v21 = vrot.slane %v371_v8, 4  ;;  %v394_v22 = vrot.slane %v392_v11, 4  ;;  %v412_v24 = vshll.u32 %v12532_v7, 16  ;;  %v293_v8 = vld [vmem:[%s12459_s30 + $0x50] sm:$0x1] }
  0x24   : > { %v400_v23 = vrot.slane %v398_v14, 5  ;;  %v405_v28 = vrot.slane %v403_v19, 4  ;;  %v408_v29 = vrot.slane %v406_v20, 5  ;;  %v416_v30 = vshrl.u32 %v12532_v7, 16  ;;  %12244 = vmatprep.subr.msk.bf16.mxu0 %vm789_vm0, %v12538_v15 }
  0x25   : > { %v386_v25 = vrot.slane %v385_v17, 4  ;;  %v377_v33 = vsel %vm12491_vm3, %v372_v21, %v376_v62  ;;  %v395_v34 = vor.u32 %v394_v22, %v390_v9  ;;  %v414_v35 = vrot.slane %v412_v24, 5 }
  0x26   : > { %v422_v36 = vshll.u32 %v291_v18, 16  ;;  %v12559_v38 = vcombine.low %v367_v16, %v377_v33  ;;  %v409_v40 = vor.u32 %v408_v29, %v405_v28  ;;  %v418_v41 = vrot.slane %v416_v30, 4  ;;  %v12592_v18 = vld [vmem:[%s12459_s30 + $0x54] sm:$0xf] }
  0x27   : > { %v391_v39 = vsel %vm12491_vm3, %v386_v25, %v390_v9  ;;  %v396_v43 = vrot.slane %v395_v34, 4  ;;  %v427_v47 = vshrl.u32 %v12550_v32, 16  ;;  %v430_v48 = vshll.u32 %v12550_v32, 16 }
  0x28   : > { %v424_v44 = vrot.slane %v422_v36, 5  ;;  %10664 = vmatprep.mubr.msk.bf16.mxu0 %vm740_vm4, %v12559_v38  ;;  %v410_v49 = vrot.slane %v409_v40, 4  ;;  %v419_v51 = vor.u32 %v418_v41, %v414_v35  ;;  %v436_v52 = vshll.u32 %v12557_v37, 16  ;;  %v294_v41 = vld [vmem:[%s12459_s30 + $0x5c] sm:$0x1] }
  0x29   : > { %v440_v53 = vshrl.u32 %v12557_v37, 16  ;;  %v401_v55 = vsel %vm12491_vm3, %v396_v43, %v400_v23  ;;  %v429_v56 = vrot.slane %v427_v47, 4  ;;  %v432_v57 = vrot.slane %v430_v48, 5  ;;  %v12597_v23 = vld [vmem:[%s12459_s30 + $0x58] sm:$0xf] }
  0x2a   : > { %v446_v58 = vshll.u32 %v292_v42, 16  ;;  %v12578_v60 = vcombine.low %v391_v39, %v401_v55  ;;  %v415_v61 = vsel %vm12491_vm3, %v410_v49, %v414_v35  ;;  %v420_v62 = vrot.slane %v419_v51, 4  ;;  %v12608_v43 = vld [vmem:[%s12459_s30 + $0x60] sm:$0xf]  ;;  %v12614_v51 = vld [vmem:[%s12459_s30 + $0x64] sm:$0xf] }
  0x2b   : > { %v438_v63 = vrot.slane %v436_v52, 5  ;;  %v433_v2 = vor.u32 %v432_v57, %v429_v56  ;;  %v442_v5 = vrot.slane %v440_v53, 4  ;;  %v451_v9 = vshrl.u32 %v12571_v54, 16 }
  0x2c   : > { %15333 = vst [vmem:[#allocation3_spill] sm:$0xff] %v12578_v60  ;;  %v448_v6 = vrot.slane %v446_v58, 5  ;;  %10665 = vmatmul.mubr.msk.bf16.gmra.mrb[4].mxu0 %vm740_vm4, %v12578_v60  ;;  %v425_v11 = vsel %vm12491_vm3, %v420_v62, %v424_v44  ;;  %v454_v14 = vshll.u32 %v12571_v54, 16  ;;  %v460_v16 = vshll.u32 %v12576_v59, 16 }
  0x2d   : > { %v464_v17 = vshrl.u32 %v12576_v59, 16  ;;  %v12594_v19 = vcombine.low %v415_v61, %v425_v11  ;;  %v434_v20 = vrot.slane %v433_v2, 4  ;;  %v443_v21 = vor.u32 %v442_v5, %v438_v63  ;;  %v295_v5 = vld [vmem:[%s12459_s30 + $0x68] sm:$0x1] }
  0x2e   : > { %v453_v22 = vrot.slane %v451_v9, 4  ;;  %v456_v24 = vrot.slane %v454_v14, 5  ;;  %v462_v25 = vrot.slane %v460_v16, 5  ;;  %v470_v29 = vshll.u32 %v293_v8, 16  ;;  %v12629_v9 = vld [vmem:[%s12459_s30 + $0x6c] sm:$0xf] }
  0x2f   : > { %15334 = vst [vmem:[#allocation4_spill] sm:$0xff] %v12594_v19  ;;  %v466_v28 = vrot.slane %v464_v17, 4  ;;  %10668 = vmatprep.mubr.msk.bf16.mxu0 %vm740_vm4, %v12594_v19  ;;  %v439_v30 = vsel %vm12491_vm3, %v434_v20, %v438_v63  ;;  %v444_v33 = vrot.slane %v443_v21, 4  ;;  %v475_v34 = vshrl.u32 %v12592_v18, 16  ;;  %v12634_v20 = vld [vmem:[%s12459_s30 + $0x70] sm:$0xf] }
  0x30   : > { %v478_v35 = vshll.u32 %v12592_v18, 16  ;;  %v457_v36 = vor.u32 %v456_v24, %v453_v22  ;;  %v472_v40 = vrot.slane %v470_v29, 5  ;;  %v484_v42 = vshll.u32 %v12597_v23, 16  ;;  %v12639_v29 = vld [vmem:[%s12459_s30 + $0x78] sm:$0xf] }
  0x31   : > { %v467_v39 = vor.u32 %v466_v28, %v462_v25  ;;  %v449_v44 = vsel %vm12491_vm3, %v444_v33, %v448_v6  ;;  %v477_v47 = vrot.slane %v475_v34, 4  ;;  %v488_v49 = vshrl.u32 %v12597_v23, 16  ;;  %v296_v28 = vld [vmem:[%s12459_s30 + $0x74] sm:$0x1] }
  0x32   : > { %v480_v48 = vrot.slane %v478_v35, 5  ;;  %v12616_v52 = vcombine.low %v439_v30, %v449_v44  ;;  %v458_v53 = vrot.slane %v457_v36, 4  ;;  %v486_v56 = vrot.slane %v484_v42, 5  ;;  %v12649_v42 = vld [vmem:[%s12459_s30 + $0x7c] sm:$0xf] }
  0x33   : > { %v468_v55 = vrot.slane %v467_v39, 4  ;;  %v490_v58 = vrot.slane %v488_v49, 4  ;;  %v494_v61 = vshll.u32 %v294_v41, 16  ;;  %v499_v62 = vshrl.u32 %v12608_v43, 16 }
  0x34   : > { %15335 = vst [vmem:[#allocation5_spill] sm:$0xff] %v12616_v52  ;;  %v481_v57 = vor.u32 %v480_v48, %v477_v47  ;;  %10669 = vmatmul.mubr.msk.bf16.gmra.mrb[8].mxu0 %vm740_vm4, %v12616_v52  ;;  %v463_v63 = vsel %vm12491_vm3, %v458_v53, %v462_v25  ;;  %v502_v6 = vshll.u32 %v12608_v43, 16  ;;  %v508_v8 = vshll.u32 %v12614_v51, 16  ;;  %v302_v52 = vld [vmem:[%s12459_s30 + $0xbc] sm:$0x1] }
  0x35   : > { %v473_v2 = vsel %vm12491_vm3, %v468_v55, %v472_v40  ;;  %v491_v16 = vor.u32 %v490_v58, %v486_v56  ;;  %v496_v17 = vrot.slane %v494_v61, 5  ;;  %v501_v21 = vrot.slane %v499_v62, 4  ;;  %v297_v58 = vld [vmem:[%s12459_s30 + $0x80] sm:$0x1] }
  0x36   : > { %v12631_v11 = vcombine.low %v463_v63, %v473_v2  ;;  %v482_v14 = vrot.slane %v481_v57, 4  ;;  %v504_v22 = vrot.slane %v502_v6, 5  ;;  %v510_v24 = vrot.slane %v508_v8, 5 }
  0x37   : > { %v512_v25 = vshrl.u32 %v12614_v51, 16  ;;  %v492_v33 = vrot.slane %v491_v16, 4  ;;  %v518_v34 = vshll.u32 %v295_v5, 16  ;;  %v523_v35 = vshrl.u32 %v12629_v9, 16  ;;  %v12659_v5 = vld [vmem:[%s12459_s30 + $0x84] sm:$0xf] }
  0x38   : > { %15336 = vst [vmem:[#allocation6_spill] sm:$0xff] %v12631_v11  ;;  %10672 = vmatprep.mubr.msk.bf16.mxu0 %vm740_vm4, %v12631_v11  ;;  %v487_v30 = vsel %vm12491_vm3, %v482_v14, %v486_v56  ;;  %v505_v36 = vor.u32 %v504_v22, %v501_v21  ;;  %v526_v40 = vshll.u32 %v12629_v9, 16  ;;  %v532_v41 = vshll.u32 %v12634_v20, 16 }
  0x39   : > { %v514_v39 = vrot.slane %v512_v25, 4  ;;  %v497_v44 = vsel %vm12491_vm3, %v492_v33, %v496_v17  ;;  %v520_v47 = vrot.slane %v518_v34, 5  ;;  %v525_v48 = vrot.slane %v523_v35, 4  ;;  %v12667_v17 = vld [vmem:[%s12459_s30 + $0x88] sm:$0xf] }
  0x3a   : > { %v536_v49 = vshrl.u32 %v12634_v20, 16  ;;  %v12654_v53 = vcombine.low %v487_v30, %v497_v44  ;;  %v506_v55 = vrot.slane %v505_v36, 4  ;;  %v528_v57 = vrot.slane %v526_v40, 5  ;;  %v298_v35 = vld [vmem:[%s12459_s30 + $0x8c] sm:$0x1] }
  0x3b   : > { %v515_v56 = vor.u32 %v514_v39, %v510_v24  ;;  %v534_v61 = vrot.slane %v532_v41, 5  ;;  %v542_v63 = vshll.u32 %v296_v28, 16  ;;  %v547_v2 = vshrl.u32 %v12639_v29, 16  ;;  %v12677_v44 = vld [vmem:[%s12459_s30 + $0x90] sm:$0xf] }
  0x3c   : > { %15337 = vst [vmem:[#allocation7_spill] sm:$0xff] %v12654_v53  ;;  %v538_v62 = vrot.slane %v536_v49, 4  ;;  %10673 = vmatmul.mubr.msk.bf16.gmra.mrb[12].mxu0 %vm740_vm4, %v12654_v53  ;;  %v511_v6 = vsel %vm12491_vm3, %v506_v55, %v510_v24  ;;  %v529_v14 = vor.u32 %v528_v57, %v525_v48  ;;  %v550_v16 = vshll.u32 %v12639_v29, 16 }
  0x3d   : > { %v516_v8 = vrot.slane %v515_v56, 4  ;;  %v544_v22 = vrot.slane %v542_v63, 5  ;;  %v549_v25 = vrot.slane %v547_v2, 4  ;;  %v556_v28 = vshll.u32 %v12649_v42, 16  ;;  %v12683_v56 = vld [vmem:[%s12459_s30 + $0x94] sm:$0xf] }
  0x3e   : > { %v539_v21 = vor.u32 %v538_v62, %v534_v61  ;;  %v530_v33 = vrot.slane %v529_v14, 4  ;;  %v552_v34 = vrot.slane %v550_v16, 5  ;;  %v560_v24 = vshrl.u32 %v12649_v42, 16 }
  0x3f   : > { %v521_v30 = vsel %vm12491_vm3, %v516_v8, %v520_v47  ;;  %v558_v40 = vrot.slane %v556_v28, 5  ;;  %v566_v41 = vshll.u32 %v297_v58, 16  ;;  %v571_v47 = vshrl.u32 %v12659_v5, 16  ;;  %v299_v28 = vld [vmem:[%s12459_s30 + $0x98] sm:$0x1] }
  0x40   : > { %v12674_v36 = vcombine.low %v511_v6, %v521_v30  ;;  %v540_v39 = vrot.slane %v539_v21, 4  ;;  %v535_v48 = vsel %vm12491_vm3, %v530_v33, %v534_v61  ;;  %v553_v49 = vor.u32 %v552_v34, %v549_v25  ;;  %v12696_v30 = vld [vmem:[%s12459_s30 + $0x9c] sm:$0xf] }
  0x41   : > { %v562_v55 = vrot.slane %v560_v24, 4  ;;  %v568_v58 = vrot.slane %v566_v41, 5  ;;  %v574_v62 = vshll.u32 %v12659_v5, 16  ;;  %v580_v63 = vshll.u32 %v12667_v17, 16 }
  0x42   : > { %15338 = vst [vmem:[#allocation8_spill] sm:$0xff] %v12674_v36  ;;  %10676 = vmatprep.mubr.msk.bf16.mxu0 %vm740_vm4, %v12674_v36  ;;  %v545_v57 = vsel %vm12491_vm3, %v540_v39, %v544_v22  ;;  %v554_v2 = vrot.slane %v553_v49, 4  ;;  %v573_v8 = vrot.slane %v571_v47, 4  ;;  %v584_v21 = vshrl.u32 %v12667_v17, 16  ;;  %v12705_v39 = vld [vmem:[%s12459_s30 + $0xa0] sm:$0xf] }
  0x43   : > { %v12691_v61 = vcombine.low %v535_v48, %v545_v57  ;;  %v563_v6 = vor.u32 %v562_v55, %v558_v40  ;;  %v576_v14 = vrot.slane %v574_v62, 5  ;;  %v582_v16 = vrot.slane %v580_v63, 5  ;;  %v12716_v36 = vld [vmem:[%s12459_s30 + $0xa8] sm:$0xf] }
  0x44   : > { %v590_v25 = vshll.u32 %v298_v35, 16  ;;  %v559_v22 = vsel %vm12491_vm3, %v554_v2, %v558_v40  ;;  %v595_v34 = vshrl.u32 %v12677_v44, 16  ;;  %v598_v24 = vshll.u32 %v12677_v44, 16 }
  0x45   : > { %15339 = vst [vmem:[#allocation9_spill] sm:$0xff] %v12691_v61  ;;  %10677 = vmatmul.mubr.msk.bf16.gmra.mrb[16].mxu0 %vm740_vm4, %v12691_v61  ;;  %v564_v33 = vrot.slane %v563_v6, 4  ;;  %v577_v41 = vor.u32 %v576_v14, %v573_v8  ;;  %v586_v48 = vrot.slane %v584_v21, 4  ;;  %v604_v49 = vshll.u32 %v12683_v56, 16  ;;  %v300_v61 = vld [vmem:[%s12459_s30 + $0xa4] sm:$0x1] }
  0x46   : > { %v592_v35 = vrot.slane %v590_v25, 5  ;;  %v597_v47 = vrot.slane %v595_v34, 4  ;;  %v600_v57 = vrot.slane %v598_v24, 5  ;;  %v608_v40 = vshrl.u32 %v12683_v56, 16  ;;  %v12725_v24 = vld [vmem:[%s12459_s30 + $0xac] sm:$0xf] }
  0x47   : > { %v569_v55 = vsel %vm12491_vm3, %v564_v33, %v568_v58  ;;  %v578_v63 = vrot.slane %v577_v41, 4  ;;  %v587_v2 = vor.u32 %v586_v48, %v582_v16  ;;  %v606_v6 = vrot.slane %v604_v49, 5 }
  0x48   : > { %v12711_v62 = vcombine.low %v559_v22, %v569_v55  ;;  %v601_v8 = vor.u32 %v600_v57, %v597_v47  ;;  %v610_v14 = vrot.slane %v608_v40, 4  ;;  %v614_v21 = vshll.u32 %v299_v28, 16  ;;  %v301_v40 = vld [vmem:[%s12459_s30 + $0xb0] sm:$0x1] }
  0x49   : > { %v619_v25 = vshrl.u32 %v12696_v30, 16  ;;  %v583_v58 = vsel %vm12491_vm3, %v578_v63, %v582_v16  ;;  %v588_v22 = vrot.slane %v587_v2, 4  ;;  %v622_v33 = vshll.u32 %v12696_v30, 16 }
  0x4a   : > { %15340 = vst [vmem:[#allocation10_spill] sm:$0xff] %v12711_v62  ;;  %10680 = vmatprep.mubr.msk.bf16.mxu0 %vm740_vm4, %v12711_v62  ;;  %v628_v34 = vshll.u32 %v12705_v39, 16  ;;  %v602_v28 = vrot.slane %v601_v8, 4  ;;  %v611_v41 = vor.u32 %v610_v14, %v606_v6  ;;  %v616_v48 = vrot.slane %v614_v21, 5  ;;  %v12736_v8 = vld [vmem:[%s12459_s30 + $0xb4] sm:$0xf] }
  0x4b   : > { %v621_v49 = vrot.slane %v619_v25, 4  ;;  %v593_v55 = vsel %vm12491_vm3, %v588_v22, %v592_v35  ;;  %v624_v47 = vrot.slane %v622_v33, 5  ;;  %v632_v16 = vshrl.u32 %v12705_v39, 16  ;;  %v12741_v22 = vld [vmem:[%s12459_s30 + $0xb8] sm:$0xf] }
  0x4c   : > { %v630_v57 = vrot.slane %v628_v34, 5  ;;  %v12731_v63 = vcombine.low %v583_v58, %v593_v55  ;;  %v607_v2 = vsel %vm12491_vm3, %v602_v28, %v606_v6  ;;  %v612_v62 = vrot.slane %v611_v41, 4 }
  0x4d   : > { %v638_v53 = vshll.u32 %v300_v61, 16  ;;  %v625_v14 = vor.u32 %v624_v47, %v621_v49  ;;  %v634_v21 = vrot.slane %v632_v16, 4  ;;  %v643_v25 = vshrl.u32 %v12716_v36, 16 }
  0x4e   : > { %15341 = vst [vmem:[#allocation11_spill] sm:$0xff] %v12731_v63  ;;  %v646_v35 = vshll.u32 %v12716_v36, 16  ;;  %10681 = vmatmul.mubr.msk.bf16.gmra.mrb[20].mxu0 %vm740_vm4, %v12731_v63  ;;  %v617_v58 = vsel %vm12491_vm3, %v612_v62, %v616_v48  ;;  %v652_v61 = vshll.u32 %v12725_v24, 16  ;;  %v656_v33 = vshrl.u32 %v12725_v24, 16 }
  0x4f   : > { %v640_v6 = vrot.slane %v638_v53, 5  ;;  %v12749_v34 = vcombine.low %v607_v2, %v617_v58  ;;  %v626_v28 = vrot.slane %v625_v14, 4  ;;  %v635_v41 = vor.u32 %v634_v21, %v630_v57 }
  0x50   : > { %v645_v49 = vrot.slane %v643_v25, 4  ;;  %v648_v55 = vrot.slane %v646_v35, 5  ;;  %v654_v47 = vrot.slane %v652_v61, 5  ;;  %v658_v16 = vrot.slane %v656_v33, 4 }
  0x51   : > { %15342 = vst [vmem:[#allocation12_spill] sm:$0xff] %v12749_v34  ;;  %v662_v11 = vshll.u32 %v301_v40, 16  ;;  %10684 = vmatprep.mubr.msk.bf16.mxu0 %vm740_vm4, %v12749_v34  ;;  %v631_v53 = vsel %vm12491_vm3, %v626_v28, %v630_v57  ;;  %v636_v62 = vrot.slane %v635_v41, 4  ;;  %v667_v48 = vshrl.u32 %v12736_v8, 16 }
  0x52   : > { %v670_v2 = vshll.u32 %v12736_v8, 16  ;;  %v649_v58 = vor.u32 %v648_v55, %v645_v49  ;;  %v659_v14 = vor.u32 %v658_v16, %v654_v47  ;;  %v676_v25 = vshll.u32 %v12741_v22, 16 }
  0x53   : > { %v664_v21 = vrot.slane %v662_v11, 5  ;;  %v641_v40 = vsel %vm12491_vm3, %v636_v62, %v640_v6  ;;  %v669_v35 = vrot.slane %v667_v48, 4  ;;  %v680_v33 = vshrl.u32 %v12741_v22, 16 }
  0x54   : > { %v672_v61 = vrot.slane %v670_v2, 5  ;;  %v12762_v34 = vcombine.low %v631_v53, %v641_v40  ;;  %v650_v57 = vrot.slane %v649_v58, 4  ;;  %v660_v28 = vrot.slane %v659_v14, 4 }
  0x55   : > { %v678_v41 = vrot.slane %v676_v25, 5  ;;  %v682_v19 = vrot.slane %v680_v33, 4  ;;  %v686_v60 = vshll.u32 %v302_v52, 16  ;;  %v12766_v11 = vcombine.low %v12473_v10, %v12476_v12 }
  0x56   : > { %v673_v63 = vor.u32 %v672_v61, %v669_v35  ;;  %10685 = vmatmul.mubr.msk.bf16.gmra.mrb[24].mxu0 %vm740_vm4, %v12762_v34  ;;  %v655_v6 = vsel %vm12491_vm3, %v650_v57, %v654_v47  ;;  %v665_v49 = vsel %vm12491_vm3, %v660_v28, %v664_v21  ;;  %v12784_v47 = vcombine.low %v12462_v3, %v12465_v4  ;;  %v12801_v3 = vld [vmem:[%s15274_s4] sm:$0x3]  ;;  %v12877_v35 = vld [vmem:[%s12459_s30 + $0x74] sm:$0x1] }
  0x57   : > { %v12774_v55 = vcombine.low %v655_v6, %v665_v49  ;;  %v683_v53 = vor.u32 %v682_v19, %v678_v41  ;;  %v688_v62 = vrot.slane %v686_v60, 5  ;;  %v12794_v60 = vcombine.low %v12487_v26, %v12496_v31  ;;  %v12883_v49 = vld [vmem:[%s12459_s30 + $0x80] sm:$0x1] }
  0x58   : > { %v674_v16 = vrot.slane %v673_v63, 4  ;;  %v1249_v19 = vsel %vm789_vm0, %v12538_v15, 0  ;;  %v12811_v4 = vcombine.low %v12508_v45, %v12513_v50  ;;  %v12815_v26 = vcombine.low %v12527_v0, %v12532_v7 }
  0x59   : > { %10688 = vmatprep.mubr.msk.bf16.mxu0 %vm740_vm4, %v12774_v55  ;;  %v684_v52 = vrot.slane %v683_v53, 4  ;;  %v12823_v31 = vcombine.low %v12550_v32, %v12557_v37  ;;  %v12827_v15 = vcombine.low %v12571_v54, %v12576_v59  ;;  %v12835_v45 = vcombine.low %v12592_v18, %v12597_v23  ;;  %v9625_v32 = vld [vmem:[%s12459_s30 + $0x6c] sm:$0xf]  ;;  %v12855_v37 = vld [vmem:[%s12459_s30 + $0x70] sm:$0xf] }
  0x5a   : > { %v679_v10 = vsel %vm12491_vm3, %v674_v16, %v678_v41  ;;  %v12839_v50 = vcombine.low %v12608_v43, %v12614_v51  ;;  %v12847_v0 = vcombine.low %v12629_v9, %v12634_v20  ;;  %v12851_v7 = vcombine.low %v12639_v29, %v12649_v42  ;;  %v9628_v43 = vld [vmem:[%s12459_s30 + $0x78] sm:$0xf]  ;;  %v12863_v20 = vld [vmem:[%s12459_s30 + $0x7c] sm:$0xf]  ;;  %v9682_v42 = vld [vmem:[%s15274_s4 + $0x8] sm:$0x3] }
  0x5b   : > { %v689_v48 = vsel %vm12491_vm3, %v684_v52, %v688_v62  ;;  %v3005_v54 = vshrl.u32 %v9625_v32, 16  ;;  %v3008_v59 = vshll.u32 %v9625_v32, 16  ;;  %v3014_v18 = vshll.u32 %v12855_v37, 16  ;;  %12252 = vmatprep.subr.msk.bf16.mxu1 %vm789_vm0, %v9682_v42 }
  0x5c   : > { %v12786_v2 = vcombine.low %v679_v10, %v689_v48  ;;  %v3018_v23 = vshrl.u32 %v12855_v37, 16  ;;  %v3029_v63 = vshrl.u32 %v9628_v43, 16  ;;  %v3032_v29 = vshll.u32 %v9628_v43, 16  ;;  %v9631_v43 = vld [vmem:[%s12459_s30 + $0x84] sm:$0xf] }
  0x5d   : > { %v3007_v58 = vrot.slane %v3005_v54, 4  ;;  %v3010_v14 = vrot.slane %v3008_v59, 5  ;;  %v3016_v21 = vrot.slane %v3014_v18, 5  ;;  %v12874_v40 = vsel %vm789_vm0, %v9682_v42, 0 }
  0x5e   : > { %10689 = vmatmul.mubr.msk.bf16.gmra.mrb[28].mxu0 %vm740_vm4, %v12786_v2  ;;  %v3020_v25 = vrot.slane %v3018_v23, 4  ;;  %15343 = vst [vmem:[#allocation13_spill] sm:$0xff] %v12874_v40  ;;  %v3031_v61 = vrot.slane %v3029_v63, 4  ;;  %v3034_v33 = vrot.slane %v3032_v29, 5  ;;  %v3038_v57 = vshll.u32 %v12863_v20, 16  ;;  %11577 = vmatpush3.bf16.msra.mxu1 %v12874_v40 }
  0x5f   : > { %10694 = vmatprep.mubr.msk.bf16.mxu0 %vm740_vm4, %v12784_v47  ;;  %v3011_v28 = vor.u32 %v3010_v14, %v3007_v58  ;;  %v3024_v6 = vshll.u32 %v12877_v35, 16  ;;  %v3042_v16 = vshrl.u32 %v12863_v20, 16  ;;  %v12888_v53 = vcombine.low %v12659_v5, %v12667_v17  ;;  %v12897_v63 = vld [vmem:[%s12459_s30 + $0x88] sm:$0xf]  ;;  %v9634_v58 = vld [vmem:[%s12459_s30 + $0x90] sm:$0xf] }
  0x60   : > { %v3021_v41 = vor.u32 %v3020_v25, %v3016_v21  ;;  %v3035_v62 = vor.u32 %v3034_v33, %v3031_v61  ;;  %v3040_v10 = vrot.slane %v3038_v57, 5  ;;  %v3048_v52 = vshll.u32 %v12883_v49, 16  ;;  %v12912_v61 = vld [vmem:[%s12459_s30 + $0x94] sm:$0xf]  ;;  %v12927_v57 = vld [vmem:[%s12459_s30 + $0x8c] sm:$0x1] }
  0x61   : > { %v3012_v48 = vrot.slane %v3011_v28, 4  ;;  %v3026_v32 = vrot.slane %v3024_v6, 5  ;;  %v3044_v54 = vrot.slane %v3042_v16, 4  ;;  %v12893_v59 = vcombine.low %v12677_v44, %v12683_v56 }
  0x62   : > { %v3036_v18 = vrot.slane %v3035_v62, 4  ;;  %v3050_v23 = vrot.slane %v3048_v52, 5  ;;  %v3053_v42 = vshrl.u32 %v9631_v43, 16  ;;  %v12906_v14 = vcombine.low %v12696_v30, %v12705_v39  ;;  %v12934_v62 = vld [vmem:[%s12459_s30 + $0x98] sm:$0x1] }
  0x63   : > { %v3017_v5 = vsel %vm12491_vm3, %v3012_v48, %v3016_v21  ;;  %v3045_v29 = vor.u32 %v3044_v54, %v3040_v10  ;;  %v3056_v56 = vshll.u32 %v9631_v43, 16  ;;  %v3062_v25 = vshll.u32 %v12897_v63, 16 }
  0x64   : > { %v12918_v21 = vcombine.low %v12716_v36, %v12725_v24  ;;  %v3041_v33 = vsel %vm12491_vm3, %v3036_v18, %v3040_v10  ;;  %v3055_v39 = vrot.slane %v3053_v42, 4  ;;  %v3066_v6 = vshrl.u32 %v12897_v63, 16 }
  0x65   : > { %v3046_v30 = vrot.slane %v3045_v29, 4  ;;  %v3058_v28 = vrot.slane %v3056_v56, 5  ;;  %v3077_v16 = vshrl.u32 %v9634_v58, 16  ;;  %v3072_v24 = vshll.u32 %v12927_v57, 16  ;;  %v9637_v56 = vld [vmem:[%s12459_s30 + $0x9c] sm:$0xf] }
  0x66   : > { %10695 = vmatmul.mubr.msk.bf16.vlgmr.msra.gmra.mrb[0].mxu0 %vm740_vm4, %v12766_v11  ;;  %v3080_v10 = vshll.u32 %v9634_v58, 16  ;;  %v3086_v52 = vshll.u32 %v12912_v61, 16  ;;  %v3096_v58 = vshll.u32 %v12934_v62, 16 }
  0x67   : > { %10727 = vmatpush3.bf16.msra.mxu0 %v1249_v19  ;;  %10698 = vmatprep.mubr.msk.bf16.mxu0 %vm740_vm4, %v12794_v60  ;;  %v3022_v19 = vrot.slane %v3021_v41, 4  ;;  %v3064_v41 = vrot.slane %v3062_v25, 5  ;;  %v3051_v36 = vsel %vm12491_vm3, %v3046_v30, %v3050_v23  ;;  %v3079_v54 = vrot.slane %v3077_v16, 4  ;;  %v12949_v25 = vld [vmem:[%s12459_s30 + $0xa0] sm:$0xf] }
  0x68   : > { %12245 = vmatprep.subr.msk.bf16.mxu0 %vm789_vm0, %v12801_v3  ;;  %v12937_v48 = vcombine.low %v3041_v33, %v3051_v36  ;;  %v3074_v18 = vrot.slane %v3072_v24, 5  ;;  %v3082_v43 = vrot.slane %v3080_v10, 5  ;;  %v3090_v23 = vshrl.u32 %v12912_v61, 16 }
  0x69   : > { %v3027_v17 = vsel %vm12491_vm3, %v3022_v19, %v3026_v32  ;;  %v3059_v19 = vor.u32 %v3058_v28, %v3055_v39  ;;  %v3068_v32 = vrot.slane %v3066_v6, 4  ;;  %v3101_v39 = vshrl.u32 %v9637_v56, 16  ;;  %v9640_v6 = vld [vmem:[%s12459_s30 + $0xa8] sm:$0xf] }
  0x6a   : > { %v12908_v44 = vcombine.low %v3017_v5, %v3027_v17  ;;  %15345 = vst [vmem:[#allocation15_spill] sm:$0xff] %v12937_v48  ;;  %v3088_v5 = vrot.slane %v3086_v52, 5  ;;  %v12942_v17 = vcombine.low %v12736_v8, %v12741_v22  ;;  %v3083_v33 = vor.u32 %v3082_v43, %v3079_v54  ;;  %v12965_v54 = vld [vmem:[%s12459_s30 + $0xa4] sm:$0x1] }
  0x6b   : > { %v3060_v29 = vrot.slane %v3059_v19, 4  ;;  %v3069_v42 = vor.u32 %v3068_v32, %v3064_v41  ;;  %v3092_v30 = vrot.slane %v3090_v23, 4  ;;  %v3104_v28 = vshll.u32 %v9637_v56, 16  ;;  %v12958_v32 = vld [vmem:[%s12459_s30 + $0xac] sm:$0xf] }
  0x6c   : > { %15344 = vst [vmem:[#allocation14_spill] sm:$0xff] %v12908_v44  ;;  %10982 = vmatprep.mubr.msk.bf16.mxu1 %vm740_vm4, %v12908_v44  ;;  %v3098_v16 = vrot.slane %v3096_v58, 5  ;;  %v3110_v36 = vshll.u32 %v12949_v25, 16  ;;  %v3084_v24 = vrot.slane %v3083_v33, 4  ;;  %v3103_v52 = vrot.slane %v3101_v39, 4 }
  0x6d   : > { %10983 = vmatmul.mubr.msk.bf16.vlgmr.msra.gmra.mrb[0].mxu1 %vm740_vm4, %v12937_v48  ;;  %v3065_v8 = vsel %vm12491_vm3, %v3060_v29, %v3064_v41  ;;  %v3070_v22 = vrot.slane %v3069_v42, 4  ;;  %v3093_v10 = vor.u32 %v3092_v30, %v3088_v5  ;;  %v3106_v19 = vrot.slane %v3104_v28, 5  ;;  %v12974_v28 = vld [vmem:[%s12459_s30 + $0xb0] sm:$0x1] }
  0x6e   : > { %10699 = vmatmul.mubr.msk.bf16.gmra.mrb[4].mxu0 %vm740_vm4, %v12811_v4  ;;  %v3112_v43 = vrot.slane %v3110_v36, 5  ;;  %v3114_v23 = vshrl.u32 %v12949_v25, 16  ;;  %v3125_v29 = vshrl.u32 %v9640_v6, 16  ;;  %v3089_v58 = vsel %vm12491_vm3, %v3084_v24, %v3088_v5 }
  0x6f   : > { %10702 = vmatprep.mubr.msk.bf16.mxu0 %vm740_vm4, %v12815_v26  ;;  %v3075_v41 = vsel %vm12491_vm3, %v3070_v22, %v3074_v18  ;;  %v3094_v56 = vrot.slane %v3093_v10, 4  ;;  %v3107_v33 = vor.u32 %v3106_v19, %v3103_v52  ;;  %v3120_v39 = vshll.u32 %v12965_v54, 16 }
  0x70   : > { %v12968_v42 = vcombine.low %v3065_v8, %v3075_v41  ;;  %v3116_v30 = vrot.slane %v3114_v23, 4  ;;  %v3127_v18 = vrot.slane %v3125_v29, 4  ;;  %v3128_v22 = vshll.u32 %v9640_v6, 16  ;;  %v9643_v23 = vld [vmem:[%s12459_s30 + $0xb4] sm:$0xf] }
  0x71   : > { %v3099_v8 = vsel %vm12491_vm3, %v3094_v56, %v3098_v16  ;;  %v3108_v36 = vrot.slane %v3107_v33, 4  ;;  %v3134_v41 = vshll.u32 %v12958_v32, 16  ;;  %v3138_v5 = vshrl.u32 %v12958_v32, 16 }
  0x72   : > { %15346 = vst [vmem:[#allocation16_spill] sm:$0xff] %v12968_v42  ;;  %10986 = vmatprep.mubr.msk.bf16.mxu1 %vm740_vm4, %v12968_v42  ;;  %v12982_v24 = vcombine.low %v3089_v58, %v3099_v8  ;;  %v3117_v10 = vor.u32 %v3116_v30, %v3112_v43  ;;  %v3122_v52 = vrot.slane %v3120_v39, 5  ;;  %v3130_v19 = vrot.slane %v3128_v22, 5  ;;  %v9603_v42 = vld [vmem:[%s12459_s30 + $0x14] sm:$0x1] }
  0x73   : > { %v3113_v6 = vsel %vm12491_vm3, %v3108_v36, %v3112_v43  ;;  %v3136_v29 = vrot.slane %v3134_v41, 5  ;;  %v3140_v9 = vrot.slane %v3138_v5, 4  ;;  %v3144_v51 = vshll.u32 %v12974_v28, 16  ;;  %v13006_v5 = vld [vmem:[%s12459_s30 + $0xb8] sm:$0xf] }
  0x74   : > { %15347 = vst [vmem:[#allocation17_spill] sm:$0xff] %v12982_v24  ;;  %v3118_v16 = vrot.slane %v3117_v10, 4  ;;  %v3131_v56 = vor.u32 %v3130_v19, %v3127_v18  ;;  %v3149_v58 = vshrl.u32 %v9643_v23, 16  ;;  %v3152_v33 = vshll.u32 %v9643_v23, 16  ;;  %v12318_v18 = vld [vmem:[%s12459_s30 + $0x48] sm:$0xff]  }
  0x75   : > { %10987 = vmatmul.mubr.msk.bf16.gmra.mrb[4].mxu1 %vm740_vm4, %v12982_v24  ;;  %v3141_v30 = vor.u32 %v3140_v9, %v3136_v29  ;;  %v3146_v39 = vrot.slane %v3144_v51, 5  ;;  %v1569_v51 = vld [vmem:[%s12459_s30 + $0xc] sm:$0xe]  ;;  %v15351_v9 = vrot.slane %v12476_v12, 5  ;;  %v15352_v19 = vrot.slane %v12479_v13, 5 }
  0x76   : > { %10703 = vmatmul.mubr.msk.bf16.gmra.mrb[8].mxu0 %vm740_vm4, %v12823_v31  ;;  %v3123_v43 = vsel %vm12491_vm3, %v3118_v16, %v3122_v52  ;;  %v3132_v22 = vrot.slane %v3131_v56, 4  ;;  %v9454_v10 = vrot.slane %v1569_v51, 9  ;;  %v3151_v16 = vrot.slane %v3149_v58, 4  ;;  %v13037_v58 = vld [vmem:[%s15271_s1 + $0x4] sm:$0x3] }
  0x77   : > { %10706 = vmatprep.mubr.msk.bf16.mxu0 %vm740_vm4, %v12827_v15  ;;  %v13000_v8 = vcombine.low %v3113_v6, %v3123_v43  ;;  %v3142_v36 = vrot.slane %v3141_v30, 4  ;;  %v1630_v41 = vrot.slane %v15351_v9, 4  ;;  %v13019_v6 = vld [vmem:[%s12459_s30 + $0xbc] sm:$0x1]  ;;  %v3154_v56 = vrot.slane %v3152_v33, 5 }
  0x78   : > { %v9646_v30 = vld [vmem:[%s12459_s30 + $0xc0] sm:$0xf]  ;;  %v1409_v13 = vsel %vm789_vm0, %v12801_v3, 0  ;;  %v3162_v12 = vshrl.u32 %v13006_v5, 16  ;;  %v9602_v24 = vld [vmem:[%s12459_s30 + $0x10] sm:$0xf] }
  0x79   : > { %15350 = vst [vmem:[#allocation18_spill] sm:$0xff] %v13000_v8  ;;  %10990 = vmatprep.mubr.msk.bf16.mxu1 %vm740_vm4, %v13000_v8  ;;  %v3147_v52 = vsel %vm12491_vm3, %v3142_v36, %v3146_v39  ;;  %v1632_v23 = vsel %vm12996_vm7, %v1630_v41, %v15352_v19  ;;  %v3158_v39 = vshll.u32 %v13006_v5, 16  ;;  %v13030_v36 = vld [vmem:[%s12459_s30 + $0xc4] sm:$0xf]  ;;  %v3155_v51 = vor.u32 %v3154_v56, %v3151_v16  ;;  %v15412_v27 = vld [vmem:[#allocation16_spill] sm:$0xff] }
  0x7a   : > { %v3168_v41 = vshll.u32 %v13019_v6, 16  ;;  %v3176_v3 = vshll.u32 %v9646_v30, 16  ;;  %v3164_v19 = vrot.slane %v3162_v12, 4 }
  0x7c   : > { %v3178_v56 = vrot.slane %v3176_v3, 5 }
  0x7e   : > { %10707 = vmatmul.mubr.msk.bf16.gmra.mrb[12].mxu0 %vm740_vm4, %v12835_v45 }
  0x7f   : > { %10710 = vmatprep.mubr.msk.bf16.mxu0 %vm740_vm4, %v12839_v50 }
  0x86   : > { %10711 = vmatmul.mubr.msk.bf16.gmra.mrb[16].mxu0 %vm740_vm4, %v12847_v0 }
  0x87   : > { %10714 = vmatprep.mubr.msk.bf16.mxu0 %vm740_vm4, %v12851_v7 }
  0x8e   : > { %10715 = vmatmul.mubr.msk.bf16.gmra.mrb[20].mxu0 %vm740_vm4, %v12888_v53 }
  0x8f   : > { %10718 = vmatprep.mubr.msk.bf16.mxu0 %vm740_vm4, %v12893_v59 }
  0x96   : > { %10719 = vmatmul.mubr.msk.bf16.gmra.mrb[24].mxu0 %vm740_vm4, %v12906_v14 }
  0x97   : > { %10722 = vmatprep.mubr.msk.bf16.mxu0 %vm740_vm4, %v12918_v21 }
  0x9e   : > { %10723 = vmatmul.mubr.msk.bf16.gmra.mrb[28].mxu0 %vm740_vm4, %v12942_v17 }
  0x9f   : > { %10728 = vmatprep.mubr.msk.bf16.mxu0 %vm740_vm4, %v12510_v46  ;;  %v3137_v46 = vsel %vm12491_vm3, %v3132_v22, %v3136_v29  ;;  %v15354_v29 = vmov %v15351_v9  ;;  %v3160_v9 = vrot.slane %v3158_v39, 5 }
  0xa0   : > { %v13022_v43 = vcombine.low %v3137_v46, %v3147_v52  ;;  %v1629_v22 = vsel %vm12996_vm7, %v9454_v10, %v15354_v29  ;;  %v13046_v46 = vld [vmem:[%s12459_s30 + $0xc8] sm:$0x1]  ;;  %v3173_v10 = vshrl.u32 %v9646_v30, 16  ;;  %v3156_v52 = vrot.slane %v3155_v51, 4 }
  0xa1   : > { %v13039_v33 = vcombine.low %v1629_v22, %v1632_v23  ;;  %v3182_v23 = vshll.u32 %v13030_v36, 16  ;;  %v3186_v29 = vshrl.u32 %v13030_v36, 16  ;;  %v9764_v22 = vld [vmem:[%s15274_s4 + $0xa] sm:$0x3]  ;;  %v3170_v30 = vrot.slane %v3168_v41, 5 }
  0xa2   : > { %15353 = vst [vmem:[#allocation19_spill] sm:$0xff] %v13022_v43  ;;  %10991 = vmatmul.mubr.msk.bf16.gmra.mrb[8].mxu1 %vm740_vm4, %v13022_v43  ;;  %v3175_v16 = vrot.slane %v3173_v10, 4  ;;  %12254 = vmatprep.subr.msk.bf16.mxu1 %vm789_vm0, %v9764_v22  ;;  %v3161_v12 = vsel %vm12491_vm3, %v3156_v52, %v3160_v9  ;;  %v4153_v3 = vsel %vm789_vm0, %v9764_v22, 0  ;;  %v15356_v22 = vld [vmem:[#allocation3_spill] sm:$0xff] }
  0xa3   : > { %v3184_v39 = vrot.slane %v3182_v23, 5  ;;  %v3188_v51 = vrot.slane %v3186_v29, 4  ;;  %11033 = vmatpush3.bf16.msra.mxu1 %v4153_v3  ;;  %v9699_v23 = vld [vmem:[%s12459_s30 + $0xc] sm:$0xe]  ;;  %v9606_v29 = vld [vmem:[%s12459_s30 + $0x20] sm:$0x1] }
  0xa5   : > { %v3189_v43 = vor.u32 %v3188_v51, %v3184_v39 }
  0xa6   : > { %10729 = vmatmul.mubr.msk.bf16.vlgmr.msra.gmra.mrb[32].mxu0 %vm740_vm4, %v12529_v1  ;;  %v3165_v1 = vor.u32 %v3164_v19, %v3160_v9 }
  0xa7   : > { %10761 = vmatpush3.bf16.msra.mxu0 %v1409_v13  ;;  %10732 = vmatprep.mubr.msk.bf16.mxu0 %vm740_vm4, %v12559_v38  ;;  %v3192_v38 = vshll.u32 %v13046_v46, 16  ;;  %v3179_v13 = vor.u32 %v3178_v56, %v3175_v16  ;;  %v9605_v16 = vld [vmem:[%s12459_s30 + $0x1c] sm:$0xf]  ;;  %v3190_v52 = vrot.slane %v3189_v43, 4  ;;  %v3749_v43 = vrot.slane %v9603_v42, 5 }
  0xa8   : > { %12246 = vmatprep.subr.msk.bf16.mxu0 %vm789_vm0, %v13037_v58  ;;  %v3166_v10 = vrot.slane %v3165_v1, 4  ;;  %v9700_v1 = vld [vmem:[%s12459_s30 + $0x18] sm:$0xe] }
  0xa9   : > { %v3180_v19 = vrot.slane %v3179_v13, 4  ;;  %v3194_v41 = vrot.slane %v3192_v38, 5  ;;  %v9715_v38 = vrot.slane %v9699_v23, 9  ;;  %v15357_v13 = vld [vmem:[#allocation4_spill] sm:$0xff] }
  0xaa   : > { %v3171_v8 = vsel %vm12491_vm3, %v3166_v10, %v3170_v30  ;;  %v3746_v30 = vrot.slane %v9602_v24, 5  ;;  %v3756_v10 = vrot.slane %v9606_v29, 5  ;;  %v9611_v29 = vld [vmem:[%s12459_s30 + $0x34] sm:$0xf] }
  0xab   : > { %v13070_v56 = vcombine.low %v3161_v12, %v3171_v8  ;;  %v3185_v9 = vsel %vm12491_vm3, %v3180_v19, %v3184_v39  ;;  %v3195_v8 = vsel %vm12491_vm3, %v3190_v52, %v3194_v41  ;;  %v9716_v39 = vrot.slane %v9700_v1, 9  ;;  %v9608_v41 = vld [vmem:[%s12459_s30 + $0x28] sm:$0xf]  ;;  %v9612_v1 = vld [vmem:[%s12459_s30 + $0x38] sm:$0x1] }
  0xac   : > { %v13084_v51 = vcombine.low %v3185_v9, %v3195_v8  ;;  %v3753_v12 = vrot.slane %v9605_v16, 5  ;;  %v3747_v3 = vsel %vm12996_vm7, %v9715_v38, %v3746_v30  ;;  %v3748_v19 = vrot.slane %v3746_v30, 4  ;;  %v9609_v9 = vld [vmem:[%s12459_s30 + $0x2c] sm:$0x1]  ;;  %v9702_v38 = vld [vmem:[%s12459_s30 + $0x30] sm:$0xe] }
  0xad   : > { %15355 = vst [vmem:[#allocation20_spill] sm:$0xff] %v13070_v56  ;;  %10994 = vmatprep.mubr.msk.bf16.mxu1 %vm740_vm4, %v13070_v56  ;;  %v15360_v8 = vld [vmem:[#allocation5_spill] sm:$0xff] }
  0xae   : > { %10733 = vmatmul.mubr.msk.bf16.gmra.mrb[36].mxu0 %vm740_vm4, %v15356_v22  ;;  %15358 = vst [vmem:[#allocation3_spill] sm:$0xff] %v13084_v51  ;;  %10995 = vmatmul.mubr.msk.bf16.gmra.mrb[12].mxu1 %vm740_vm4, %v13084_v51  ;;  %v3755_v23 = vrot.slane %v3753_v12, 4  ;;  %v9701_v22 = vld [vmem:[%s12459_s30 + $0x24] sm:$0xe]  ;;  %v3750_v42 = vsel %vm12996_vm7, %v3748_v19, %v3749_v43  ;;  %v3754_v24 = vsel %vm12996_vm7, %v9716_v39, %v3753_v12  ;;  %v3760_v43 = vrot.slane %v9608_v41, 5  ;;  %v15362_v12 = vld [vmem:[#allocation6_spill] sm:$0xff] }
  0xaf   : > { %10736 = vmatprep.mubr.msk.bf16.mxu0 %vm740_vm4, %v15357_v13  ;;  %v13097_v52 = vcombine.low %v3747_v3, %v3750_v42  ;;  %v9717_v13 = vrot.slane %v9701_v22, 9  ;;  %v3763_v39 = vrot.slane %v9609_v9, 5  ;;  %v3767_v3 = vrot.slane %v9611_v29, 5  ;;  %v9614_v41 = vld [vmem:[%s12459_s30 + $0x40] sm:$0xf] }
  0xb0   : > { %v3757_v16 = vsel %vm12996_vm7, %v3755_v23, %v3756_v10  ;;  %v9718_v10 = vrot.slane %v9702_v38, 9  ;;  %v3770_v19 = vrot.slane %v9612_v1, 5  ;;  %v3762_v22 = vrot.slane %v3760_v43, 4  ;;  %v9615_v9 = vld [vmem:[%s12459_s30 + $0x44] sm:$0x1] }
  0xb1   : > { %15359 = vst [vmem:[#allocation4_spill] sm:$0xff] %v13097_v52  ;;  %11034 = vmatprep.mubr.msk.bf16.mxu1 %vm740_vm4, %v13097_v52  ;;  %v13108_v30 = vcombine.low %v3754_v24, %v3757_v16  ;;  %v3761_v23 = vsel %vm12996_vm7, %v9717_v13, %v3760_v43  ;;  %v3769_v42 = vrot.slane %v3767_v3, 4  ;;  %v9703_v16 = vld [vmem:[%s12459_s30 + $0x3c] sm:$0xe]  ;;  %v9617_v38 = vld [vmem:[%s12459_s30 + $0x4c] sm:$0xf] }
  0xb2   : > { %v3764_v24 = vsel %vm12996_vm7, %v3762_v22, %v3763_v39  ;;  %v3768_v29 = vsel %vm12996_vm7, %v9718_v10, %v3767_v3  ;;  %v9719_v13 = vrot.slane %v9703_v16, 9  ;;  %v9618_v43 = vld [vmem:[%s12459_s30 + $0x50] sm:$0x1]  ;;  %v3774_v39 = vrot.slane %v9614_v41, 5 }
  0xb3   : > { %15361 = vst [vmem:[#allocation5_spill] sm:$0xff] %v13108_v30  ;;  %v3771_v1 = vsel %vm12996_vm7, %v3769_v42, %v3770_v19  ;;  %v3777_v22 = vrot.slane %v9615_v9, 5  ;;  %v3781_v3 = vrot.slane %v9617_v38, 5  ;;  %v15366_v19 = vld [vmem:[#allocation8_spill] sm:$0xff]  ;;  %v9623_v38 = vld [vmem:[%s12459_s30 + $0x64] sm:$0xf] }
  0xb4   : > { %v13134_v10 = vcombine.low %v3768_v29, %v3771_v1  ;;  %v3775_v42 = vsel %vm12996_vm7, %v9719_v13, %v3774_v39  ;;  %v9705_v1 = vld [vmem:[%s12459_s30 + $0x54] sm:$0xe] }
  0xb5   : > { %v3783_v41 = vrot.slane %v3781_v3, 4 }
  0xb6   : > { %10737 = vmatmul.mubr.msk.bf16.gmra.mrb[40].mxu0 %vm740_vm4, %v15360_v8  ;;  %11035 = vmatmul.mubr.msk.bf16.vlgmr.msra.gmra.mrb[16].mxu1 %vm740_vm4, %v13108_v30  ;;  %v13121_v8 = vcombine.low %v3761_v23, %v3764_v24  ;;  %v15364_v23 = vld [vmem:[#allocation7_spill] sm:$0xff]  ;;  %v3776_v24 = vrot.slane %v3774_v39, 4  ;;  %v9620_v30 = vld [vmem:[%s12459_s30 + $0x58] sm:$0xf] }
  0xb7   : > { %10740 = vmatprep.mubr.msk.bf16.mxu0 %vm740_vm4, %v15362_v12  ;;  %v9704_v12 = vld [vmem:[%s12459_s30 + $0x48] sm:$0xe]  ;;  %15365 = vst [vmem:[#allocation7_spill] sm:$0xff] %v13134_v10  ;;  %v3788_v39 = vrot.slane %v9620_v30, 5  ;;  %v3802_v30 = vrot.slane %v12855_v37, 5 }
  0xb8   : > { %15363 = vst [vmem:[#allocation6_spill] sm:$0xff] %v13121_v8  ;;  %11038 = vmatprep.mubr.msk.bf16.mxu1 %vm740_vm4, %v13121_v8  ;;  %v9720_v16 = vrot.slane %v9704_v12, 9  ;;  %v3784_v8 = vrot.slane %v9618_v43, 5  ;;  %v3778_v9 = vsel %vm12996_vm7, %v3776_v24, %v3777_v22  ;;  %v9721_v12 = vrot.slane %v9705_v1, 9  ;;  %v9706_v24 = vld [vmem:[%s12459_s30 + $0x60] sm:$0xe] }
  0xb9   : > { %v13146_v29 = vcombine.low %v3775_v42, %v3778_v9  ;;  %v15368_v42 = vld [vmem:[#allocation9_spill] sm:$0xff] }
  0xba   : > { %v3782_v13 = vsel %vm12996_vm7, %v9720_v16, %v3781_v3  ;;  %v3785_v43 = vsel %vm12996_vm7, %v3783_v41, %v3784_v8  ;;  %v3789_v3 = vsel %vm12996_vm7, %v9721_v12, %v3788_v39  ;;  %v3790_v16 = vrot.slane %v3788_v39, 4  ;;  %v15370_v8 = vld [vmem:[#allocation10_spill] sm:$0xff] }
  0xbb   : > { %15367 = vst [vmem:[#allocation8_spill] sm:$0xff] %v13146_v29  ;;  %v13160_v9 = vcombine.low %v3782_v13, %v3785_v43  ;;  %v9722_v41 = vrot.slane %v9706_v24, 9  ;;  %v9707_v43 = vld [vmem:[%s12459_s30 + $0x6c] sm:$0xe] }
  0xbc   : > { %v9723_v39 = vrot.slane %v9707_v43, 9 }
  0xbd   : > { %15369 = vst [vmem:[#allocation9_spill] sm:$0xff] %v13160_v9 }
  0xbe   : > { %10741 = vmatmul.mubr.msk.bf16.gmra.mrb[44].mxu0 %vm740_vm4, %v15364_v23  ;;  %v9621_v23 = vld [vmem:[%s12459_s30 + $0x5c] sm:$0x1]  ;;  %11039 = vmatmul.mubr.msk.bf16.gmra.mrb[20].mxu1 %vm740_vm4, %v13134_v10  ;;  %v3795_v10 = vrot.slane %v9623_v38, 5  ;;  %v3803_v24 = vsel %vm12996_vm7, %v9723_v39, %v3802_v30 }
  0xbf   : > { %10744 = vmatprep.mubr.msk.bf16.mxu0 %vm740_vm4, %v15366_v19  ;;  %11042 = vmatprep.mubr.msk.bf16.mxu1 %vm740_vm4, %v13146_v29  ;;  %v3791_v22 = vrot.slane %v9621_v23, 5  ;;  %v9624_v19 = vld [vmem:[%s12459_s30 + $0x68] sm:$0x1] }
  0xc0   : > { %v3797_v23 = vrot.slane %v3795_v10, 4  ;;  %v3798_v1 = vrot.slane %v9624_v19, 5  ;;  %v3796_v37 = vsel %vm12996_vm7, %v9722_v41, %v3795_v10  ;;  %v9708_v19 = vld [vmem:[%s12459_s30 + $0x78] sm:$0xe] }
  0xc1   : > { %v3792_v38 = vsel %vm12996_vm7, %v3790_v16, %v3791_v22  ;;  %v3804_v22 = vrot.slane %v3802_v30, 4  ;;  %v15372_v16 = vld [vmem:[#allocation11_spill] sm:$0xff]  ;;  %v15375_v41 = vld [vmem:[#allocation12_spill] sm:$0xff]  ;;  %v3816_v30 = vrot.slane %v12897_v63, 5  ;;  %v3823_v63 = vrot.slane %v12912_v61, 5 }
  0xc2   : > { %v13170_v13 = vcombine.low %v3789_v3, %v3792_v38  ;;  %v3799_v12 = vsel %vm12996_vm7, %v3797_v23, %v3798_v1  ;;  %v9724_v23 = vrot.slane %v9708_v19, 9  ;;  %v9709_v38 = vld [vmem:[%s12459_s30 + $0x84] sm:$0xe] }
  0xc3   : > { %v3818_v43 = vrot.slane %v3816_v30, 4  ;;  %v3825_v61 = vrot.slane %v3823_v63, 4 }
  0xc4   : > { %15371 = vst [vmem:[#allocation10_spill] sm:$0xff] %v13170_v13 }
  0xc6   : > { %10745 = vmatmul.mubr.msk.bf16.gmra.mrb[48].mxu0 %vm740_vm4, %v15368_v42  ;;  %v3805_v42 = vrot.slane %v12877_v35, 5  ;;  %11043 = vmatmul.mubr.msk.bf16.gmra.mrb[24].mxu1 %vm740_vm4, %v13160_v9  ;;  %v3809_v35 = vrot.slane %v12863_v20, 5  ;;  %v3812_v20 = vrot.slane %v12883_v49, 5  ;;  %v3819_v49 = vrot.slane %v12927_v57, 5 }
  0xc7   : > { %10748 = vmatprep.mubr.msk.bf16.mxu0 %vm740_vm4, %v15370_v8  ;;  %11046 = vmatprep.mubr.msk.bf16.mxu1 %vm740_vm4, %v13170_v13  ;;  %v13189_v8 = vcombine.low %v3796_v37, %v3799_v12 }
  0xc8   : > { %v3806_v3 = vsel %vm12996_vm7, %v3804_v22, %v3805_v42  ;;  %v3811_v1 = vrot.slane %v3809_v35, 4  ;;  %v9725_v42 = vrot.slane %v9709_v38, 9  ;;  %v3810_v37 = vsel %vm12996_vm7, %v9724_v23, %v3809_v35  ;;  %v9710_v22 = vld [vmem:[%s12459_s30 + $0x90] sm:$0xe] }
  0xc9   : > { %15373 = vst [vmem:[#allocation11_spill] sm:$0xff] %v13189_v8  ;;  %v13191_v10 = vcombine.low %v3803_v24, %v3806_v3  ;;  %v3820_v19 = vsel %vm12996_vm7, %v3818_v43, %v3819_v49  ;;  %v9726_v57 = vrot.slane %v9710_v22, 9  ;;  %v3826_v3 = vrot.slane %v12934_v62, 5 }
  0xca   : > { %v3813_v12 = vsel %vm12996_vm7, %v3811_v1, %v3812_v20  ;;  %v3817_v39 = vsel %vm12996_vm7, %v9725_v42, %v3816_v30  ;;  %v3837_v23 = vrot.slane %v12958_v32, 5  ;;  %v9712_v20 = vld [vmem:[%s12459_s30 + $0xa8] sm:$0xe]  ;;  %v3840_v42 = vrot.slane %v12974_v28, 5 }
  0xcb   : > { %15374 = vst [vmem:[#allocation21_spill] sm:$0xff] %v13191_v10  ;;  %v13215_v24 = vcombine.low %v3810_v37, %v3813_v12  ;;  %v13219_v35 = vcombine.low %v3817_v39, %v3820_v19  ;;  %v3827_v62 = vsel %vm12996_vm7, %v3825_v61, %v3826_v3  ;;  %v9728_v30 = vrot.slane %v9712_v20, 9  ;;  %v9713_v39 = vld [vmem:[%s12459_s30 + $0xb4] sm:$0xe]  ;;  %v9714_v61 = vld [vmem:[%s12459_s30 + $0xc0] sm:$0xe] }
  0xcc   : > { %v3839_v38 = vrot.slane %v3837_v23, 4  ;;  %v3851_v22 = vrot.slane %v13030_v36, 5  ;;  %v12298_v20 = vld [vmem:[%s12459_s30 + $0x24] sm:$0xff]  }
  0xcd   : > { %15376 = vst [vmem:[#allocation12_spill] sm:$0xff] %v13215_v24  ;;  %15377 = vst [vmem:[#allocation22_spill] sm:$0xff] %v13219_v35  ;;  %v3838_v37 = vsel %vm12996_vm7, %v9728_v30, %v3837_v23  ;;  %v12330_v30 = vld [vmem:[%s12459_s30 + $0x1c] sm:$0xf] }
  0xce   : > { %10749 = vmatmul.mubr.msk.bf16.gmra.mrb[52].mxu0 %vm740_vm4, %v15372_v16  ;;  %11047 = vmatmul.mubr.msk.bf16.gmra.mrb[28].mxu1 %vm740_vm4, %v13189_v8  ;;  %v3830_v16 = vrot.slane %v12949_v25, 5  ;;  %v3833_v25 = vrot.slane %v12965_v54, 5  ;;  %v3841_v54 = vsel %vm12996_vm7, %v3839_v38, %v3840_v42  ;;  %v3853_v3 = vrot.slane %v3851_v22, 4  ;;  %v12331_v38 = vld [vmem:[%s12459_s30 + $0x28] sm:$0xf] }
  0xcf   : > { %10752 = vmatprep.mubr.msk.bf16.mxu0 %vm740_vm4, %v15375_v41  ;;  %11050 = vmatprep.mubr.msk.bf16.mxu1 %vm740_vm4, %v13191_v10  ;;  %v9711_v41 = vld [vmem:[%s12459_s30 + $0x9c] sm:$0xe]  ;;  %v13252_v28 = vcombine.low %v3838_v37, %v3841_v54  ;;  %v1642_v42 = vrot.slane %v12331_v38, 5  ;;  %v1571_v37 = vld [vmem:[%s12459_s30 + $0x24] sm:$0xe] }
  0xd0   : > { %v3832_v1 = vrot.slane %v3830_v16, 4  ;;  %v12338_v38 = vld [vmem:[%s12459_s30 + $0x44] sm:$0x1]  ;;  %v13646_v10 = vld [vmem:[%s12459_s30 + $0x70] sm:$0xf] }
  0xd1   : > { %15380 = vst [vmem:[#allocation25_spill] sm:$0xff] %v13252_v28 }
  0xd2   : > { %v3834_v43 = vsel %vm12996_vm7, %v3832_v1, %v3833_v25  ;;  %v9846_v1 = vld [vmem:[%s15274_s4 + $0xc] sm:$0x3]  ;;  %v1570_v25 = vld [vmem:[%s12459_s30 + $0x18] sm:$0xe] }
  0xd3   : > { %12256 = vmatprep.subr.msk.bf16.mxu1 %vm789_vm0, %v9846_v1 }
  0xd6   : > { %10753 = vmatmul.mubr.msk.bf16.gmra.mrb[56].mxu0 %vm740_vm4, %v12762_v34  ;;  %11051 = vmatmul.mubr.msk.bf16.gmra.mrb[0].mxu1 %vm740_vm4, %v13215_v24  ;;  %v9727_v34 = vrot.slane %v9711_v41, 9 }
  0xd7   : > { %10756 = vmatprep.mubr.msk.bf16.mxu0 %vm740_vm4, %v12774_v55  ;;  %11054 = vmatprep.mubr.msk.bf16.mxu1 %vm740_vm4, %v13219_v35  ;;  %v3824_v55 = vsel %vm12996_vm7, %v9726_v57, %v3823_v63  ;;  %v3844_v63 = vrot.slane %v13006_v5, 5  ;;  %v3847_v57 = vrot.slane %v13019_v6, 5  ;;  %v1830_v5 = vsel %vm789_vm0, %v13037_v58, 0  ;;  %v13273_v6 = vld [vmem:[%s15274_s4 + $0x4] sm:$0x3] }
  0xd8   : > { %v3831_v32 = vsel %vm12996_vm7, %v9727_v34, %v3830_v16  ;;  %v13244_v12 = vcombine.low %v3824_v55, %v3827_v62  ;;  %v3854_v16 = vrot.slane %v13046_v46, 5  ;;  %v12329_v55 = vld [vmem:[%s12459_s30 + $0x4] sm:$0xf] }
  0xd9   : > { %v13250_v49 = vcombine.low %v3831_v32, %v3834_v43  ;;  %v3846_v19 = vrot.slane %v3844_v63, 4  ;;  %v1621_v62 = vrot.slane %v12329_v55, 5  ;;  %v1635_v32 = vrot.slane %v12330_v30, 5 }
  0xda   : > { %15378 = vst [vmem:[#allocation23_spill] sm:$0xff] %v13244_v12  ;;  %v3855_v46 = vsel %vm12996_vm7, %v3853_v3, %v3854_v16  ;;  %v1644_v3 = vrot.slane %v1642_v42, 4  ;;  %v12335_v16 = vld [vmem:[%s12459_s30 + $0x2c] sm:$0x1] }
  0xdb   : > { %15379 = vst [vmem:[#allocation24_spill] sm:$0xff] %v13250_v49  ;;  %v3848_v41 = vsel %vm12996_vm7, %v3846_v19, %v3847_v57  ;;  %v12334_v19 = vld [vmem:[%s12459_s30 + $0x20] sm:$0x1] }
  0xdc   : > { %v1638_v57 = vrot.slane %v12334_v19, 5 }
  0xde   : > { %10757 = vmatmul.mubr.msk.bf16.gmra.mrb[60].mxu0 %vm740_vm4, %v12786_v2  ;;  %11055 = vmatmul.mubr.msk.bf16.gmra.mrb[4].mxu1 %vm740_vm4, %v13244_v12  ;;  %v9729_v2 = vrot.slane %v9713_v39, 9  ;;  %v12333_v39 = vld [vmem:[%s12459_s30 + $0x34] sm:$0xf] }
  0xdf   : > { %10762 = vmatprep.mubr.msk.bf16.mxu0 %vm740_vm4, %v12784_v47  ;;  %11058 = vmatprep.mubr.msk.bf16.mxu1 %vm740_vm4, %v13250_v49  ;;  %v9730_v47 = vrot.slane %v9714_v61, 9  ;;  %v1637_v61 = vrot.slane %v1635_v32, 4 }
  0xe0   : > { %v3845_v36 = vsel %vm12996_vm7, %v9729_v2, %v3844_v63  ;;  %v1572_v63 = vld [vmem:[%s12459_s30 + $0x30] sm:$0xe]  ;;  %v9455_v2 = vrot.slane %v1570_v25, 9 }
  0xe1   : > { %v3852_v23 = vsel %vm12996_vm7, %v9730_v47, %v3851_v22  ;;  %v13285_v34 = vcombine.low %v3845_v36, %v3848_v41  ;;  %v1649_v22 = vrot.slane %v12333_v39, 5  ;;  %v9456_v47 = vrot.slane %v1571_v37, 9 }
  0xe2   : > { %v13281_v58 = vcombine.low %v3852_v23, %v3855_v46  ;;  %v9457_v41 = vrot.slane %v1572_v63, 9  ;;  %v1573_v23 = vld [vmem:[%s12459_s30 + $0x3c] sm:$0xe]  ;;  %v12304_v46 = vld [vmem:[%s12459_s30 + $0x6c] sm:$0xff]   ;;  %v1639_v55 = vsel %vm12996_vm7, %v1637_v61, %v1638_v57  ;;  %v13376_v63 = vsel %vm789_vm0, %v13273_v6, 0 }
  0xe3   : > { %15382 = vst [vmem:[#allocation27_spill] sm:$0xff] %v13285_v34  ;;  %v12341_v61 = vld [vmem:[%s12459_s30 + $0x50] sm:$0x1] }
  0xe4   : > { %15381 = vst [vmem:[#allocation26_spill] sm:$0xff] %v13281_v58  ;;  %v1650_v30 = vsel %vm12996_vm7, %v9457_v41, %v1649_v22 }
  0xe6   : > { %10763 = vmatmul.mubr.msk.bf16.vlgmr.msra.gmra.mrb[64].mxu0 %vm740_vm4, %v12766_v11  ;;  %v4702_v11 = vsel %vm789_vm0, %v9846_v1, 0  ;;  %11059 = vmatmul.mubr.msk.bf16.gmra.mrb[8].mxu1 %vm740_vm4, %v13252_v28 }
  0xe7   : > { %10795 = vmatpush3.bf16.msra.mxu0 %v1830_v5  ;;  %10766 = vmatprep.mubr.msk.bf16.mxu0 %vm740_vm4, %v12794_v60  ;;  %v12297_v60 = vld [vmem:[%s12459_s30 + $0x18] sm:$0xff]   ;;  %v1645_v5 = vrot.slane %v12335_v16, 5  ;;  %v12342_v16 = vld [vmem:[%s12459_s30 + $0x64] sm:$0xf] }
  0xe8   : > { %12247 = vmatprep.subr.msk.bf16.mxu0 %vm789_vm0, %v13273_v6  ;;  %11101 = vmatpush3.bf16.msra.mxu1 %v4702_v11  ;;  %v1651_v11 = vrot.slane %v1649_v22, 4  ;;  %v1677_v6 = vrot.slane %v12342_v16, 5  ;;  %v12350_v16 = vld [vmem:[%s12459_s30 + $0x80] sm:$0x1] }
  0xe9   : > { %11062 = vmatprep.mubr.msk.bf16.mxu1 %vm740_vm4, %v13285_v34 }
  0xee   : > { %10767 = vmatmul.mubr.msk.bf16.gmra.mrb[36].mxu0 %vm740_vm4, %v12811_v4  ;;  %11063 = vmatmul.mubr.msk.bf16.gmra.mrb[32].mxu1 %vm740_vm4, %v13281_v58  ;;  %v12299_v4 = vld [vmem:[%s12459_s30 + $0x30] sm:$0xff]  }
  0xef   : > { %10770 = vmatprep.mubr.msk.bf16.mxu0 %vm740_vm4, %v12815_v26  ;;  %11102 = vmatprep.mubr.msk.bf16.mxu1 %vm740_vm4, %v12297_v60  ;;  %v12300_v26 = vld [vmem:[%s12459_s30 + $0x3c] sm:$0xff]   ;;  %v12336_v60 = vld [vmem:[%s12459_s30 + $0x38] sm:$0x1] }
  0xf6   : > { %10771 = vmatmul.mubr.msk.bf16.gmra.mrb[40].mxu0 %vm740_vm4, %v12823_v31  ;;  %11103 = vmatmul.mubr.msk.bf16.vlgmr.msra.gmra.mrb[36].mxu1 %vm740_vm4, %v12298_v20  ;;  %v12301_v31 = vld [vmem:[%s12459_s30 + $0x48] sm:$0xff]   ;;  %v1652_v20 = vrot.slane %v12336_v60, 5  ;;  %v12345_v60 = vld [vmem:[%s12459_s30 + $0x7c] sm:$0xf] }
  0xf7   : > { %10774 = vmatprep.mubr.msk.bf16.mxu0 %vm740_vm4, %v12827_v15  ;;  %11106 = vmatprep.mubr.msk.bf16.mxu1 %vm740_vm4, %v12299_v4  ;;  %v12302_v15 = vld [vmem:[%s12459_s30 + $0x54] sm:$0xff]   ;;  %v12337_v4 = vld [vmem:[%s12459_s30 + $0x40] sm:$0xf] }
  0xfe   : > { %10775 = vmatmul.mubr.msk.bf16.gmra.mrb[44].mxu0 %vm740_vm4, %v12835_v45  ;;  %11107 = vmatmul.mubr.msk.bf16.gmra.mrb[20].mxu1 %vm740_vm4, %v12300_v26  ;;  %v1568_v45 = vld [vmem:[%s12459_s30] sm:$0xe]  ;;  %v1656_v26 = vrot.slane %v12337_v4, 5  ;;  %v12306_v4 = vld [vmem:[%s12459_s30 + $0x84] sm:$0xff]  }
  0xff   : > { %10778 = vmatprep.mubr.msk.bf16.mxu0 %vm740_vm4, %v12839_v50  ;;  %11110 = vmatprep.mubr.msk.bf16.mxu1 %vm740_vm4, %v12301_v31  ;;  %v12303_v50 = vld [vmem:[%s12459_s30 + $0x60] sm:$0xff]   ;;  %v9453_v43 = vrot.slane %v1568_v45, 9  ;;  %v1636_v31 = vsel %vm12996_vm7, %v9455_v2, %v1635_v32  ;;  %v1575_v45 = vld [vmem:[%s12459_s30 + $0x54] sm:$0xe]  ;;  %v1659_v32 = vrot.slane %v12338_v38, 5 }
 0x100   : > { %v13378_v39 = vcombine.low %v1636_v31, %v1639_v55  ;;  %v12340_v2 = vld [vmem:[%s12459_s30 + $0x58] sm:$0xf]  ;;  %v12348_v38 = vld [vmem:[%s12459_s30 + $0x94] sm:$0xf] }
 0x101   : > { %v1622_v36 = vsel %vm12996_vm7, %v9453_v43, %v1621_v62  ;;  %v12339_v43 = vld [vmem:[%s12459_s30 + $0x4c] sm:$0xf]  ;;  %v1670_v19 = vrot.slane %v12340_v2, 5  ;;  %v1578_v31 = vld [vmem:[%s12459_s30 + $0x78] sm:$0xe] }
 0x102   : > { %v1663_v37 = vrot.slane %v12339_v43, 5  ;;  %v1679_v43 = vrot.slane %v1677_v6, 4  ;;  %v9463_v2 = vrot.slane %v1578_v31, 9 }
 0x106   : > { %10779 = vmatmul.mubr.msk.bf16.gmra.mrb[48].mxu0 %vm740_vm4, %v12847_v0  ;;  %11111 = vmatmul.mubr.msk.bf16.gmra.mrb[24].mxu1 %vm740_vm4, %v12302_v15  ;;  %v12332_v0 = vld [vmem:[%s12459_s30 + $0x8] sm:$0x1]  ;;  %v1574_v15 = vld [vmem:[%s12459_s30 + $0x48] sm:$0xe] }
 0x107   : > { %10782 = vmatprep.mubr.msk.bf16.mxu0 %vm740_vm4, %v12851_v7  ;;  %v1624_v54 = vrot.slane %v12332_v0, 5  ;;  %v1623_v7 = vrot.slane %v1621_v62, 4  ;;  %11114 = vmatprep.mubr.msk.bf16.mxu1 %vm740_vm4, %v12303_v50  ;;  %v1646_v62 = vsel %vm12996_vm7, %v1644_v3, %v1645_v5  ;;  %v9458_v50 = vrot.slane %v1573_v23, 9  ;;  %v1576_v3 = vld [vmem:[%s12459_s30 + $0x60] sm:$0xe] }
 0x108   : > { %v1658_v0 = vrot.slane %v1656_v26, 4  ;;  %v12343_v5 = vld [vmem:[%s12459_s30 + $0x70] sm:$0xf]  ;;  %v1665_v23 = vrot.slane %v1663_v37, 4 }
 0x109   : > { %v1625_v1 = vsel %vm12996_vm7, %v1623_v7, %v1624_v54  ;;  %v9459_v54 = vrot.slane %v1574_v15, 9  ;;  %v9460_v7 = vrot.slane %v1575_v45, 9  ;;  %v13385_v57 = vsel %vm12996_vm7, %v9458_v50, %v1656_v26  ;;  %v1579_v15 = vld [vmem:[%s12459_s30 + $0x84] sm:$0xe]  ;;  %v12346_v45 = vld [vmem:[%s12459_s30 + $0x88] sm:$0xf] }
 0x10a   : > { %v13364_v25 = vcombine.low %v1622_v36, %v1625_v1  ;;  %v1684_v36 = vrot.slane %v12343_v5, 5  ;;  %v1660_v26 = vsel %vm12996_vm7, %v1658_v0, %v1659_v32  ;;  %v1698_v55 = vrot.slane %v12346_v45, 5  ;;  %v12349_v0 = vld [vmem:[%s12459_s30 + $0x74] sm:$0x1] }
 0x10b   : > { %v9461_v50 = vrot.slane %v1576_v3, 9  ;;  %v1705_v32 = vrot.slane %v12348_v38, 5  ;;  %v1694_v5 = vrot.slane %v12350_v16, 5 }
 0x10d   : > { %v1707_v16 = vrot.slane %v1705_v32, 4 }
 0x10e   : > { %10783 = vmatmul.mubr.msk.bf16.gmra.mrb[52].mxu0 %vm740_vm4, %v12888_v53  ;;  %v12305_v53 = vld [vmem:[%s12459_s30 + $0x78] sm:$0xff]   ;;  %11115 = vmatmul.mubr.msk.bf16.gmra.mrb[28].mxu1 %vm740_vm4, %v12304_v46 }
 0x10f   : > { %10786 = vmatprep.mubr.msk.bf16.mxu0 %vm740_vm4, %v12893_v59  ;;  %v1643_v59 = vsel %vm12996_vm7, %v9456_v47, %v1642_v42  ;;  %v1653_v42 = vsel %vm12996_vm7, %v1651_v11, %v1652_v20  ;;  %11118 = vmatprep.mubr.msk.bf16.mxu1 %vm740_vm4, %v12305_v53  ;;  %v1666_v47 = vrot.slane %v12341_v61, 5  ;;  %v12344_v46 = vld [vmem:[%s12459_s30 + $0x5c] sm:$0x1]  ;;  %v1577_v11 = vld [vmem:[%s12459_s30 + $0x6c] sm:$0xe]  ;;  %v1691_v20 = vrot.slane %v12345_v60, 5 }
 0x110   : > { %v13380_v22 = vcombine.low %v1643_v59, %v1646_v62  ;;  %v13393_v41 = vcombine.low %v1650_v30, %v1653_v42  ;;  %v1673_v1 = vrot.slane %v12344_v46, 5  ;;  %v1671_v53 = vsel %vm12996_vm7, %v9460_v7, %v1670_v19  ;;  %v12307_v59 = vld [vmem:[%s12459_s30 + $0x90] sm:$0xff]   ;;  %v12351_v60 = vld [vmem:[%s12459_s30 + $0x8c] sm:$0x1] }
 0x111   : > { %v1672_v62 = vrot.slane %v1670_v19, 4  ;;  %v1686_v42 = vrot.slane %v1684_v36, 4  ;;  %v1580_v7 = vld [vmem:[%s12459_s30 + $0x90] sm:$0xe]  ;;  %v1693_v61 = vrot.slane %v1691_v20, 4  ;;  %v9464_v19 = vrot.slane %v1579_v15, 9 }
 0x112   : > { %v1667_v3 = vsel %vm12996_vm7, %v1665_v23, %v1666_v47  ;;  %v1700_v46 = vrot.slane %v1698_v55, 4  ;;  %v1701_v45 = vrot.slane %v12351_v60, 5  ;;  %v12353_v15 = vld [vmem:[%s12459_s30 + $0x98] sm:$0x1]  ;;  %v1678_v47 = vsel %vm12996_vm7, %v9461_v50, %v1677_v6 }
 0x113   : > { %v1674_v31 = vsel %vm12996_vm7, %v1672_v62, %v1673_v1  ;;  %v1695_v6 = vsel %vm12996_vm7, %v1693_v61, %v1694_v5  ;;  %v1699_v62 = vsel %vm12996_vm7, %v9464_v19, %v1698_v55 }
 0x114   : > { %v13460_v19 = vcombine.low %v1671_v53, %v1674_v31 }
 0x116   : > { %10787 = vmatmul.mubr.msk.bf16.gmra.mrb[56].mxu0 %vm740_vm4, %v12906_v14  ;;  %v1664_v14 = vsel %vm12996_vm7, %v9459_v54, %v1663_v37  ;;  %v9462_v37 = vrot.slane %v1577_v11, 9  ;;  %v1687_v54 = vrot.slane %v12349_v0, 5  ;;  %11119 = vmatmul.mubr.msk.bf16.gmra.mrb[0].mxu1 %vm740_vm4, %v12306_v4  ;;  %v1581_v11 = vld [vmem:[%s12459_s30 + $0x9c] sm:$0xe]  ;;  %v9465_v0 = vrot.slane %v1580_v7, 9  ;;  %v12309_v7 = vld [vmem:[%s12459_s30 + $0xa8] sm:$0xff]  }
 0x117   : > { %10790 = vmatprep.mubr.msk.bf16.mxu0 %vm740_vm4, %v12918_v21  ;;  %v12347_v21 = vld [vmem:[%s12459_s30 + $0x68] sm:$0x1]  ;;  %11122 = vmatprep.mubr.msk.bf16.mxu1 %vm740_vm4, %v12307_v59  ;;  %v1708_v4 = vrot.slane %v12353_v15, 5  ;;  %v1692_v59 = vsel %vm12996_vm7, %v9463_v2, %v1691_v20  ;;  %v9466_v50 = vrot.slane %v1581_v11, 9  ;;  %v12355_v20 = vld [vmem:[%s12459_s30 + $0xac] sm:$0xf]  ;;  %v13452_v2 = vcombine.low %v13385_v57, %v1660_v26 }
 0x118   : > { %v1680_v30 = vrot.slane %v12347_v21, 5  ;;  %v12352_v21 = vld [vmem:[%s12459_s30 + $0xa0] sm:$0xf]  ;;  %v1685_v60 = vsel %vm12996_vm7, %v9462_v37, %v1684_v36  ;;  %v1688_v1 = vsel %vm12996_vm7, %v1686_v42, %v1687_v54  ;;  %v1702_v36 = vsel %vm12996_vm7, %v1700_v46, %v1701_v45  ;;  %v12354_v37 = vld [vmem:[%s12459_s30 + $0xa4] sm:$0x1] }
 0x119   : > { %v1712_v38 = vrot.slane %v12352_v21, 5  ;;  %v1582_v42 = vld [vmem:[%s12459_s30 + $0xa8] sm:$0xe]  ;;  %v1719_v54 = vrot.slane %v12355_v20, 5  ;;  %v13454_v55 = vcombine.low %v1664_v14, %v1667_v3  ;;  %v1706_v61 = vsel %vm12996_vm7, %v9465_v0, %v1705_v32  ;;  %v12356_v32 = vld [vmem:[%s12459_s30 + $0xb0] sm:$0x1] }
 0x11a   : > { %v1681_v23 = vsel %vm12996_vm7, %v1679_v43, %v1680_v30  ;;  %v12308_v30 = vld [vmem:[%s12459_s30 + $0x9c] sm:$0xff]   ;;  %v1709_v5 = vsel %vm12996_vm7, %v1707_v16, %v1708_v4  ;;  %v13464_v45 = vcombine.low %v1685_v60, %v1688_v1  ;;  %v13466_v11 = vcombine.low %v1692_v59, %v1695_v6  ;;  %v1583_v21 = vld [vmem:[%s12459_s30 + $0xb4] sm:$0xe]  ;;  %v12357_v16 = vld [vmem:[%s12459_s30 + $0xb8] sm:$0xf] }
 0x11b   : > { %v1714_v43 = vrot.slane %v1712_v38, 4  ;;  %v13462_v46 = vcombine.low %v1678_v47, %v1681_v23  ;;  %v13468_v57 = vcombine.low %v1699_v62, %v1702_v36  ;;  %v1713_v26 = vsel %vm12996_vm7, %v9466_v50, %v1712_v38  ;;  %v9863_v38 = vld [vmem:[%s12459_s30 + $0x18] sm:$0xf]  ;;  %v13483_v4 = vld [vmem:[%s12459_s30 + $0x1c] sm:$0xf] }
 0x11c   : > { %v9467_v14 = vrot.slane %v1582_v42, 9  ;;  %v1722_v3 = vrot.slane %v12356_v32, 5  ;;  %v13475_v53 = vcombine.low %v1706_v61, %v1709_v5  ;;  %v1721_v0 = vrot.slane %v1719_v54, 4  ;;  %v9866_v59 = vld [vmem:[%s12459_s30 + $0x24] sm:$0xf] }
 0x11d   : > { %v1726_v15 = vrot.slane %v12357_v16, 5  ;;  %v4938_v47 = vshrl.u32 %v9863_v38, 16  ;;  %v4941_v23 = vshll.u32 %v9863_v38, 16  ;;  %v4947_v60 = vshll.u32 %v13483_v4, 16  ;;  %v13489_v62 = vld [vmem:[%s12459_s30 + $0xbc] sm:$0x1] }
 0x11e   : > { %10791 = vmatmul.mubr.msk.bf16.gmra.mrb[68].mxu0 %vm740_vm4, %v12942_v17  ;;  %v1715_v17 = vrot.slane %v12354_v37, 5  ;;  %11123 = vmatmul.mubr.msk.bf16.gmra.mrb[4].mxu1 %vm740_vm4, %v12308_v30  ;;  %v4951_v1 = vshrl.u32 %v13483_v4, 16  ;;  %v9468_v6 = vrot.slane %v1583_v21, 9  ;;  %v13495_v30 = vld [vmem:[%s15271_s1 + $0x6] sm:$0x3]  ;;  %v4962_v36 = vshrl.u32 %v9866_v59, 16 }
 0x11f   : > { %10796 = vmatprep.mubr.msk.bf16.mxu0 %vm740_vm4, %v13364_v25  ;;  %11126 = vmatprep.mubr.msk.bf16.mxu1 %vm740_vm4, %v12309_v7  ;;  %v4940_v42 = vrot.slane %v4938_v47, 4  ;;  %v4943_v20 = vrot.slane %v4941_v23, 5  ;;  %v4949_v7 = vrot.slane %v4947_v60, 5  ;;  %v13503_v61 = vld [vmem:[%s12459_s30 + $0x28] sm:$0xf]  ;;  %v1720_v5 = vsel %vm12996_vm7, %v9467_v14, %v1719_v54 }
 0x120   : > { %v1716_v31 = vsel %vm12996_vm7, %v1714_v43, %v1715_v17  ;;  %v4965_v43 = vshll.u32 %v9866_v59, 16  ;;  %v12310_v17 = vld [vmem:[%s12459_s30 + $0xb4] sm:$0xff]   ;;  %v13510_v32 = vrot.slane %v1726_v15, 4  ;;  %v9944_v21 = vld [vmem:[%s15274_s4 + $0xe] sm:$0x3]  ;;  %v4964_v16 = vrot.slane %v4962_v36, 4 }
 0x121   : > { %v13499_v37 = vcombine.low %v1713_v26, %v1716_v31  ;;  %v12313_v26 = vld [vmem:[%s12459_s30 + $0xc0] sm:$0xff]   ;;  %v4953_v31 = vrot.slane %v4951_v1, 4  ;;  %v1723_v38 = vsel %vm12996_vm7, %v1721_v0, %v1722_v3  ;;  %12258 = vmatprep.subr.msk.bf16.mxu1 %vm789_vm0, %v9944_v21  ;;  %v4944_v14 = vor.u32 %v4943_v20, %v4940_v42  ;;  %v13526_v47 = vld [vmem:[%s12459_s30 + $0x2c] sm:$0x1]  ;;  %v9869_v50 = vld [vmem:[%s12459_s30 + $0x30] sm:$0xf] }
 0x122   : > { %v13523_v54 = vld [vmem:[%s12459_s30 + $0x20] sm:$0x1]  ;;  %v4967_v23 = vrot.slane %v4965_v43, 5  ;;  %v4971_v3 = vshll.u32 %v13503_v61, 16  ;;  %v4975_v0 = vshrl.u32 %v13503_v61, 16  ;;  %v13533_v59 = vsel %vm12996_vm7, %v9468_v6, %v1726_v15 }
 0x123   : > { %15383 = vst [vmem:[#allocation28_spill] sm:$0xff] %v13499_v37  ;;  %v4954_v60 = vor.u32 %v4953_v31, %v4949_v7  ;;  %v4957_v1 = vshll.u32 %v13523_v54, 16  ;;  %v4945_v36 = vrot.slane %v4944_v14, 4  ;;  %v4981_v43 = vshll.u32 %v13526_v47, 16 }
 0x124   : > { %v4968_v42 = vor.u32 %v4967_v23, %v4964_v16  ;;  %v4973_v31 = vrot.slane %v4971_v3, 5  ;;  %v4986_v16 = vshrl.u32 %v9869_v50, 16  ;;  %v4989_v23 = vshll.u32 %v9869_v50, 16  ;;  %v13549_v3 = vld [vmem:[%s12459_s30 + $0x40] sm:$0xf] }
 0x125   : > { %v4955_v20 = vrot.slane %v4954_v60, 4  ;;  %v4950_v15 = vsel %vm12491_vm3, %v4945_v36, %v4949_v7  ;;  %v4983_v58 = vrot.slane %v4981_v43, 5  ;;  %v12314_v7 = vld [vmem:[%s12459_s30 + $0xcc] sm:$0xff]  }
 0x126   : > { %10797 = vmatmul.mubr.msk.bf16.vlgmr.msra.gmra.mrb[0].mxu0 %vm740_vm4, %v13039_v33  ;;  %11127 = vmatmul.mubr.msk.bf16.gmra.mrb[8].mxu1 %vm740_vm4, %v12310_v17  ;;  %v4969_v6 = vrot.slane %v4968_v42, 4  ;;  %v13542_v17 = vld [vmem:[%s12459_s30 + $0x34] sm:$0xf]  ;;  %v4988_v42 = vrot.slane %v4986_v16, 4 }
 0x127   : > { %10829 = vmatpush3.bf16.msra.mxu0 %v13376_v63  ;;  %10800 = vmatprep.mubr.msk.bf16.mxu0 %vm740_vm4, %v13378_v39  ;;  %v5618_v63 = vsel %vm789_vm0, %v9944_v21, 0  ;;  %v4959_v21 = vrot.slane %v4957_v1, 5  ;;  %v4995_v60 = vshll.u32 %v13542_v17, 16  ;;  %v9872_v1 = vld [vmem:[%s12459_s30 + $0x3c] sm:$0xf]  ;;  %v4999_v43 = vshrl.u32 %v13542_v17, 16 }
 0x128   : > { %12248 = vmatprep.subr.msk.bf16.mxu0 %vm789_vm0, %v13495_v30  ;;  %11169 = vmatpush3.bf16.msra.mxu1 %v5618_v63  ;;  %v4977_v63 = vrot.slane %v4975_v0, 4  ;;  %v4974_v36 = vsel %vm12491_vm3, %v4969_v6, %v4973_v31  ;;  %v5010_v34 = vshrl.u32 %v9872_v1, 16 }
 0x129   : > { %11130 = vmatprep.mubr.msk.bf16.mxu1 %vm740_vm4, %v12313_v26  ;;  %v4960_v14 = vsel %vm12491_vm3, %v4955_v20, %v4959_v21  ;;  %v13562_v20 = vld [vmem:[%s12459_s30 + $0x38] sm:$0x1]  ;;  %v4991_v21 = vrot.slane %v4989_v23, 5  ;;  %v5001_v28 = vrot.slane %v4999_v43, 4  ;;  %v13572_v23 = vcombine.low %v1720_v5, %v1723_v38 }
 0x12a   : > { %v4978_v26 = vor.u32 %v4977_v63, %v4973_v31  ;;  %v13554_v0 = vcombine.low %v4950_v15, %v4960_v14  ;;  %v4997_v63 = vrot.slane %v4995_v60, 5  ;;  %v5005_v49 = vshll.u32 %v13562_v20, 16  ;;  %v13566_v15 = vld [vmem:[%s12459_s30 + $0x44] sm:$0x1] }
 0x12b   : > { %v5013_v14 = vshll.u32 %v9872_v1, 16  ;;  %v5019_v31 = vshll.u32 %v13549_v3, 16  ;;  %v4992_v16 = vor.u32 %v4991_v21, %v4988_v42  ;;  %v5012_v12 = vrot.slane %v5010_v34, 4  ;;  %15385 = vst [vmem:[#allocation30_spill] sm:$0xff] %v13572_v23 }
 0x12c   : > { %15384 = vst [vmem:[#allocation29_spill] sm:$0xff] %v13554_v0  ;;  %v4979_v50 = vrot.slane %v4978_v26, 4  ;;  %v5023_v26 = vshrl.u32 %v13549_v3, 16  ;;  %v5002_v60 = vor.u32 %v5001_v28, %v4997_v63  ;;  %v5007_v43 = vrot.slane %v5005_v49, 5 }
 0x12d   : > { %v5015_v35 = vrot.slane %v5013_v14, 5  ;;  %v4993_v1 = vrot.slane %v4992_v16, 4  ;;  %v5021_v24 = vrot.slane %v5019_v31, 5  ;;  %v5029_v34 = vshll.u32 %v13566_v15, 16 }
 0x12e   : > { %10801 = vmatmul.mubr.msk.bf16.gmra.mrb[4].mxu0 %vm740_vm4, %v13380_v22  ;;  %v4984_v6 = vsel %vm12491_vm3, %v4979_v50, %v4983_v58  ;;  %11131 = vmatmul.mubr.msk.bf16.gmra.mrb[40].mxu1 %vm740_vm4, %v12314_v7  ;;  %v5025_v58 = vrot.slane %v5023_v26, 4  ;;  %v15386_v42 = vrot.slane %v13489_v62, 5  ;;  %v5003_v49 = vrot.slane %v5002_v60, 4  ;;  %v9875_v7 = vld [vmem:[%s12459_s30 + $0x48] sm:$0xf] }
 0x12f   : > { %10804 = vmatprep.mubr.msk.bf16.mxu0 %vm740_vm4, %v13393_v41  ;;  %11170 = vmatprep.mubr.msk.bf16.mxu1 %vm740_vm4, %v13554_v0  ;;  %v13583_v38 = vcombine.low %v4974_v36, %v4984_v6  ;;  %v5016_v28 = vor.u32 %v5015_v35, %v5012_v12  ;;  %v13587_v50 = vld [vmem:[%s12459_s30 + $0x4c] sm:$0xf]  ;;  %v4998_v21 = vsel %vm12491_vm3, %v4993_v1, %v4997_v63  ;;  %v5031_v31 = vrot.slane %v5029_v34, 5  ;;  %v9878_v62 = vld [vmem:[%s12459_s30 + $0x54] sm:$0xf] }
 0x130   : > { %v1730_v5 = vsel %vm12996_vm7, %v13510_v32, %v15386_v42  ;;  %v5026_v14 = vor.u32 %v5025_v58, %v5021_v24  ;;  %v5034_v16 = vshrl.u32 %v9875_v7, 16  ;;  %v5008_v32 = vsel %vm12491_vm3, %v5003_v49, %v5007_v43  ;;  %v13598_v6 = vld [vmem:[%s12459_s30 + $0x58] sm:$0xf]  ;;  %v13605_v60 = vld [vmem:[%s12459_s30 + $0x50] sm:$0x1] }
 0x131   : > { %15387 = vst [vmem:[#allocation31_spill] sm:$0xff] %v13583_v38  ;;  %v5017_v36 = vrot.slane %v5016_v28, 4  ;;  %v5037_v35 = vshll.u32 %v9875_v7, 16  ;;  %v5043_v12 = vshll.u32 %v13587_v50, 16  ;;  %v13602_v63 = vcombine.low %v4998_v21, %v5008_v32  ;;  %v13614_v21 = vld [vmem:[%s12459_s30 + $0x5c] sm:$0x1] }
 0x132   : > { %v5027_v26 = vrot.slane %v5026_v14, 4  ;;  %v5036_v1 = vrot.slane %v5034_v16, 4  ;;  %v5047_v58 = vshrl.u32 %v13587_v50, 16  ;;  %v5053_v49 = vshll.u32 %v13605_v60, 16 }
 0x133   : > { %15388 = vst [vmem:[#allocation32_spill] sm:$0xff] %v13602_v63  ;;  %v5022_v43 = vsel %vm12491_vm3, %v5017_v36, %v5021_v24  ;;  %v5039_v34 = vrot.slane %v5037_v35, 5  ;;  %v5045_v42 = vrot.slane %v5043_v12, 5  ;;  %v5058_v14 = vshrl.u32 %v9878_v62, 16 }
 0x134   : > { %v5032_v28 = vsel %vm12491_vm3, %v5027_v26, %v5031_v31  ;;  %v5049_v7 = vrot.slane %v5047_v58, 4  ;;  %v5061_v32 = vshll.u32 %v9878_v62, 16  ;;  %v13617_v16 = vcombine.low %v13533_v59, %v1730_v5  ;;  %v9881_v62 = vld [vmem:[%s12459_s30 + $0x60] sm:$0xf] }
 0x135   : > { %v5040_v24 = vor.u32 %v5039_v34, %v5036_v1  ;;  %v5055_v36 = vrot.slane %v5053_v49, 5  ;;  %v5067_v35 = vshll.u32 %v13598_v6, 16  ;;  %v5060_v12 = vrot.slane %v5058_v14, 4  ;;  %v13630_v1 = vld [vmem:[%s12459_s30 + $0x64] sm:$0xf] }
 0x136   : > { %10805 = vmatmul.mubr.msk.bf16.gmra.mrb[8].mxu0 %vm740_vm4, %v13452_v2  ;;  %11171 = vmatmul.mubr.msk.bf16.vlgmr.msra.gmra.mrb[44].mxu1 %vm740_vm4, %v13583_v38  ;;  %v5050_v31 = vor.u32 %v5049_v7, %v5045_v42  ;;  %v5063_v26 = vrot.slane %v5061_v32, 5  ;;  %v5071_v58 = vshrl.u32 %v13598_v6, 16  ;;  %v13626_v0 = vcombine.low %v5022_v43, %v5032_v28 }
 0x137   : > { %10808 = vmatprep.mubr.msk.bf16.mxu0 %vm740_vm4, %v13454_v55  ;;  %11174 = vmatprep.mubr.msk.bf16.mxu1 %vm740_vm4, %v13602_v63  ;;  %v5041_v59 = vrot.slane %v5040_v24, 4  ;;  %v5069_v5 = vrot.slane %v5067_v35, 5  ;;  %v5077_v38 = vshll.u32 %v13614_v21, 16  ;;  %v5082_v7 = vshrl.u32 %v9881_v62, 16  ;;  %v9884_v24 = vld [vmem:[%s12459_s30 + $0x6c] sm:$0xf] }
 0x138   : > { %15389 = vst [vmem:[#allocation33_spill] sm:$0xff] %v13626_v0  ;;  %v5051_v34 = vrot.slane %v5050_v31, 4  ;;  %v5064_v49 = vor.u32 %v5063_v26, %v5060_v12  ;;  %v5073_v63 = vrot.slane %v5071_v58, 4  ;;  %v5085_v28 = vshll.u32 %v9881_v62, 16  ;;  %v13643_v26 = vld [vmem:[%s12459_s30 + $0x68] sm:$0x1] }
 0x139   : > { %v5046_v14 = vsel %vm12491_vm3, %v5041_v59, %v5045_v42  ;;  %v5079_v43 = vrot.slane %v5077_v38, 5  ;;  %v5091_v32 = vshll.u32 %v13630_v1, 16  ;;  %v5084_v58 = vrot.slane %v5082_v7, 4  ;;  %v13657_v7 = vld [vmem:[%s12459_s30 + $0x74] sm:$0x1] }
 0x13a   : > { %v5056_v35 = vsel %vm12491_vm3, %v5051_v34, %v5055_v36  ;;  %v5065_v31 = vrot.slane %v5064_v49, 4  ;;  %v5074_v12 = vor.u32 %v5073_v63, %v5069_v5  ;;  %v5087_v38 = vrot.slane %v5085_v28, 5 }
 0x13b   : > { %v13648_v42 = vcombine.low %v5046_v14, %v5056_v35  ;;  %v5093_v62 = vrot.slane %v5091_v32, 5  ;;  %v5095_v59 = vshrl.u32 %v13630_v1, 16  ;;  %v5101_v36 = vshll.u32 %v13643_v26, 16 }
 0x13c   : > { %v5070_v8 = vsel %vm12491_vm3, %v5065_v31, %v5069_v5  ;;  %v5075_v13 = vrot.slane %v5074_v12, 4  ;;  %v5106_v34 = vshrl.u32 %v9884_v24, 16  ;;  %v5088_v63 = vor.u32 %v5087_v38, %v5084_v58  ;;  %v9887_v12 = vld [vmem:[%s12459_s30 + $0x78] sm:$0xf] }
 0x13d   : > { %15390 = vst [vmem:[#allocation34_spill] sm:$0xff] %v13648_v42  ;;  %v5097_v49 = vrot.slane %v5095_v59, 4  ;;  %v5109_v14 = vshll.u32 %v9884_v24, 16  ;;  %v5115_v28 = vshll.u32 %v13646_v10, 16  ;;  %v5103_v32 = vrot.slane %v5101_v36, 5 }
 0x13e   : > { %10809 = vmatmul.mubr.msk.bf16.gmra.mrb[12].mxu0 %vm740_vm4, %v13460_v19  ;;  %11175 = vmatmul.mubr.msk.bf16.gmra.mrb[20].mxu1 %vm740_vm4, %v13626_v0  ;;  %v5080_v5 = vsel %vm12491_vm3, %v5075_v13, %v5079_v43  ;;  %v5108_v35 = vrot.slane %v5106_v34, 4  ;;  %v5119_v31 = vshrl.u32 %v13646_v10, 16  ;;  %v5089_v58 = vrot.slane %v5088_v63, 4  ;;  %v13669_v59 = vld [vmem:[%s12459_s30 + $0x7c] sm:$0xf] }
 0x13f   : > { %10812 = vmatprep.mubr.msk.bf16.mxu0 %vm740_vm4, %v13462_v46  ;;  %11178 = vmatprep.mubr.msk.bf16.mxu1 %vm740_vm4, %v13648_v42  ;;  %v13666_v0 = vcombine.low %v5070_v8, %v5080_v5  ;;  %v5098_v38 = vor.u32 %v5097_v49, %v5093_v62  ;;  %v5111_v24 = vrot.slane %v5109_v14, 5  ;;  %v5117_v9 = vrot.slane %v5115_v28, 5  ;;  %v9890_v34 = vld [vmem:[%s12459_s30 + $0x84] sm:$0xf]  ;;  %v13680_v14 = vld [vmem:[%s12459_s30 + $0x80] sm:$0x1] }
 0x140   : > { %v5121_v29 = vrot.slane %v5119_v31, 4  ;;  %v5125_v42 = vshll.u32 %v13657_v7, 16  ;;  %v5130_v52 = vshrl.u32 %v9887_v12, 16  ;;  %v5094_v13 = vsel %vm12491_vm3, %v5089_v58, %v5093_v62 }
 0x141   : > { %15391 = vst [vmem:[#allocation35_spill] sm:$0xff] %v13666_v0  ;;  %v5099_v8 = vrot.slane %v5098_v38, 4  ;;  %v5112_v43 = vor.u32 %v5111_v24, %v5108_v35  ;;  %v5133_v36 = vshll.u32 %v9887_v12, 16  ;;  %v5139_v5 = vshll.u32 %v13669_v59, 16  ;;  %v13687_v12 = vld [vmem:[%s12459_s30 + $0x88] sm:$0xf] }
 0x142   : > { %v5122_v63 = vor.u32 %v5121_v29, %v5117_v9  ;;  %v5127_v49 = vrot.slane %v5125_v42, 5  ;;  %v5132_v28 = vrot.slane %v5130_v52, 4  ;;  %v5143_v35 = vshrl.u32 %v13669_v59, 16 }
 0x143   : > { %v5104_v31 = vsel %vm12491_vm3, %v5099_v8, %v5103_v32  ;;  %v5113_v51 = vrot.slane %v5112_v43, 4  ;;  %v5135_v62 = vrot.slane %v5133_v36, 5  ;;  %v5141_v42 = vrot.slane %v5139_v5, 5  ;;  %v13697_v8 = vld [vmem:[%s12459_s30 + $0x8c] sm:$0x1] }
 0x144   : > { %v13689_v58 = vcombine.low %v5094_v13, %v5104_v31  ;;  %v5123_v29 = vrot.slane %v5122_v63, 4  ;;  %v5149_v38 = vshll.u32 %v13680_v14, 16  ;;  %v5145_v24 = vrot.slane %v5143_v35, 4  ;;  %v9893_v31 = vld [vmem:[%s12459_s30 + $0x90] sm:$0xf] }
 0x145   : > { %v5118_v52 = vsel %vm12491_vm3, %v5113_v51, %v5117_v9  ;;  %v5136_v32 = vor.u32 %v5135_v62, %v5132_v28  ;;  %v5154_v43 = vshrl.u32 %v9890_v34, 16  ;;  %v5157_v63 = vshll.u32 %v9890_v34, 16  ;;  %v13708_v62 = vld [vmem:[%s12459_s30 + $0x94] sm:$0xf] }
 0x146   : > { %10813 = vmatmul.mubr.msk.bf16.gmra.mrb[16].mxu0 %vm740_vm4, %v13464_v45  ;;  %15392 = vst [vmem:[#allocation36_spill] sm:$0xff] %v13689_v58  ;;  %11179 = vmatmul.mubr.msk.bf16.gmra.mrb[24].mxu1 %vm740_vm4, %v13666_v0  ;;  %v5128_v13 = vsel %vm12491_vm3, %v5123_v29, %v5127_v49  ;;  %v5151_v36 = vrot.slane %v5149_v38, 5  ;;  %v5163_v5 = vshll.u32 %v13687_v12, 16  ;;  %v5146_v9 = vor.u32 %v5145_v24, %v5141_v42 }
 0x147   : > { %10816 = vmatprep.mubr.msk.bf16.mxu0 %vm740_vm4, %v13466_v11  ;;  %11182 = vmatprep.mubr.msk.bf16.mxu1 %vm740_vm4, %v13689_v58  ;;  %v13705_v0 = vcombine.low %v5118_v52, %v5128_v13  ;;  %v5137_v51 = vrot.slane %v5136_v32, 4  ;;  %v5156_v28 = vrot.slane %v5154_v43, 4  ;;  %15394 = vst [vmem:[#allocation38_spill] sm:$0xff] %v13708_v62  ;;  %v5159_v35 = vrot.slane %v5157_v63, 5  ;;  %v9896_v32 = vld [vmem:[%s12459_s30 + $0x9c] sm:$0xf] }
 0x148   : > { %v5165_v56 = vrot.slane %v5163_v5, 5  ;;  %v5167_v58 = vshrl.u32 %v13687_v12, 16  ;;  %v5173_v49 = vshll.u32 %v13697_v8, 16  ;;  %v5147_v29 = vrot.slane %v5146_v9, 4  ;;  %v13720_v63 = vld [vmem:[%s12459_s30 + $0x98] sm:$0x1] }
 0x149   : > { %15393 = vst [vmem:[#allocation37_spill] sm:$0xff] %v13705_v0  ;;  %v5142_v34 = vsel %vm12491_vm3, %v5137_v51, %v5141_v42  ;;  %v5178_v38 = vshrl.u32 %v9893_v31, 16  ;;  %v5181_v52 = vshll.u32 %v9893_v31, 16  ;;  %v5160_v24 = vor.u32 %v5159_v35, %v5156_v28  ;;  %15395 = vst [vmem:[#allocation39_spill] sm:$0xff] %v13720_v63  ;;  %v13727_v31 = vld [vmem:[%s12459_s30 + $0xa0] sm:$0xf] }
 0x14a   : > { %v5169_v43 = vrot.slane %v5167_v58, 4  ;;  %v5175_v13 = vrot.slane %v5173_v49, 5  ;;  %v5187_v5 = vshll.u32 %v13708_v62, 16  ;;  %v5152_v48 = vsel %vm12491_vm3, %v5147_v29, %v5151_v36 }
 0x14b   : > { %v5180_v44 = vrot.slane %v5178_v38, 4  ;;  %v5183_v42 = vrot.slane %v5181_v52, 5  ;;  %v5191_v51 = vshrl.u32 %v13708_v62, 16  ;;  %v13729_v9 = vcombine.low %v5142_v34, %v5152_v48  ;;  %v13739_v38 = vld [vmem:[%s12459_s30 + $0xa4] sm:$0x1] }
 0x14c   : > { %v5161_v40 = vrot.slane %v5160_v24, 4  ;;  %v5170_v28 = vor.u32 %v5169_v43, %v5165_v56  ;;  %v5189_v58 = vrot.slane %v5187_v5, 5  ;;  %v5197_v36 = vshll.u32 %v13720_v63, 16 }
 0x14d   : > { %15396 = vst [vmem:[#allocation40_spill] sm:$0xff] %v13729_v9  ;;  %v5184_v35 = vor.u32 %v5183_v42, %v5180_v44  ;;  %v5193_v49 = vrot.slane %v5191_v51, 4  ;;  %v5202_v29 = vshrl.u32 %v9896_v32, 16  ;;  %v5205_v52 = vshll.u32 %v9896_v32, 16  ;;  %v9899_v51 = vld [vmem:[%s12459_s30 + $0xa8] sm:$0xf] }
 0x14e   : > { %10817 = vmatmul.mubr.msk.bf16.gmra.mrb[20].mxu0 %vm740_vm4, %v13468_v57  ;;  %11183 = vmatmul.mubr.msk.bf16.gmra.mrb[28].mxu1 %vm740_vm4, %v13705_v0  ;;  %v5166_v48 = vsel %vm12491_vm3, %v5161_v40, %v5165_v56  ;;  %v5171_v34 = vrot.slane %v5170_v28, 4  ;;  %v5211_v24 = vshll.u32 %v13727_v31, 16  ;;  %v5199_v44 = vrot.slane %v5197_v36, 5  ;;  %v13747_v40 = vld [vmem:[%s12459_s30 + $0xac] sm:$0xf] }
 0x14f   : > { %10820 = vmatprep.mubr.msk.bf16.mxu0 %vm740_vm4, %v13475_v53  ;;  %11186 = vmatprep.mubr.msk.bf16.mxu1 %vm740_vm4, %v13729_v9  ;;  %v5185_v43 = vrot.slane %v5184_v35, 4  ;;  %v5194_v5 = vor.u32 %v5193_v49, %v5189_v58  ;;  %v5204_v42 = vrot.slane %v5202_v29, 4  ;;  %v5207_v63 = vrot.slane %v5205_v52, 5  ;;  %15397 = vst [vmem:[#allocation41_spill] sm:$0xff] %v13747_v40  ;;  %v13759_v36 = vld [vmem:[%s12459_s30 + $0xb0] sm:$0x1] }
 0x150   : > { %v5176_v0 = vsel %vm12491_vm3, %v5171_v34, %v5175_v13  ;;  %v5213_v9 = vrot.slane %v5211_v24, 5  ;;  %v5215_v62 = vshrl.u32 %v13727_v31, 16  ;;  %v5221_v35 = vshll.u32 %v13739_v38, 16  ;;  %v9902_v24 = vld [vmem:[%s12459_s30 + $0xb4] sm:$0xf] }
 0x151   : > { %v13751_v56 = vcombine.low %v5166_v48, %v5176_v0  ;;  %v5190_v32 = vsel %vm12491_vm3, %v5185_v43, %v5189_v58  ;;  %v5195_v28 = vrot.slane %v5194_v5, 4  ;;  %v5208_v13 = vor.u32 %v5207_v63, %v5204_v42 }
 0x152   : > { %v5217_v49 = vrot.slane %v5215_v62, 4  ;;  %v5226_v29 = vshrl.u32 %v9899_v51, 16  ;;  %v5229_v34 = vshll.u32 %v9899_v51, 16  ;;  %v5223_v48 = vrot.slane %v5221_v35, 5  ;;  %v13769_v62 = vld [vmem:[%s12459_s30 + $0xb8] sm:$0xf] }
 0x153   : > { %15398 = vst [vmem:[#allocation42_spill] sm:$0xff] %v13751_v56  ;;  %v5200_v0 = vsel %vm12491_vm3, %v5195_v28, %v5199_v44  ;;  %v5235_v52 = vshll.u32 %v13747_v40, 16  ;;  %v5239_v58 = vshrl.u32 %v13747_v40, 16  ;;  %v5209_v5 = vrot.slane %v5208_v13, 4 }
 0x154   : > { %v13766_v43 = vcombine.low %v5190_v32, %v5200_v0  ;;  %v5228_v63 = vrot.slane %v5226_v29, 4  ;;  %v5231_v42 = vrot.slane %v5229_v34, 5  ;;  %v5245_v28 = vshll.u32 %v13759_v36, 16 }
 0x155   : > { %v5237_v51 = vrot.slane %v5235_v52, 5  ;;  %v5241_v44 = vrot.slane %v5239_v58, 4  ;;  %v5214_v32 = vsel %vm12491_vm3, %v5209_v5, %v5213_v9  ;;  %v5250_v13 = vshrl.u32 %v9902_v24, 16 }
 0x156   : > { %10821 = vmatmul.mubr.msk.bf16.gmra.mrb[24].mxu0 %vm740_vm4, %v13499_v37  ;;  %15399 = vst [vmem:[#allocation43_spill] sm:$0xff] %v13766_v43  ;;  %v5218_v37 = vor.u32 %v5217_v49, %v5213_v9  ;;  %11187 = vmatmul.mubr.msk.bf16.gmra.mrb[0].mxu1 %vm740_vm4, %v13751_v56  ;;  %v5253_v49 = vshll.u32 %v9902_v24, 16  ;;  %v5232_v29 = vor.u32 %v5231_v42, %v5228_v63  ;;  %v5247_v40 = vrot.slane %v5245_v28, 5  ;;  %v9905_v9 = vld [vmem:[%s12459_s30 + $0xc0] sm:$0xf] }
 0x157   : > { %10824 = vmatprep.mubr.msk.bf16.mxu0 %vm740_vm4, %v13572_v23  ;;  %11190 = vmatprep.mubr.msk.bf16.mxu1 %vm740_vm4, %v13766_v43  ;;  %v5242_v0 = vor.u32 %v5241_v44, %v5237_v51  ;;  %v13779_v23 = vld [vmem:[%s12459_s30 + $0xbc] sm:$0x1]  ;;  %v5259_v34 = vshll.u32 %v13769_v62, 16  ;;  %v5252_v58 = vrot.slane %v5250_v13, 4  ;;  %v5263_v43 = vshrl.u32 %v13769_v62, 16 }
 0x158   : > { %v5219_v35 = vrot.slane %v5218_v37, 4  ;;  %v5255_v56 = vrot.slane %v5253_v49, 5  ;;  %v5233_v24 = vrot.slane %v5232_v29, 4  ;;  %v5269_v28 = vshll.u32 %v13779_v23, 16  ;;  %v13803_v49 = vld [vmem:[%s12459_s30 + $0xc8] sm:$0x1] }
 0x159   : > { %v5243_v5 = vrot.slane %v5242_v0, 4  ;;  %v5261_v63 = vrot.slane %v5259_v34, 5  ;;  %v5265_v44 = vrot.slane %v5263_v43, 4  ;;  %v5274_v29 = vshrl.u32 %v9905_v9, 16  ;;  %v9908_v0 = vld [vmem:[%s12459_s30 + $0xcc] sm:$0xf] }
 0x15a   : > { %v5224_v52 = vsel %vm12491_vm3, %v5219_v35, %v5223_v48  ;;  %v2379_v48 = vsel %vm789_vm0, %v13495_v30, 0  ;;  %v5256_v42 = vor.u32 %v5255_v56, %v5252_v58  ;;  %v13796_v35 = vld [vmem:[%s12459_s30 + $0xc4] sm:$0xf]  ;;  %v5271_v43 = vrot.slane %v5269_v28, 5 }
 0x15b   : > { %v13788_v37 = vcombine.low %v5214_v32, %v5224_v52  ;;  %15401 = vst [vmem:[#allocation45_spill] sm:$0xff] %v13796_v35  ;;  %v5238_v32 = vsel %vm12491_vm3, %v5233_v24, %v5237_v51  ;;  %v5248_v13 = vsel %vm12491_vm3, %v5243_v5, %v5247_v40  ;;  %v5266_v56 = vor.u32 %v5265_v44, %v5261_v63  ;;  %v13813_v24 = vld [vmem:[%s12459_s30 + $0xd0] sm:$0xf] }
 0x15c   : > { %v13806_v34 = vcombine.low %v5238_v32, %v5248_v13  ;;  %v5257_v30 = vrot.slane %v5256_v42, 4  ;;  %v5276_v52 = vrot.slane %v5274_v29, 4  ;;  %v5283_v51 = vshll.u32 %v13796_v35, 16  ;;  %v13821_v29 = vld [vmem:[%s12459_s30 + $0xd4] sm:$0x1] }
 0x15d   : > { %15400 = vst [vmem:[#allocation44_spill] sm:$0xff] %v13788_v37  ;;  %v5287_v40 = vshrl.u32 %v13796_v35, 16  ;;  %v5267_v5 = vrot.slane %v5266_v56, 4  ;;  %v5293_v42 = vshll.u32 %v13803_v49, 16  ;;  %v5298_v44 = vshrl.u32 %v9908_v0, 16 }
 0x15e   : > { %10825 = vmatmul.mubr.msk.bf16.gmra.mrb[28].mxu0 %vm740_vm4, %v13617_v16  ;;  %15402 = vst [vmem:[#allocation46_spill] sm:$0xff] %v13806_v34  ;;  %11191 = vmatmul.mubr.msk.bf16.gmra.mrb[4].mxu1 %vm740_vm4, %v13788_v37  ;;  %v5285_v32 = vrot.slane %v5283_v51, 5  ;;  %v13826_v37 = vld [vmem:[%s15274_s4 + $0x6] sm:$0x3] }
 0x15f   : > { %10830 = vmatprep.mubr.msk.bf16.mxu0 %vm740_vm4, %v13364_v25  ;;  %v5277_v25 = vshll.u32 %v9905_v9, 16  ;;  %11194 = vmatprep.mubr.msk.bf16.mxu1 %vm740_vm4, %v13806_v34  ;;  %v5262_v9 = vsel %vm12491_vm3, %v5257_v30, %v5261_v63  ;;  %v5289_v13 = vrot.slane %v5287_v40, 4  ;;  %v5272_v34 = vsel %vm12491_vm3, %v5267_v5, %v5271_v43 }
 0x160   : > { %v5300_v35 = vrot.slane %v5298_v44, 4  ;;  %v5307_v63 = vshll.u32 %v13813_v24, 16  ;;  %v13833_v30 = vcombine.low %v5262_v9, %v5272_v34  ;;  %v5311_v43 = vshrl.u32 %v13813_v24, 16 }
 0x161   : > { %v5279_v58 = vrot.slane %v5277_v25, 5  ;;  %v5301_v25 = vshll.u32 %v9908_v0, 16  ;;  %v5317_v40 = vshll.u32 %v13821_v29, 16  ;;  %v5871_v9 = vrot.slane %v13483_v4, 5  ;;  %v9962_v4 = vld [vmem:[%s12459_s30 + $0x24] sm:$0xe] }
 0x162   : > { %v5309_v51 = vrot.slane %v5307_v63, 5  ;;  %v5874_v63 = vrot.slane %v13523_v54, 5 }
 0x163   : > { %v5280_v28 = vor.u32 %v5279_v58, %v5276_v52  ;;  %v5290_v52 = vor.u32 %v5289_v13, %v5285_v32  ;;  %v5295_v58 = vrot.slane %v5293_v42, 5  ;;  %v5303_v0 = vrot.slane %v5301_v25, 5 }
 0x164   : > { %v5313_v42 = vrot.slane %v5311_v43, 4  ;;  %v5319_v44 = vrot.slane %v5317_v40, 5  ;;  %v5873_v25 = vrot.slane %v5871_v9, 4  ;;  %v9978_v40 = vrot.slane %v9962_v4, 9 }
 0x165   : > { %v5281_v56 = vrot.slane %v5280_v28, 4  ;;  %v5291_v34 = vrot.slane %v5290_v52, 4  ;;  %v5304_v5 = vor.u32 %v5303_v0, %v5300_v35  ;;  %v9961_v28 = vld [vmem:[%s12459_s30 + $0x18] sm:$0xe]  ;;  %v5878_v35 = vrot.slane %v13503_v61, 5 }
 0x166   : > { %10831 = vmatmul.mubr.msk.bf16.vlgmr.msra.gmra.mrb[72].mxu0 %vm740_vm4, %v13039_v33  ;;  %v10026_v33 = vld [vmem:[%s15274_s4 + $0x10] sm:$0x3]  ;;  %11195 = vmatmul.mubr.msk.bf16.gmra.mrb[8].mxu1 %vm740_vm4, %v13833_v30  ;;  %v5875_v43 = vsel %vm12996_vm7, %v5873_v25, %v5874_v63 }
 0x167   : > { %10863 = vmatpush3.bf16.msra.mxu0 %v2379_v48  ;;  %10834 = vmatprep.mubr.msk.bf16.mxu0 %vm740_vm4, %v13378_v39  ;;  %v5286_v48 = vsel %vm12491_vm3, %v5281_v56, %v5285_v32  ;;  %v6278_v39 = vsel %vm789_vm0, %v10026_v33, 0  ;;  %v5296_v13 = vsel %vm12491_vm3, %v5291_v34, %v5295_v58  ;;  %v9977_v32 = vrot.slane %v9961_v28, 9  ;;  %v9964_v28 = vld [vmem:[%s12459_s30 + $0x3c] sm:$0xe] }
 0x168   : > { %12249 = vmatprep.subr.msk.bf16.mxu0 %vm789_vm0, %v13826_v37  ;;  %12260 = vmatprep.subr.msk.bf16.mxu1 %vm789_vm0, %v10026_v33  ;;  %v13855_v56 = vcombine.low %v5286_v48, %v5296_v13  ;;  %v5305_v52 = vrot.slane %v5304_v5, 4  ;;  %v5314_v33 = vor.u32 %v5313_v42, %v5309_v51  ;;  %v5880_v34 = vrot.slane %v5878_v35, 4  ;;  %v9963_v5 = vld [vmem:[%s12459_s30 + $0x30] sm:$0xe] }
 0x169   : > { %11237 = vmatpush3.bf16.msra.mxu1 %v6278_v39  ;;  %v5872_v0 = vsel %vm12996_vm7, %v9977_v32, %v5871_v9  ;;  %v5881_v39 = vrot.slane %v13526_v47, 5  ;;  %v9980_v25 = vrot.slane %v9964_v28, 9  ;;  %v5920_v28 = vrot.slane %v13646_v10, 5 }
 0x16a   : > { %11198 = vmatprep.mubr.msk.bf16.mxu1 %vm740_vm4, %v13855_v56  ;;  %v5310_v54 = vsel %vm12491_vm3, %v5305_v52, %v5309_v51  ;;  %v5315_v58 = vrot.slane %v5314_v33, 4  ;;  %v13873_v48 = vcombine.low %v5872_v0, %v5875_v43  ;;  %v5885_v51 = vrot.slane %v13542_v17, 5 }
 0x16b   : > { %v5882_v47 = vsel %vm12996_vm7, %v5880_v34, %v5881_v39  ;;  %v5892_v17 = vrot.slane %v13549_v3, 5  ;;  %v5895_v3 = vrot.slane %v13566_v15, 5  ;;  %v5899_v33 = vrot.slane %v13587_v50, 5 }
 0x16c   : > { %v5320_v61 = vsel %vm12491_vm3, %v5315_v58, %v5319_v44  ;;  %v5887_v42 = vrot.slane %v5885_v51, 4  ;;  %v5879_v44 = vsel %vm12996_vm7, %v9978_v40, %v5878_v35  ;;  %v9965_v35 = vld [vmem:[%s12459_s30 + $0x48] sm:$0xe]  ;;  %v5906_v0 = vrot.slane %v13598_v6, 5  ;;  %v9966_v40 = vld [vmem:[%s12459_s30 + $0x54] sm:$0xe] }
 0x16d   : > { %v13876_v9 = vcombine.low %v5310_v54, %v5320_v61  ;;  %v5894_v52 = vrot.slane %v5892_v17, 4  ;;  %v5893_v43 = vsel %vm12996_vm7, %v9980_v25, %v5892_v17  ;;  %v5901_v54 = vrot.slane %v5899_v33, 4 }
 0x16e   : > { %10835 = vmatmul.mubr.msk.bf16.gmra.mrb[36].mxu0 %vm740_vm4, %v13380_v22  ;;  %v9979_v22 = vrot.slane %v9963_v5, 9  ;;  %v5902_v58 = vrot.slane %v13605_v60, 5  ;;  %v9982_v6 = vrot.slane %v9966_v40, 9  ;;  %v5908_v61 = vrot.slane %v5906_v0, 4 }
 0x16f   : > { %10838 = vmatprep.mubr.msk.bf16.mxu0 %vm740_vm4, %v13393_v41  ;;  %11199 = vmatmul.mubr.msk.bf16.gmra.mrb[48].mxu1 %vm740_vm4, %v13876_v9  ;;  %v5888_v41 = vrot.slane %v13562_v20, 5  ;;  %v13897_v20 = vcombine.low %v5879_v44, %v5882_v47  ;;  %v5896_v50 = vsel %vm12996_vm7, %v5894_v52, %v5895_v3  ;;  %v5909_v34 = vrot.slane %v13614_v21, 5  ;;  %v9967_v47 = vld [vmem:[%s12459_s30 + $0x60] sm:$0xe] }
 0x170   : > { %11238 = vmatprep.mubr.msk.bf16.mxu1 %vm740_vm4, %v13873_v48  ;;  %v5886_v13 = vsel %vm12996_vm7, %v9979_v22, %v5885_v51  ;;  %v5903_v60 = vsel %vm12996_vm7, %v5901_v54, %v5902_v58  ;;  %v5907_v5 = vsel %vm12996_vm7, %v9982_v6, %v5906_v0  ;;  %v5913_v44 = vrot.slane %v13630_v1, 5  ;;  %v9970_v58 = vld [vmem:[%s12459_s30 + $0x84] sm:$0xe] }
 0x171   : > { %v5889_v32 = vsel %vm12996_vm7, %v5887_v42, %v5888_v41  ;;  %v5910_v22 = vsel %vm12996_vm7, %v5908_v61, %v5909_v34  ;;  %v13932_v42 = vcombine.low %v5893_v43, %v5896_v50  ;;  %v9983_v17 = vrot.slane %v9967_v47, 9  ;;  %v15403_v34 = vld [vmem:[#allocation38_spill] sm:$0xff]  ;;  %v9972_v47 = vld [vmem:[%s12459_s30 + $0x9c] sm:$0xe] }
 0x172   : > { %v13901_v63 = vcombine.low %v5886_v13, %v5889_v32  ;;  %v13934_v21 = vcombine.low %v5907_v5, %v5910_v22  ;;  %v5915_v13 = vrot.slane %v5913_v44, 4  ;;  %v9968_v32 = vld [vmem:[%s12459_s30 + $0x6c] sm:$0xe]  ;;  %v5922_v25 = vrot.slane %v5920_v28, 4 }
 0x173   : > { %v5923_v52 = vrot.slane %v13657_v7, 5  ;;  %v5914_v1 = vsel %vm12996_vm7, %v9983_v17, %v5913_v44  ;;  %v5927_v0 = vrot.slane %v13669_v59, 5  ;;  %v5934_v43 = vrot.slane %v13687_v12, 5  ;;  %v15404_v44 = vld [vmem:[#allocation39_spill] sm:$0xff] }
 0x174   : > { %v5937_v50 = vrot.slane %v13697_v8, 5  ;;  %v5951_v17 = vrot.slane %v13739_v38, 5  ;;  %v15406_v38 = vld [vmem:[#allocation30_spill] sm:$0xff] }
 0x175   : > { %v5929_v54 = vrot.slane %v5927_v0, 4  ;;  %v5936_v40 = vrot.slane %v5934_v43, 4 }
 0x176   : > { %10839 = vmatmul.mubr.msk.bf16.gmra.mrb[40].mxu0 %vm740_vm4, %v13452_v2 }
 0x177   : > { %10842 = vmatprep.mubr.msk.bf16.mxu0 %vm740_vm4, %v13454_v55  ;;  %11239 = vmatmul.mubr.msk.bf16.vlgmr.msra.gmra.mrb[52].mxu1 %vm740_vm4, %v13897_v20  ;;  %v9981_v55 = vrot.slane %v9965_v35, 9 }
 0x178   : > { %11242 = vmatprep.mubr.msk.bf16.mxu1 %vm740_vm4, %v13901_v63 }
 0x179   : > { %v13905_v4 = vpop.f32.mrb[32].mxu0  ;;  %v5900_v51 = vsel %vm12996_vm7, %v9981_v55, %v5899_v33 }
 0x17a   : > { %v1285_v2 = vpop.f32.mrb[33].mxu0  ;;  %v13938_v41 = vcombine.low %v5900_v51, %v5903_v60  ;;  %v9971_v51 = vld [vmem:[%s12459_s30 + $0x90] sm:$0xe]  ;;  %v5948_v60 = vrot.slane %v13727_v31, 5 }
 0x17b   : > { %v13915_v15 = vpop.f32.mrb[34].mxu0  ;;  %v9969_v2 = vld [vmem:[%s12459_s30 + $0x78] sm:$0xe]  ;;  %v9987_v5 = vrot.slane %v9971_v51, 9  ;;  %v5972_v51 = vrot.slane %v13803_v49, 5 }
 0x17c   : > { %v1287_v39 = vpop.f32.mrb[35].mxu0  ;;  %v9985_v55 = vrot.slane %v9969_v2, 9  ;;  %v5958_v2 = vrot.slane %v13759_v36, 5 }
 0x17d   : > { %v5941_v39 = vrot.slane %v15403_v34, 5  ;;  %v14055_v34 = vld [vmem:[%s12459_s30 + $0x24] sm:$0xff]  }
 0x17e   : > { %10843 = vmatmul.mubr.msk.bf16.gmra.mrb[44].mxu0 %vm740_vm4, %v13460_v19  ;;  %v5916_v19 = vrot.slane %v13643_v26, 5  ;;  %v5924_v26 = vsel %vm12996_vm7, %v5922_v25, %v5923_v52  ;;  %v5928_v59 = vsel %vm12996_vm7, %v9985_v55, %v5927_v0  ;;  %v14026_v55 = vld [vmem:[%s12459_s30 + $0xc] sm:$0xff]  }
 0x17f   : > { %10846 = vmatprep.mubr.msk.bf16.mxu0 %vm740_vm4, %v13462_v46  ;;  %11243 = vmatmul.mubr.msk.bf16.gmra.mrb[20].mxu1 %vm740_vm4, %v13932_v42  ;;  %v9984_v46 = vrot.slane %v9968_v32, 9  ;;  %v5943_v22 = vrot.slane %v5941_v39, 4  ;;  %v5942_v31 = vsel %vm12996_vm7, %v9987_v5, %v5941_v39  ;;  %v15408_v39 = vld [vmem:[#allocation45_spill] sm:$0xff] }
 0x180   : > { %11246 = vmatprep.mubr.msk.bf16.mxu1 %vm740_vm4, %v13938_v41  ;;  %v5917_v10 = vsel %vm12996_vm7, %v5915_v13, %v5916_v19 }
 0x181   : > { %v5921_v3 = vsel %vm12996_vm7, %v9984_v46, %v5920_v28  ;;  %v10996_v33 = vpop.f32.mrb[12].mxu1  ;;  %v13964_v7 = vcombine.low %v5914_v1, %v5917_v10  ;;  %v5950_v28 = vrot.slane %v5948_v60, 4  ;;  %v15405_v46 = vld [vmem:[#allocation28_spill] sm:$0xff]  ;;  %v15407_v1 = vld [vmem:[#allocation41_spill] sm:$0xff] }
 0x182   : > { %v13960_v35 = vcombine.low %v5921_v3, %v5924_v26  ;;  %v5955_v10 = vrot.slane %v15407_v1, 5  ;;  %v9973_v3 = vld [vmem:[%s12459_s30 + $0xa8] sm:$0xe]  ;;  %v5962_v26 = vrot.slane %v13769_v62, 5  ;;  %v5965_v62 = vrot.slane %v13779_v23, 5 }
 0x183   : > { %v5952_v32 = vsel %vm12996_vm7, %v5950_v28, %v5951_v17  ;;  %v9989_v33 = vrot.slane %v9973_v3, 9  ;;  %v9975_v23 = vld [vmem:[%s12459_s30 + $0xc0] sm:$0xe] }
 0x184   : > { %v5957_v0 = vrot.slane %v5955_v10, 4 }
 0x186   : > { %10847 = vmatmul.mubr.msk.bf16.gmra.mrb[48].mxu0 %vm740_vm4, %v13464_v45  ;;  %v5930_v45 = vrot.slane %v13680_v14, 5  ;;  %v5938_v14 = vsel %vm12996_vm7, %v5936_v40, %v5937_v50 }
 0x187   : > { %10850 = vmatprep.mubr.msk.bf16.mxu0 %vm740_vm4, %v13466_v11  ;;  %11247 = vmatmul.mubr.msk.bf16.gmra.mrb[24].mxu1 %vm740_vm4, %v13934_v21  ;;  %v9986_v11 = vrot.slane %v9970_v58, 9  ;;  %v5956_v58 = vsel %vm12996_vm7, %v9989_v33, %v5955_v10  ;;  %v12320_v33 = vld [vmem:[%s12459_s30 + $0x60] sm:$0xff]  }
 0x188   : > { %11250 = vmatprep.mubr.msk.bf16.mxu1 %vm740_vm4, %v13964_v7  ;;  %v5931_v12 = vsel %vm12996_vm7, %v5929_v54, %v5930_v45  ;;  %v5964_v45 = vrot.slane %v5962_v26, 4 }
 0x189   : > { %v5935_v6 = vsel %vm12996_vm7, %v9986_v11, %v5934_v43  ;;  %v13990_v8 = vcombine.low %v5928_v59, %v5931_v12  ;;  %v9974_v43 = vld [vmem:[%s12459_s30 + $0xb4] sm:$0xe]  ;;  %v5959_v11 = vsel %vm12996_vm7, %v5957_v0, %v5958_v2  ;;  %v14049_v12 = vld [vmem:[%s12459_s30 + $0x18] sm:$0xff]   ;;  %v12321_v2 = vld [vmem:[%s12459_s30 + $0x6c] sm:$0xff]  }
 0x18a   : > { %v13986_v61 = vcombine.low %v5935_v6, %v5938_v14  ;;  %v9990_v54 = vrot.slane %v9974_v43, 9  ;;  %v14035_v36 = vcombine.low %v5956_v58, %v5959_v11  ;;  %v5966_v50 = vsel %vm12996_vm7, %v5964_v45, %v5965_v62  ;;  %v9976_v14 = vld [vmem:[%s12459_s30 + $0xcc] sm:$0xe]  ;;  %v12322_v45 = vld [vmem:[%s12459_s30 + $0x78] sm:$0xff]   ;;  %v12323_v62 = vld [vmem:[%s12459_s30 + $0x84] sm:$0xff]  }
 0x18b   : > { %v9991_v6 = vrot.slane %v9975_v23, 9  ;;  %v9992_v5 = vrot.slane %v9976_v14, 9  ;;  %v12325_v58 = vld [vmem:[%s12459_s30 + $0x9c] sm:$0xff]   ;;  %v14121_v11 = vld [vmem:[%s12459_s30 + $0xb4] sm:$0xff]   ;;  %v12359_v23 = vld [vmem:[%s15274_s4 + $0x8] sm:$0x3] }
 0x18c   : > { %v5963_v40 = vsel %vm12996_vm7, %v9990_v54, %v5962_v26 }
 0x18d   : > { %v14043_v59 = vcombine.low %v5963_v40, %v5966_v50  ;;  %v14128_v40 = vld [vmem:[%s12459_s30 + $0xc0] sm:$0xff]  }
 0x18e   : > { %10851 = vmatmul.mubr.msk.bf16.gmra.mrb[52].mxu0 %vm740_vm4, %v13468_v57  ;;  %v5944_v57 = vrot.slane %v15404_v44, 5  ;;  %v9649_v44 = vld [vmem:[%s15271_s1 + $0x8] sm:$0x3] }
 0x18f   : > { %10854 = vmatprep.mubr.msk.bf16.mxu0 %vm740_vm4, %v13475_v53  ;;  %11251 = vmatmul.mubr.msk.bf16.gmra.mrb[28].mxu1 %vm740_vm4, %v13960_v35  ;;  %v9988_v53 = vrot.slane %v9972_v47, 9  ;;  %v3295_v50 = vsel %vm789_vm0, %v9649_v44, 0 }
 0x190   : > { %11254 = vmatprep.mubr.msk.bf16.mxu1 %vm740_vm4, %v13990_v8  ;;  %v5945_v13 = vsel %vm12996_vm7, %v5943_v22, %v5944_v57  ;;  %v5976_v22 = vrot.slane %v13813_v24, 5 }
 0x191   : > { %v5949_v19 = vsel %vm12996_vm7, %v9988_v53, %v5948_v60  ;;  %v14016_v52 = vcombine.low %v5942_v31, %v5945_v13  ;;  %v2577_v60 = vsel %vm789_vm0, %v13826_v37, 0  ;;  %v5979_v53 = vrot.slane %v13821_v29, 5  ;;  %v12316_v31 = vld [vmem:[%s12459_s30 + $0x30] sm:$0xff]   ;;  %v12317_v13 = vld [vmem:[%s12459_s30 + $0x3c] sm:$0xff]  }
 0x192   : > { %v14012_v25 = vcombine.low %v5949_v19, %v5952_v32  ;;  %v5977_v37 = vsel %vm12996_vm7, %v9992_v5, %v5976_v22  ;;  %v5978_v49 = vrot.slane %v5976_v22, 4  ;;  %v9604_v5 = vld [vmem:[%s12459_s30 + $0x18] sm:$0xf]  ;;  %v12360_v22 = vld [vmem:[%s12459_s30 + $0x10] sm:$0xf] }
 0x194   : > { %v5980_v29 = vsel %vm12996_vm7, %v5978_v49, %v5979_v53  ;;  %v2840_v49 = vshll.u32 %v9604_v5, 16 }
 0x195   : > { %v14083_v17 = vcombine.low %v5977_v37, %v5980_v29  ;;  %v2837_v37 = vshrl.u32 %v9604_v5, 16 }
 0x196   : > { %10855 = vmatmul.mubr.msk.bf16.gmra.mrb[56].mxu0 %vm740_vm4, %v15405_v46 }
 0x197   : > { %10858 = vmatprep.mubr.msk.bf16.mxu0 %vm740_vm4, %v15406_v38  ;;  %11255 = vmatmul.mubr.msk.bf16.gmra.mrb[0].mxu1 %vm740_vm4, %v13986_v61  ;;  %v12319_v38 = vld [vmem:[%s12459_s30 + $0x54] sm:$0xff]  }
 0x198   : > { %11258 = vmatprep.mubr.msk.bf16.mxu1 %vm740_vm4, %v14016_v52 }
 0x19e   : > { %10859 = vmatmul.mubr.msk.bf16.gmra.mrb[76].mxu0 %vm740_vm4, %v13617_v16  ;;  %v5969_v16 = vrot.slane %v15408_v39, 5 }
 0x19f   : > { %10864 = vmatprep.mubr.msk.bf16.mxu0 %vm740_vm4, %v14026_v55  ;;  %11259 = vmatmul.mubr.msk.bf16.gmra.mrb[4].mxu1 %vm740_vm4, %v14012_v25 }
 0x1a0   : > { %11262 = vmatprep.mubr.msk.bf16.mxu1 %vm740_vm4, %v14035_v36  ;;  %v5970_v57 = vsel %vm12996_vm7, %v9991_v6, %v5969_v16  ;;  %v5971_v47 = vrot.slane %v5969_v16, 4 }
 0x1a2   : > { %v5973_v24 = vsel %vm12996_vm7, %v5971_v47, %v5972_v51 }
 0x1a3   : > { %v14079_v28 = vcombine.low %v5970_v57, %v5973_v24  ;;  %v2826_v57 = vshrl.u32 %v12360_v22, 16  ;;  %v12361_v24 = vld [vmem:[%s12459_s30 + $0x1c] sm:$0xf] }
 0x1a4   : > { %v2846_v29 = vshll.u32 %v12361_v24, 16 }
 0x1a6   : > { %10865 = vmatmul.mubr.msk.bf16.vlgmr.msra.gmra.mrb[0].mxu0 %vm740_vm4, %v14049_v12 }
 0x1a7   : > { %10897 = vmatpush3.bf16.msra.mxu0 %v2577_v60  ;;  %10868 = vmatprep.mubr.msk.bf16.mxu0 %vm740_vm4, %v14055_v34 }
 0x1a8   : > { %12250 = vmatprep.subr.msk.bf16.mxu0 %vm789_vm0, %v9649_v44  ;;  %11263 = vmatmul.mubr.msk.bf16.gmra.mrb[8].mxu1 %vm740_vm4, %v14043_v59  ;;  %v2822_v44 = vshll.u32 %v12360_v22, 16  ;;  %v9613_v22 = vld [vmem:[%s12459_s30 + $0x3c] sm:$0xf] }
 0x1a9   : > { %11266 = vmatprep.mubr.msk.bf16.mxu1 %vm740_vm4, %v14079_v28 }
 0x1ae   : > { %10869 = vmatmul.mubr.msk.bf16.gmra.mrb[4].mxu0 %vm740_vm4, %v12316_v31 }
 0x1af   : > { %10872 = vmatprep.mubr.msk.bf16.mxu0 %vm740_vm4, %v12317_v13 }
 0x1b0   : > { %11267 = vmatmul.mubr.msk.bf16.gmra.mrb[56].mxu1 %vm740_vm4, %v14083_v17 }
 0x1b1   : > { %v10758_v19 = vpop.f32.mrb[60].mxu0 }
 0x1b2   : > { %v1395_v32 = vpop.f32.mrb[61].mxu0  ;;  %v2828_v19 = vrot.slane %v2826_v57, 4 }
 0x1b3   : > { %v10759_v46 = vpop.f32.mrb[62].mxu0 }
 0x1b4   : > { %v1398_v1 = vpop.f32.mrb[63].mxu0  ;;  %v2839_v46 = vrot.slane %v2837_v37, 4 }
 0x1b6   : > { %10873 = vmatmul.mubr.msk.bf16.gmra.mrb[8].mxu0 %vm740_vm4, %v12318_v18 }
 0x1b7   : > { %10876 = vmatprep.mubr.msk.bf16.mxu0 %vm740_vm4, %v12319_v38 }
 0x1b9   : > { %v10764_v10 = vpop.f32.mrb[64].mxu0 }
 0x1ba   : > { %v14100_v3 = vadd.f32 %v10764_v10, %v13905_v4  ;;  %v1445_v26 = vpop.f32.mrb[65].mxu0  ;;  %v12324_v4 = vld [vmem:[%s12459_s30 + $0x90] sm:$0xff]  }
 0x1bb   : > { %v10765_v0 = vpop.f32.mrb[66].mxu0 }
 0x1bc   : > { %v14105_v43 = vadd.f32 %v10765_v0, %v13915_v15  ;;  %v1447_v54 = vpop.f32.mrb[67].mxu0  ;;  %v14118_v15 = vld [vmem:[%s12459_s30 + $0xa8] sm:$0xff]  }
 0x1be   : > { %10877 = vmatmul.mubr.msk.bf16.gmra.mrb[12].mxu0 %vm740_vm4, %v12320_v33 }
 0x1bf   : > { %10880 = vmatprep.mubr.msk.bf16.mxu0 %vm740_vm4, %v12321_v2 }
 0x1c6   : > { %10881 = vmatmul.mubr.msk.bf16.gmra.mrb[16].mxu0 %vm740_vm4, %v12322_v45 }
 0x1c7   : > { %10884 = vmatprep.mubr.msk.bf16.mxu0 %vm740_vm4, %v12323_v62 }
 0x1ce   : > { %10885 = vmatmul.mubr.msk.bf16.gmra.mrb[20].mxu0 %vm740_vm4, %v12324_v4 }
 0x1cf   : > { %10888 = vmatprep.mubr.msk.bf16.mxu0 %vm740_vm4, %v12325_v58 }
 0x1d6   : > { %10889 = vmatmul.mubr.msk.bf16.gmra.mrb[24].mxu0 %vm740_vm4, %v14118_v15 }
 0x1d7   : > { %10892 = vmatprep.mubr.msk.bf16.mxu0 %vm740_vm4, %v14121_v11 }
 0x1de   : > { %10893 = vmatmul.mubr.msk.bf16.gmra.mrb[28].mxu0 %vm740_vm4, %v14128_v40 }
 0x1df   : > { %10898 = vmatprep.mubr.msk.bf16.mxu0 %vm740_vm4, %v14026_v55 }
 0x1e6   : > { %10899 = vmatmul.mubr.msk.bf16.vlgmr.msra.gmra.mrb[80].mxu0 %vm740_vm4, %v14049_v12 }
 0x1e7   : > { %10931 = vmatpush3.bf16.msra.mxu0 %v3295_v50  ;;  %10902 = vmatprep.mubr.msk.bf16.mxu0 %vm740_vm4, %v14055_v34  ;;  %v9601_v34 = vld [vmem:[%s12459_s30 + $0xc] sm:$0xf] }
 0x1e8   : > { %12251 = vmatprep.subr.msk.bf16.mxu0 %vm789_vm0, %v12359_v23  ;;  %v2813_v51 = vshrl.u32 %v9601_v34, 16  ;;  %v2816_v60 = vshll.u32 %v9601_v34, 16  ;;  %v9610_v34 = vld [vmem:[%s12459_s30 + $0x30] sm:$0xf] }
 0x1e9   : > { %v2885_v57 = vshrl.u32 %v9610_v34, 16 }
 0x1ea   : > { %v2815_v47 = vrot.slane %v2813_v51, 4  ;;  %v2818_v53 = vrot.slane %v2816_v60, 5 }
 0x1ee   : > { %10903 = vmatmul.mubr.msk.bf16.gmra.mrb[36].mxu0 %vm740_vm4, %v12316_v31  ;;  %v2850_v31 = vshrl.u32 %v12361_v24, 16 }
 0x1ef   : > { %10906 = vmatprep.mubr.msk.bf16.mxu0 %vm740_vm4, %v12317_v13  ;;  %v2824_v13 = vrot.slane %v2822_v44, 5 }
 0x1f0   : > { %v2852_v10 = vrot.slane %v2850_v31, 4 }
 0x1f1   : > { %v10792_v55 = vpop.f32.mrb[68].mxu0  ;;  %v2829_v26 = vor.u32 %v2828_v19, %v2824_v13 }
 0x1f2   : > { %v1555_v6 = vpop.f32.mrb[69].mxu0 }
 0x1f3   : > { %v14145_v12 = vadd.f32 %v1555_v6, %v1395_v32  ;;  %v10793_v14 = vpop.f32.mrb[70].mxu0  ;;  %v2819_v32 = vor.u32 %v2818_v53, %v2815_v47  ;;  %v2888_v47 = vshll.u32 %v9610_v34, 16 }
 0x1f4   : > { %v1558_v39 = vpop.f32.mrb[71].mxu0  ;;  %v12364_v14 = vld [vmem:[%s12459_s30 + $0x20] sm:$0x1] }
 0x1f5   : > { %v14147_v16 = vadd.f32 %v1558_v39, %v1398_v1  ;;  %v14160_v1 = vrot.slane %v2846_v29, 5  ;;  %v2820_v23 = vrot.slane %v2819_v32, 4  ;;  %v2856_v39 = vshll.u32 %v12364_v14, 16  ;;  %v12365_v29 = vld [vmem:[%s12459_s30 + $0x34] sm:$0xf] }
 0x1f6   : > { %10907 = vmatmul.mubr.msk.bf16.gmra.mrb[40].mxu0 %vm740_vm4, %v12318_v18  ;;  %v9607_v18 = vld [vmem:[%s12459_s30 + $0x24] sm:$0xf]  ;;  %v2894_v31 = vshll.u32 %v12365_v29, 16  ;;  %v2898_v19 = vshrl.u32 %v12365_v29, 16  ;;  %v2909_v32 = vshrl.u32 %v9613_v22, 16 }
 0x1f7   : > { %10910 = vmatprep.mubr.msk.bf16.mxu0 %vm740_vm4, %v12319_v38  ;;  %v2842_v38 = vrot.slane %v2840_v49, 5  ;;  %v2864_v54 = vshll.u32 %v9607_v18, 16  ;;  %v2853_v6 = vor.u32 %v2852_v10, %v14160_v1  ;;  %v2825_v53 = vsel %vm12491_vm3, %v2820_v23, %v2824_v13 }
 0x1f8   : > { %v2858_v24 = vrot.slane %v2856_v39, 5  ;;  %v2900_v23 = vrot.slane %v2898_v19, 4  ;;  %v12370_v19 = vld [vmem:[%s12459_s30 + $0x4c] sm:$0xf] }
 0x1f9   : > { %v2843_v55 = vor.u32 %v2842_v38, %v2839_v46  ;;  %v2866_v5 = vrot.slane %v2864_v54, 5  ;;  %v2854_v49 = vrot.slane %v2853_v6, 4  ;;  %v12366_v38 = vld [vmem:[%s12459_s30 + $0x2c] sm:$0x1]  ;;  %v2887_v54 = vrot.slane %v2885_v57, 4 }
 0x1fa   : > { %v2880_v10 = vshll.u32 %v12366_v38, 16 }
 0x1fb   : > { %v2844_v37 = vrot.slane %v2843_v55, 4  ;;  %v2911_v55 = vrot.slane %v2909_v32, 4  ;;  %v2942_v32 = vshll.u32 %v12370_v19, 16 }
 0x1fc   : > { %v2882_v14 = vrot.slane %v2880_v10, 5 }
 0x1fe   : > { %10911 = vmatmul.mubr.msk.bf16.gmra.mrb[44].mxu0 %vm740_vm4, %v12320_v33  ;;  %v12362_v33 = vld [vmem:[%s12459_s30 + $0x14] sm:$0x1] }
 0x1ff   : > { %10914 = vmatprep.mubr.msk.bf16.mxu0 %vm740_vm4, %v12321_v2  ;;  %v2832_v0 = vshll.u32 %v12362_v33, 16  ;;  %v2861_v2 = vshrl.u32 %v9607_v18, 16  ;;  %v2912_v18 = vshll.u32 %v9613_v22, 16 }
 0x201   : > { %v2834_v51 = vrot.slane %v2832_v0, 5  ;;  %v2863_v60 = vrot.slane %v2861_v2, 4  ;;  %v2914_v6 = vrot.slane %v2912_v18, 5  ;;  %v2946_v18 = vshrl.u32 %v12370_v19, 16  ;;  %v12373_v19 = vld [vmem:[%s12459_s30 + $0x64] sm:$0xf] }
 0x203   : > { %v2867_v13 = vor.u32 %v2866_v5, %v2863_v60  ;;  %v12368_v5 = vld [vmem:[%s12459_s30 + $0x38] sm:$0x1] }
 0x204   : > { %v2904_v22 = vshll.u32 %v12368_v5, 16 }
 0x206   : > { %10915 = vmatmul.mubr.msk.bf16.gmra.mrb[48].mxu0 %vm740_vm4, %v12322_v45  ;;  %v12363_v45 = vld [vmem:[%s12459_s30 + $0x28] sm:$0xf] }
 0x207   : > { %10918 = vmatprep.mubr.msk.bf16.mxu0 %vm740_vm4, %v12323_v62  ;;  %v2870_v62 = vshll.u32 %v12363_v45, 16  ;;  %v2874_v50 = vshrl.u32 %v12363_v45, 16  ;;  %v2890_v45 = vrot.slane %v2888_v47, 5  ;;  %v2915_v47 = vor.u32 %v2914_v6, %v2911_v55 }
 0x208   : > { %v2944_v6 = vrot.slane %v2942_v32, 5  ;;  %v2990_v32 = vshll.u32 %v12373_v19, 16 }
 0x209   : > { %v14170_v44 = vrot.slane %v2870_v62, 5  ;;  %v2859_v62 = vsel %vm12491_vm3, %v2854_v49, %v2858_v24  ;;  %v2891_v60 = vor.u32 %v2890_v45, %v2887_v54  ;;  %v9619_v24 = vld [vmem:[%s12459_s30 + $0x54] sm:$0xf]  ;;  %v2916_v45 = vrot.slane %v2915_v47, 4  ;;  %v14228_v47 = vld [vmem:[%s15271_s1 + $0xa] sm:$0x3] }
 0x20b   : > { %v2892_v10 = vrot.slane %v2891_v60, 4  ;;  %v9622_v60 = vld [vmem:[%s12459_s30 + $0x60] sm:$0xf] }
 0x20e   : > { %10919 = vmatmul.mubr.msk.bf16.gmra.mrb[52].mxu0 %vm740_vm4, %v12324_v4  ;;  %v2830_v4 = vrot.slane %v2829_v26, 4  ;;  %v12367_v26 = vld [vmem:[%s12459_s30 + $0x40] sm:$0xf] }
 0x20f   : > { %10922 = vmatprep.mubr.msk.bf16.mxu0 %vm740_vm4, %v12325_v58  ;;  %v2876_v58 = vrot.slane %v2874_v50, 4  ;;  %v2918_v33 = vshll.u32 %v12367_v26, 16  ;;  %v2922_v0 = vshrl.u32 %v12367_v26, 16  ;;  %v14189_v50 = vrot.slane %v2894_v31, 5 }
 0x210   : > { %v2835_v46 = vsel %vm12491_vm3, %v2830_v4, %v2834_v51  ;;  %v9616_v4 = vld [vmem:[%s12459_s30 + $0x48] sm:$0xf]  ;;  %v2868_v51 = vrot.slane %v2867_v13, 4  ;;  %v2906_v26 = vrot.slane %v2904_v22, 5 }
 0x211   : > { %v2877_v2 = vor.u32 %v2876_v58, %v14170_v44  ;;  %v14193_v39 = vrot.slane %v2918_v33, 5  ;;  %v2924_v34 = vrot.slane %v2922_v0, 4  ;;  %v2901_v57 = vor.u32 %v2900_v23, %v14189_v50  ;;  %v12371_v0 = vld [vmem:[%s12459_s30 + $0x58] sm:$0xf] }
 0x212   : > { %v2933_v49 = vshrl.u32 %v9616_v4, 16  ;;  %v2936_v31 = vshll.u32 %v9616_v4, 16  ;;  %v2957_v33 = vshrl.u32 %v9619_v24, 16  ;;  %v2966_v13 = vshll.u32 %v12371_v0, 16 }
 0x213   : > { %v2925_v29 = vor.u32 %v2924_v34, %v14193_v39  ;;  %v2902_v54 = vrot.slane %v2901_v57, 4  ;;  %v2897_v5 = vsel %vm12491_vm3, %v2892_v10, %v14189_v50  ;;  %v2921_v57 = vsel %vm12491_vm3, %v2916_v45, %v14193_v39  ;;  %v12374_v10 = vld [vmem:[%s12459_s30 + $0x5c] sm:$0x1] }
 0x214   : > { %v2938_v55 = vrot.slane %v2936_v31, 5  ;;  %v2981_v39 = vshrl.u32 %v9622_v60, 16  ;;  %v2984_v31 = vshll.u32 %v9622_v60, 16 }
 0x215   : > { %v2926_v23 = vrot.slane %v2925_v29, 4  ;;  %v2907_v22 = vsel %vm12491_vm3, %v2902_v54, %v2906_v26  ;;  %v15409_v29 = vld [vmem:[#allocation13_spill] sm:$0xff]  ;;  %v2976_v26 = vshll.u32 %v12374_v10, 16  ;;  %v15410_v10 = vld [vmem:[#allocation14_spill] sm:$0xff] }
 0x216   : > { %10923 = vmatmul.mubr.msk.bf16.gmra.mrb[56].mxu0 %vm740_vm4, %v14118_v15  ;;  %v2849_v15 = vsel %vm12491_vm3, %v2844_v37, %v14160_v1  ;;  %v2878_v1 = vrot.slane %v2877_v2, 4  ;;  %v12369_v37 = vld [vmem:[%s12459_s30 + $0x44] sm:$0x1]  ;;  %v2970_v2 = vshrl.u32 %v12371_v0, 16  ;;  %v2983_v54 = vrot.slane %v2981_v39, 4 }
 0x217   : > { %10926 = vmatprep.mubr.msk.bf16.mxu0 %vm740_vm4, %v14121_v11  ;;  %v14191_v11 = vcombine.low %v2825_v53, %v2835_v46  ;;  %v14197_v58 = vcombine.low %v2849_v15, %v2859_v62  ;;  %v2928_v53 = vshll.u32 %v12369_v37, 16  ;;  %v2873_v46 = vsel %vm12491_vm3, %v2868_v51, %v14170_v44 }
 0x218   : > { %v2883_v38 = vsel %vm12491_vm3, %v2878_v1, %v2882_v14  ;;  %v2935_v62 = vrot.slane %v2933_v49, 4  ;;  %v2948_v44 = vrot.slane %v2946_v18, 4  ;;  %v2959_v14 = vrot.slane %v2957_v33, 4  ;;  %v12372_v49 = vld [vmem:[%s12459_s30 + $0x50] sm:$0x1] }
 0x219   : > { %v2930_v15 = vrot.slane %v2928_v53, 5  ;;  %v14214_v34 = vcombine.low %v2873_v46, %v2883_v38  ;;  %v2968_v51 = vrot.slane %v2966_v13, 5  ;;  %v2972_v1 = vrot.slane %v2970_v2, 4 }
 0x21a   : > { %v2939_v50 = vor.u32 %v2938_v55, %v2935_v62  ;;  %v2949_v53 = vor.u32 %v2948_v44, %v2944_v6  ;;  %v2994_v18 = vshrl.u32 %v12373_v19, 16  ;;  %v14242_v33 = vcombine.low %v2897_v5, %v2907_v22  ;;  %v12375_v5 = vld [vmem:[%s12459_s30 + $0x68] sm:$0x1] }
 0x21b   : > { %v2931_v37 = vsel %vm12491_vm3, %v2926_v23, %v2930_v15  ;;  %v2973_v38 = vor.u32 %v2972_v1, %v2968_v51  ;;  %v2986_v45 = vrot.slane %v2984_v31, 5  ;;  %v2992_v15 = vrot.slane %v2990_v32, 5 }
 0x21c   : > { %v2940_v0 = vrot.slane %v2939_v50, 4  ;;  %v2950_v13 = vrot.slane %v2949_v53, 4  ;;  %v2996_v62 = vrot.slane %v2994_v18, 4  ;;  %v2978_v44 = vrot.slane %v2976_v26, 5  ;;  %v15411_v26 = vld [vmem:[#allocation15_spill] sm:$0xff] }
 0x21d   : > { %v2974_v55 = vrot.slane %v2973_v38, 4  ;;  %v2987_v1 = vor.u32 %v2986_v45, %v2983_v54  ;;  %v3000_v22 = vshll.u32 %v12375_v5, 16  ;;  %v15417_v45 = vld [vmem:[#allocation3_spill] sm:$0xff] }
 0x21e   : > { %10927 = vmatmul.mubr.msk.bf16.gmra.mrb[84].mxu0 %vm740_vm4, %v14128_v40  ;;  %v2960_v40 = vshll.u32 %v9619_v24, 16  ;;  %v2952_v24 = vshll.u32 %v12372_v49, 16  ;;  %v2997_v60 = vor.u32 %v2996_v62, %v2992_v15 }
 0x21f   : > { %10932 = vmatprep.mubr.msk.bf16.mxu0 %vm740_vm4, %v14191_v11 }
 0x220   : > { %v2962_v4 = vrot.slane %v2960_v40, 5  ;;  %v14244_v40 = vcombine.low %v2921_v57, %v2931_v37  ;;  %v2954_v2 = vrot.slane %v2952_v24, 5  ;;  %v2979_v37 = vsel %vm12491_vm3, %v2974_v55, %v2978_v44 }
 0x221   : > { %v2998_v49 = vrot.slane %v2997_v60, 4  ;;  %v3002_v24 = vrot.slane %v3000_v22, 5  ;;  %v9813_v60 = vld [vmem:[%s15271_s1 + $0xc] sm:$0x3] }
 0x222   : > { %v2963_v46 = vor.u32 %v2962_v4, %v2959_v14  ;;  %v2945_v14 = vsel %vm12491_vm3, %v2940_v0, %v2944_v6  ;;  %v2955_v4 = vsel %vm12491_vm3, %v2950_v13, %v2954_v2  ;;  %v2988_v6 = vrot.slane %v2987_v1, 4  ;;  %v15414_v0 = vld [vmem:[#allocation18_spill] sm:$0xff]  ;;  %v15416_v13 = vld [vmem:[#allocation20_spill] sm:$0xff]  ;;  %v14292_v2 = vpop.f32.mrb[13].mxu1 }
 0x223   : > { %v14259_v50 = vcombine.low %v2945_v14, %v2955_v4  ;;  %v10997_v54 = vpop.f32.mrb[14].mxu1  ;;  %v3955_v4 = vsel %vm789_vm0, %v14228_v47, 0 }
 0x224   : > { %v2964_v23 = vrot.slane %v2963_v46, 4 }
 0x226   : > { %10933 = vmatmul.mubr.msk.bf16.vlgmr.msra.gmra.mrb[0].mxu0 %vm740_vm4, %v14197_v58  ;;  %v2969_v57 = vsel %vm12491_vm3, %v2964_v23, %v2968_v51  ;;  %v3003_v51 = vsel %vm12491_vm3, %v2998_v49, %v3002_v24 }
 0x227   : > { %10965 = vmatpush3.bf16.msra.mxu0 %v15409_v29  ;;  %10936 = vmatprep.mubr.msk.bf16.mxu0 %vm740_vm4, %v14214_v34  ;;  %v14261_v53 = vcombine.low %v2969_v57, %v2979_v37  ;;  %v2993_v29 = vsel %vm12491_vm3, %v2988_v6, %v2992_v15  ;;  %v14296_v15 = vpop.f32.mrb[15].mxu1 }
 0x228   : > { %12253 = vmatprep.subr.msk.bf16.mxu0 %vm789_vm0, %v14228_v47  ;;  %v9657_v32 = vcombine.low %v2993_v29, %v3003_v51  ;;  %v14300_v62 = vpop.f32.mrb[16].mxu1 }
 0x229   : > { %v4189_v23 = vpop.f32.mrb[17].mxu1 }
 0x22a   : > { %v14302_v55 = vpop.f32.mrb[18].mxu1 }
 0x22b   : > { %v4191_v44 = vpop.f32.mrb[19].mxu1 }
 0x22c   : > { %v11064_v14 = vpop.f32.mrb[32].mxu1  ;;  %v15419_v44 = vld [vmem:[#allocation5_spill] sm:$0xff] }
 0x22d   : > { %v14306_v1 = vpop.f32.mrb[33].mxu1  ;;  %v15420_v14 = vld [vmem:[#allocation6_spill] sm:$0xff] }
 0x22e   : > { %10937 = vmatmul.mubr.msk.bf16.gmra.mrb[4].mxu0 %vm740_vm4, %v14242_v33  ;;  %v11065_v5 = vpop.f32.mrb[34].mxu1 }
 0x22f   : > { %10940 = vmatprep.mubr.msk.bf16.mxu0 %vm740_vm4, %v14244_v40  ;;  %v15422_v5 = vld [vmem:[#allocation8_spill] sm:$0xff] }
 0x236   : > { %10941 = vmatmul.mubr.msk.bf16.gmra.mrb[8].mxu0 %vm740_vm4, %v14259_v50 }
 0x237   : > { %10944 = vmatprep.mubr.msk.bf16.mxu0 %vm740_vm4, %v14261_v53 }
 0x239   : > { %v10832_v39 = vpop.f32.mrb[72].mxu0 }
 0x23a   : > { %v14272_v31 = vadd.f32 %v10832_v39, %v14100_v3  ;;  %v2064_v19 = vpop.f32.mrb[73].mxu0  ;;  %v15413_v3 = vld [vmem:[#allocation17_spill] sm:$0xff] }
 0x23b   : > { %v10833_v18 = vpop.f32.mrb[74].mxu0 }
 0x23c   : > { %v14275_v46 = vadd.f32 %v10833_v18, %v14105_v43  ;;  %v2066_v38 = vpop.f32.mrb[75].mxu0  ;;  %v15415_v43 = vld [vmem:[#allocation19_spill] sm:$0xff] }
 0x23e   : > { %10945 = vmatmul.mubr.msk.bf16.gmra.mrb[12].mxu0 %vm740_vm4, %v9657_v32 }
 0x23f   : > { %10948 = vmatprep.mubr.msk.bf16.mxu0 %vm740_vm4, %v15410_v10 }
 0x246   : > { %10949 = vmatmul.mubr.msk.bf16.gmra.mrb[16].mxu0 %vm740_vm4, %v15411_v26 }
 0x247   : > { %10952 = vmatprep.mubr.msk.bf16.mxu0 %vm740_vm4, %v15412_v27 }
 0x24e   : > { %10953 = vmatmul.mubr.msk.bf16.gmra.mrb[20].mxu0 %vm740_vm4, %v15413_v3 }
 0x24f   : > { %10956 = vmatprep.mubr.msk.bf16.mxu0 %vm740_vm4, %v15414_v0 }
 0x256   : > { %10957 = vmatmul.mubr.msk.bf16.gmra.mrb[24].mxu0 %vm740_vm4, %v15415_v43 }
 0x257   : > { %10960 = vmatprep.mubr.msk.bf16.mxu0 %vm740_vm4, %v15416_v13 }
 0x25e   : > { %10961 = vmatmul.mubr.msk.bf16.gmra.mrb[28].mxu0 %vm740_vm4, %v15417_v45  ;;  %v15418_v45 = vld [vmem:[#allocation4_spill] sm:$0xff] }
 0x25f   : > { %10966 = vmatprep.mubr.msk.bf16.mxu0 %vm740_vm4, %v14191_v11  ;;  %v14313_v11 = vpop.f32.mrb[35].mxu1 }
 0x260   : > { %v14317_v22 = vpop.f32.mrb[36].mxu1 }
 0x261   : > { %v4738_v47 = vpop.f32.mrb[37].mxu1 }
 0x262   : > { %v14320_v57 = vpop.f32.mrb[38].mxu1  ;;  %v15423_v47 = vld [vmem:[#allocation9_spill] sm:$0xff] }
 0x263   : > { %v4740_v37 = vpop.f32.mrb[39].mxu1 }
 0x264   : > { %v11132_v6 = vpop.f32.mrb[40].mxu1  ;;  %v15424_v37 = vld [vmem:[#allocation10_spill] sm:$0xff] }
 0x265   : > { %v14322_v49 = vpop.f32.mrb[41].mxu1  ;;  %v15425_v6 = vld [vmem:[#allocation11_spill] sm:$0xff] }
 0x266   : > { %10967 = vmatmul.mubr.msk.bf16.vlgmr.msra.gmra.mrb[88].mxu0 %vm740_vm4, %v14197_v58  ;;  %v11133_v24 = vpop.f32.mrb[42].mxu1 }
 0x267   : > { %10999 = vmatpush3.bf16.msra.mxu0 %v3955_v4  ;;  %10970 = vmatprep.mubr.msk.bf16.mxu0 %vm740_vm4, %v14214_v34  ;;  %v14326_v58 = vpop.f32.mrb[43].mxu1  ;;  %v15426_v24 = vld [vmem:[#allocation21_spill] sm:$0xff] }
 0x268   : > { %12255 = vmatprep.subr.msk.bf16.mxu0 %vm789_vm0, %v9813_v60  ;;  %v14330_v34 = vpop.f32.mrb[44].mxu1 }
 0x269   : > { %v5654_v29 = vpop.f32.mrb[45].mxu1 }
 0x26a   : > { %v14332_v39 = vpop.f32.mrb[46].mxu1  ;;  %v15427_v29 = vld [vmem:[#allocation12_spill] sm:$0xff] }
 0x26b   : > { %v5656_v18 = vpop.f32.mrb[47].mxu1 }
 0x26c   : > { %v11200_v26 = vpop.f32.mrb[48].mxu1  ;;  %v15430_v18 = vld [vmem:[#allocation24_spill] sm:$0xff] }
 0x26d   : > { %v15432_v26 = vld [vmem:[#allocation27_spill] sm:$0xff] }
 0x26e   : > { %10971 = vmatmul.mubr.msk.bf16.gmra.mrb[36].mxu0 %vm740_vm4, %v14242_v33  ;;  %v14337_v33 = vpop.f32.mrb[49].mxu1 }
 0x26f   : > { %10974 = vmatprep.mubr.msk.bf16.mxu0 %vm740_vm4, %v14244_v40  ;;  %v11201_v40 = vpop.f32.mrb[50].mxu1 }
 0x270   : > { %v14344_v0 = vpop.f32.mrb[51].mxu1 }
 0x271   : > { %v10860_v51 = vpop.f32.mrb[76].mxu0  ;;  %v14348_v43 = vpop.f32.mrb[52].mxu1 }
 0x272   : > { %v2174_v19 = vpop.f32.mrb[77].mxu0  ;;  %v15428_v51 = vld [vmem:[#allocation22_spill] sm:$0xff] }
 0x273   : > { %v14335_v38 = vadd.f32 %v2174_v19, %v14145_v12  ;;  %v10861_v10 = vpop.f32.mrb[78].mxu0  ;;  %v6314_v12 = vpop.f32.mrb[53].mxu1  ;;  %v15429_v19 = vld [vmem:[#allocation23_spill] sm:$0xff] }
 0x274   : > { %v2177_v27 = vpop.f32.mrb[79].mxu0  ;;  %v14350_v13 = vpop.f32.mrb[54].mxu1  ;;  %v15431_v10 = vld [vmem:[#allocation25_spill] sm:$0xff] }
 0x275   : > { %v14340_v3 = vadd.f32 %v2177_v27, %v14147_v16  ;;  %v6316_v54 = vpop.f32.mrb[55].mxu1  ;;  %v4504_v16 = vsel %vm789_vm0, %v9813_v60, 0  ;;  %v15421_v60 = vld [vmem:[#allocation7_spill] sm:$0xff] }
 0x276   : > { %10975 = vmatmul.mubr.msk.bf16.gmra.mrb[40].mxu0 %vm740_vm4, %v14259_v50  ;;  %v9911_v50 = vld [vmem:[%s15271_s1 + $0xe] sm:$0x3] }
 0x277   : > { %10978 = vmatprep.mubr.msk.bf16.mxu0 %vm740_vm4, %v14261_v53 }
 0x27e   : > { %10979 = vmatmul.mubr.msk.bf16.gmra.mrb[44].mxu0 %vm740_vm4, %v9657_v32 }
 0x27f   : > { %11000 = vmatprep.mubr.msk.bf16.mxu0 %vm740_vm4, %v15418_v45 }
 0x283   : > { %v11268_v23 = vpop.f32.mrb[56].mxu1 }
 0x284   : > { %v14361_v53 = vpop.f32.mrb[57].mxu1  ;;  %v15433_v23 = vld [vmem:[#allocation26_spill] sm:$0xff] }
 0x285   : > { %v11269_v32 = vpop.f32.mrb[58].mxu1 }
 0x286   : > { %11001 = vmatmul.mubr.msk.bf16.vlgmr.msra.gmra.mrb[0].mxu0 %vm740_vm4, %v15419_v44  ;;  %v14366_v4 = vpop.f32.mrb[59].mxu1  ;;  %v12376_v44 = vld [vmem:[%s12459_s30 + $0x18] sm:$0xff]   ;;  %v12377_v32 = vld [vmem:[%s12459_s30 + $0x24] sm:$0xff]  }
 0x287   : > { %11067 = vmatpush3.bf16.msra.mxu0 %v4504_v16  ;;  %11004 = vmatprep.mubr.msk.bf16.mxu0 %vm740_vm4, %v15420_v14  ;;  %v5420_v14 = vsel %vm789_vm0, %v9911_v50, 0 }
 0x288   : > { %12257 = vmatprep.subr.msk.bf16.mxu0 %vm789_vm0, %v9911_v50  ;;  %v12380_v50 = vld [vmem:[%s12459_s30 + $0x48] sm:$0xff]  }
 0x28e   : > { %11005 = vmatmul.mubr.msk.bf16.gmra.mrb[4].mxu0 %vm740_vm4, %v15421_v60  ;;  %v12379_v60 = vld [vmem:[%s12459_s30 + $0x3c] sm:$0xff]  }
 0x28f   : > { %11008 = vmatprep.mubr.msk.bf16.mxu0 %vm740_vm4, %v15422_v5  ;;  %v12381_v5 = vld [vmem:[%s12459_s30 + $0x54] sm:$0xff]  }
 0x296   : > { %11009 = vmatmul.mubr.msk.bf16.gmra.mrb[8].mxu0 %vm740_vm4, %v15423_v47  ;;  %v12382_v47 = vld [vmem:[%s12459_s30 + $0x60] sm:$0xff]  }
 0x297   : > { %11012 = vmatprep.mubr.msk.bf16.mxu0 %vm740_vm4, %v15424_v37 }
 0x29e   : > { %11013 = vmatmul.mubr.msk.bf16.gmra.mrb[12].mxu0 %vm740_vm4, %v15425_v6 }
 0x29f   : > { %11016 = vmatprep.mubr.msk.bf16.mxu0 %vm740_vm4, %v15426_v24 }
 0x2a6   : > { %11017 = vmatmul.mubr.msk.bf16.gmra.mrb[16].mxu0 %vm740_vm4, %v15427_v29 }
 0x2a7   : > { %11020 = vmatprep.mubr.msk.bf16.mxu0 %vm740_vm4, %v15428_v51  ;;  %v12383_v51 = vld [vmem:[%s12459_s30 + $0x6c] sm:$0xff]  }
 0x2ae   : > { %11021 = vmatmul.mubr.msk.bf16.gmra.mrb[20].mxu0 %vm740_vm4, %v15429_v19  ;;  %v12384_v19 = vld [vmem:[%s12459_s30 + $0x78] sm:$0xff]  }
 0x2af   : > { %11024 = vmatprep.mubr.msk.bf16.mxu0 %vm740_vm4, %v15430_v18 }
 0x2b6   : > { %11025 = vmatmul.mubr.msk.bf16.gmra.mrb[24].mxu0 %vm740_vm4, %v15431_v10 }
 0x2b7   : > { %11028 = vmatprep.mubr.msk.bf16.mxu0 %vm740_vm4, %v15432_v26 }
 0x2b9   : > { %v10900_v27 = vpop.f32.mrb[80].mxu0 }
 0x2ba   : > { %v14393_v40 = vadd.f32 %v10900_v27, %v14272_v31  ;;  %v2613_v12 = vpop.f32.mrb[81].mxu0  ;;  %v14406_v31 = vld [vmem:[%s15271_s1 + $0x10] sm:$0x3] }
 0x2bb   : > { %v10901_v54 = vpop.f32.mrb[82].mxu0  ;;  %v12385_v12 = vld [vmem:[%s12459_s30 + $0x84] sm:$0xff]  }
 0x2bc   : > { %v14396_v45 = vadd.f32 %v10901_v54, %v14275_v46  ;;  %v2615_v16 = vpop.f32.mrb[83].mxu0  ;;  %v12378_v46 = vld [vmem:[%s12459_s30 + $0x30] sm:$0xff]  }
 0x2bd   : > { %v12386_v54 = vld [vmem:[%s12459_s30 + $0x90] sm:$0xff]  }
 0x2be   : > { %11029 = vmatmul.mubr.msk.bf16.gmra.mrb[28].mxu0 %vm740_vm4, %v15433_v23 }
 0x2bf   : > { %11068 = vmatprep.mubr.msk.bf16.mxu0 %vm740_vm4, %v12376_v44 }
 0x2c6   : > { %11069 = vmatmul.mubr.msk.bf16.vlgmr.msra.gmra.mrb[0].mxu0 %vm740_vm4, %v12377_v32  ;;  %v12387_v32 = vld [vmem:[%s12459_s30 + $0x9c] sm:$0xff]  }
 0x2c7   : > { %11135 = vmatpush3.bf16.msra.mxu0 %v5420_v14  ;;  %11072 = vmatprep.mubr.msk.bf16.mxu0 %vm740_vm4, %v12378_v46  ;;  %v12388_v46 = vld [vmem:[%s12459_s30 + $0xa8] sm:$0xff]  }
 0x2c8   : > { %12259 = vmatprep.subr.msk.bf16.mxu0 %vm789_vm0, %v14406_v31 }
 0x2ce   : > { %11073 = vmatmul.mubr.msk.bf16.gmra.mrb[4].mxu0 %vm740_vm4, %v12379_v60 }
 0x2cf   : > { %11076 = vmatprep.mubr.msk.bf16.mxu0 %vm740_vm4, %v12380_v50 }
 0x2d6   : > { %11077 = vmatmul.mubr.msk.bf16.gmra.mrb[8].mxu0 %vm740_vm4, %v12381_v5 }
 0x2d7   : > { %11080 = vmatprep.mubr.msk.bf16.mxu0 %vm740_vm4, %v12382_v47 }
 0x2d9   : > { %v14422_v37 = vpop.f32.mrb[48].mxu0 }
 0x2da   : > { %15434 = vst [vmem:[#allocation38_spill] sm:$0xff] %v14422_v37  ;;  %v14424_v6 = vpop.f32.mrb[49].mxu0 }
 0x2db   : > { %15435 = vst [vmem:[#allocation39_spill] sm:$0xff] %v14424_v6  ;;  %v14426_v24 = vpop.f32.mrb[50].mxu0 }
 0x2dc   : > { %15436 = vst [vmem:[#allocation28_spill] sm:$0xff] %v14426_v24  ;;  %v14428_v29 = vpop.f32.mrb[51].mxu0 }
 0x2dd   : > { %15437 = vst [vmem:[#allocation30_spill] sm:$0xff] %v14428_v29 }
 0x2de   : > { %11081 = vmatmul.mubr.msk.bf16.gmra.mrb[12].mxu0 %vm740_vm4, %v12383_v51 }
 0x2df   : > { %11084 = vmatprep.mubr.msk.bf16.mxu0 %vm740_vm4, %v12384_v19 }
 0x2e1   : > { %v14434_v18 = vpop.f32.mrb[52].mxu0 }
 0x2e2   : > { %15438 = vst [vmem:[#allocation41_spill] sm:$0xff] %v14434_v18  ;;  %v14436_v10 = vpop.f32.mrb[53].mxu0 }
 0x2e3   : > { %15439 = vst [vmem:[#allocation45_spill] sm:$0xff] %v14436_v10  ;;  %v14438_v26 = vpop.f32.mrb[54].mxu0 }
 0x2e4   : > { %15440 = vst [vmem:[#allocation13_spill] sm:$0xff] %v14438_v26  ;;  %v14440_v27 = vpop.f32.mrb[55].mxu0 }
 0x2e5   : > { %15441 = vst [vmem:[#allocation14_spill] sm:$0xff] %v14440_v27 }
 0x2e6   : > { %11085 = vmatmul.mubr.msk.bf16.gmra.mrb[16].mxu0 %vm740_vm4, %v12385_v12 }
 0x2e7   : > { %11088 = vmatprep.mubr.msk.bf16.mxu0 %vm740_vm4, %v12386_v54  ;;  %v12389_v54 = vld [vmem:[%s12459_s30 + $0xb4] sm:$0xff]  }
 0x2e9   : > { %v14446_v16 = vpop.f32.mrb[56].mxu0 }
 0x2ea   : > { %15442 = vst [vmem:[#allocation15_spill] sm:$0xff] %v14446_v16  ;;  %v14448_v23 = vpop.f32.mrb[57].mxu0 }
 0x2eb   : > { %15443 = vst [vmem:[#allocation16_spill] sm:$0xff] %v14448_v23  ;;  %v14450_v44 = vpop.f32.mrb[58].mxu0 }
 0x2ec   : > { %15444 = vst [vmem:[#allocation17_spill] sm:$0xff] %v14450_v44  ;;  %v14452_v14 = vpop.f32.mrb[59].mxu0  ;;  %v12390_v44 = vld [vmem:[%s12459_s30 + $0xc0] sm:$0xff]  }
 0x2ed   : > { %15445 = vst [vmem:[#allocation18_spill] sm:$0xff] %v14452_v14 }
 0x2ee   : > { %11089 = vmatmul.mubr.msk.bf16.gmra.mrb[20].mxu0 %vm740_vm4, %v12387_v32 }
 0x2ef   : > { %11092 = vmatprep.mubr.msk.bf16.mxu0 %vm740_vm4, %v12388_v46 }
 0x2f1   : > { %v10928_v60 = vpop.f32.mrb[84].mxu0 }
 0x2f2   : > { %v2723_v50 = vpop.f32.mrb[85].mxu0 }
 0x2f3   : > { %v2762_v5 = vadd.f32 %v2723_v50, %v14335_v38  ;;  %v10929_v47 = vpop.f32.mrb[86].mxu0 }
 0x2f4   : > { %v2726_v51 = vpop.f32.mrb[87].mxu0  ;;  %v15454_v47 = vld [vmem:[#allocation40_spill] sm:$0xff] }
 0x2f5   : > { %v3678_v19 = vadd.f32 %v14292_v2, %v2762_v5  ;;  %v2763_v12 = vadd.f32 %v2726_v51, %v14340_v3  ;;  %v12391_v5 = vld [vmem:[%s12459_s30 + $0xcc] sm:$0xff]  }
 0x2f6   : > { %11093 = vmatmul.mubr.msk.bf16.gmra.mrb[24].mxu0 %vm740_vm4, %v12389_v54  ;;  %v15455_v51 = vld [vmem:[#allocation42_spill] sm:$0xff] }
 0x2f7   : > { %v3679_v14 = vadd.f32 %v14296_v15, %v2763_v12  ;;  %v4338_v32 = vadd.f32 %v14306_v1, %v3678_v19  ;;  %11096 = vmatprep.mubr.msk.bf16.mxu0 %vm740_vm4, %v12390_v44  ;;  %v6673_v15 = vld [vmem:[%s15273_s3] sm:$0xf]  ;;  %v15451_v44 = vld [vmem:[#allocation35_spill] sm:$0xff]  ;;  %v15457_v12 = vld [vmem:[#allocation44_spill] sm:$0xff] }
 0x2f8   : > { %12261 = vmatprep.subr.msk.bf16.mxu1 %vm6722_vm8, %v6673_v15  ;;  %v15456_v19 = vld [vmem:[#allocation43_spill] sm:$0xff]  ;;  %v15458_v54 = vld [vmem:[#allocation46_spill] sm:$0xff] }
 0x2f9   : > { %v4887_v46 = vadd.f32 %v14322_v49, %v4338_v32  ;;  %v4339_v38 = vadd.f32 %v14313_v11, %v3679_v14  ;;  %v15446_v11 = vld [vmem:[#allocation29_spill] sm:$0xff]  ;;  %v6724_v49 = vsel %vm6722_vm8, %v6673_v15, 0  ;;  %v15452_v14 = vld [vmem:[#allocation36_spill] sm:$0xff] }
 0x2fa   : > { %11271 = vmatpush3.bf16.msra.mxu1 %v6724_v49 }
 0x2fb   : > { %v5803_v60 = vadd.f32 %v14337_v33, %v4887_v46  ;;  %v4888_v2 = vadd.f32 %v14326_v58, %v4339_v38  ;;  %v6080_v58 = vsel %vm789_vm0, %v14406_v31, 0  ;;  %v15447_v33 = vld [vmem:[#allocation31_spill] sm:$0xff]  ;;  %v15453_v31 = vld [vmem:[#allocation37_spill] sm:$0xff] }
 0x2fd   : > { %v5804_v3 = vadd.f32 %v14344_v0, %v4888_v2  ;;  %v14473_v50 = vadd.f32 %v14361_v53, %v5803_v60  ;;  %v15448_v0 = vld [vmem:[#allocation32_spill] sm:$0xff]  ;;  %v15449_v53 = vld [vmem:[#allocation33_spill] sm:$0xff] }
 0x2fe   : > { %11097 = vmatmul.mubr.msk.bf16.gmra.mrb[28].mxu0 %vm740_vm4, %v12391_v5 }
 0x2ff   : > { %v14481_v1 = vadd.f32 %v14366_v4, %v5804_v3  ;;  %11136 = vmatprep.mubr.msk.bf16.mxu0 %vm740_vm4, %v15446_v11  ;;  %v15450_v4 = vld [vmem:[#allocation34_spill] sm:$0xff] }
 0x306   : > { %11137 = vmatmul.mubr.msk.bf16.vlgmr.msra.gmra.mrb[0].mxu0 %vm740_vm4, %v15447_v33 }
 0x307   : > { %11203 = vmatpush3.bf16.msra.mxu0 %v6080_v58  ;;  %11140 = vmatprep.mubr.msk.bf16.mxu0 %vm740_vm4, %v15448_v0 }
 0x30e   : > { %11141 = vmatmul.mubr.msk.bf16.gmra.mrb[4].mxu0 %vm740_vm4, %v15449_v53 }
 0x30f   : > { %11144 = vmatprep.mubr.msk.bf16.mxu0 %vm740_vm4, %v15450_v4 }
 0x316   : > { %11145 = vmatmul.mubr.msk.bf16.gmra.mrb[8].mxu0 %vm740_vm4, %v15451_v44 }
 0x317   : > { %11148 = vmatprep.mubr.msk.bf16.mxu0 %vm740_vm4, %v15452_v14 }
 0x31e   : > { %11149 = vmatmul.mubr.msk.bf16.gmra.mrb[12].mxu0 %vm740_vm4, %v15453_v31 }
 0x31f   : > { %11152 = vmatprep.mubr.msk.bf16.mxu0 %vm740_vm4, %v15454_v47 }
 0x326   : > { %11153 = vmatmul.mubr.msk.bf16.gmra.mrb[16].mxu0 %vm740_vm4, %v15455_v51 }
 0x327   : > { %11156 = vmatprep.mubr.msk.bf16.mxu0 %vm740_vm4, %v15456_v19 }
 0x32e   : > { %11157 = vmatmul.mubr.msk.bf16.gmra.mrb[20].mxu0 %vm740_vm4, %v15457_v12 }
 0x32f   : > { %11160 = vmatprep.mubr.msk.bf16.mxu0 %vm740_vm4, %v15458_v54 }
 0x336   : > { %11161 = vmatmul.mubr.msk.bf16.gmra.mrb[24].mxu0 %vm740_vm4, %v13833_v30 }
 0x337   : > { %11164 = vmatprep.mubr.msk.bf16.mxu0 %vm740_vm4, %v13855_v56 }
 0x339   : > { %v10968_v32 = vpop.f32.mrb[88].mxu0 }
 0x33a   : > { %v3652_v46 = vadd.f32 %v10968_v32, %v14393_v40  ;;  %v3529_v38 = vpop.f32.mrb[89].mxu0 }
 0x33b   : > { %v10969_v60 = vpop.f32.mrb[90].mxu0 }
 0x33c   : > { %v4312_v2 = vadd.f32 %v14300_v62, %v3652_v46  ;;  %v3653_v3 = vadd.f32 %v10969_v60, %v14396_v45  ;;  %v3531_v5 = vpop.f32.mrb[91].mxu0 }
 0x33e   : > { %v4861_v15 = vadd.f32 %v14317_v22, %v4312_v2  ;;  %v4313_v11 = vadd.f32 %v14302_v55, %v3653_v3  ;;  %11165 = vmatmul.mubr.msk.bf16.gmra.mrb[28].mxu0 %vm740_vm4, %v13876_v9 }
 0x33f   : > { %11204 = vmatprep.mubr.msk.bf16.mxu0 %vm740_vm4, %v13873_v48 }
 0x340   : > { %v4862_v30 = vadd.f32 %v14320_v57, %v4313_v11  ;;  %v5777_v56 = vadd.f32 %v14330_v34, %v4861_v15 }
 0x341   : > { %v14528_v40 = vpop.f32.mrb[36].mxu0 }
 0x342   : > { %v14530_v62 = vpop.f32.mrb[37].mxu0  ;;  %v14533_v45 = vadd.f32 %v14348_v43, %v5777_v56  ;;  %v5778_v22 = vadd.f32 %v14332_v39, %v4862_v30 }
 0x343   : > { %v14536_v55 = vpop.f32.mrb[38].mxu0 }
 0x344   : > { %v14538_v49 = vpop.f32.mrb[39].mxu0  ;;  %v14541_v9 = vadd.f32 %v14350_v13, %v5778_v22 }
 0x345   : > { %15459 = vst [vmem:[#allocation19_spill] sm:$0xff] %v14538_v49 }
 0x346   : > { %11205 = vmatmul.mubr.msk.bf16.vlgmr.msra.gmra.mrb[0].mxu0 %vm740_vm4, %v13897_v20 }
 0x347   : > { %11208 = vmatprep.mubr.msk.bf16.mxu0 %vm740_vm4, %v13901_v63 }
 0x349   : > { %v14547_v48 = vpop.f32.mrb[40].mxu0 }
 0x34a   : > { %15460 = vst [vmem:[#allocation20_spill] sm:$0xff] %v14547_v48  ;;  %v14549_v57 = vpop.f32.mrb[41].mxu0 }
 0x34b   : > { %15461 = vst [vmem:[#allocation3_spill] sm:$0xff] %v14549_v57  ;;  %v14551_v34 = vpop.f32.mrb[42].mxu0 }
 0x34c   : > { %15462 = vst [vmem:[#allocation4_spill] sm:$0xff] %v14551_v34  ;;  %v14553_v39 = vpop.f32.mrb[43].mxu0 }
 0x34d   : > { %15463 = vst [vmem:[#allocation5_spill] sm:$0xff] %v14553_v39 }
 0x34e   : > { %11209 = vmatmul.mubr.msk.bf16.gmra.mrb[4].mxu0 %vm740_vm4, %v13932_v42  ;;  %v12400_v42 = vmov 0.0  }
 0x34f   : > { %11212 = vmatprep.mubr.msk.bf16.mxu0 %vm740_vm4, %v13938_v41  ;;  %6544 = vst.msk [vmem:[#allocation2 + $0x30] sm:$0xff] %vm6536_vm9, %v12400_v42  ;;  %6545 = vst.msk [vmem:[#allocation2 + $0x38] sm:$0xff] %vm6536_vm9, %v12400_v42 }
 0x350   : > { %6537 = vst.msk [vmem:[#allocation2] sm:$0xff] %vm6536_vm9, %v12400_v42  ;;  %6538 = vst.msk [vmem:[#allocation2 + $0x8] sm:$0xff] %vm6536_vm9, %v12400_v42 }
 0x351   : > { %v14559_v43 = vpop.f32.mrb[44].mxu0  ;;  %6541 = vst.msk [vmem:[#allocation2 + $0x18] sm:$0xff] %vm6536_vm9, %v12400_v42  ;;  %6542 = vst.msk [vmem:[#allocation2 + $0x20] sm:$0xff] %vm6536_vm9, %v12400_v42 }
 0x352   : > { %15464 = vst [vmem:[#allocation6_spill] sm:$0xff] %v14559_v43  ;;  %v14561_v20 = vpop.f32.mrb[45].mxu0  ;;  %6547 = vst.msk [vmem:[#allocation2 + $0x48] sm:$0xff] %vm6536_vm9, %v12400_v42 }
 0x353   : > { %15465 = vst [vmem:[#allocation7_spill] sm:$0xff] %v14561_v20  ;;  %v14563_v13 = vpop.f32.mrb[46].mxu0  ;;  %6548 = vst.msk [vmem:[#allocation2 + $0x50] sm:$0xff] %vm6536_vm9, %v12400_v42 }
 0x354   : > { %15466 = vst [vmem:[#allocation8_spill] sm:$0xff] %v14563_v13  ;;  %v14565_v63 = vpop.f32.mrb[47].mxu0  ;;  %6550 = vst.msk [vmem:[#allocation2 + $0x60] sm:$0xff] %vm6536_vm9, %v12400_v42 }
 0x355   : > { %15467 = vst [vmem:[#allocation9_spill] sm:$0xff] %v14565_v63  ;;  %6551 = vst.msk [vmem:[#allocation2 + $0x68] sm:$0xff] %vm6536_vm9, %v12400_v42 }
 0x356   : > { %11213 = vmatmul.mubr.msk.bf16.gmra.mrb[8].mxu0 %vm740_vm4, %v13934_v21  ;;  %6553 = vst.msk [vmem:[#allocation2 + $0x78] sm:$0xff] %vm6536_vm9, %v12400_v42  ;;  %6554 = vst.msk [vmem:[#allocation2 + $0x80] sm:$0xff] %vm6536_vm9, %v12400_v42 }
 0x357   : > { %11216 = vmatprep.mubr.msk.bf16.mxu0 %vm740_vm4, %v13964_v7  ;;  %6556 = vst.msk [vmem:[#allocation2 + $0x90] sm:$0xff] %vm6536_vm9, %v12400_v42  ;;  %6557 = vst.msk [vmem:[#allocation2 + $0x98] sm:$0xff] %vm6536_vm9, %v12400_v42  ;;  %v6625_v21 = vld [vmem:[#allocation2] sm:$0xff]  ;;  %v6626_v41 = vld [vmem:[#allocation2 + $0x8] sm:$0xff] }
 0x358   : > { %6559 = vst.msk [vmem:[#allocation2 + $0xa8] sm:$0xff] %vm6536_vm9, %v12400_v42  ;;  %6560 = vst.msk [vmem:[#allocation2 + $0xb0] sm:$0xff] %vm6536_vm9, %v12400_v42  ;;  %v10060_v7 = vld [vmem:[%s15273_s3 + $0x4] sm:$0xf] }
 0x359   : > { %6562 = vst.msk [vmem:[#allocation2 + $0xc0] sm:$0xff] %vm6536_vm9, %v12400_v42  ;;  %6563 = vst.msk [vmem:[#allocation2 + $0xc8] sm:$0xff] %vm6536_vm9, %v12400_v42  ;;  %12262 = vmatprep.subr.msk.bf16.mxu1 %vm6722_vm8, %v10060_v7  ;;  %v7010_v30 = vsel %vm6722_vm8, %v10060_v7, 0 }
 0x35a   : > { %6565 = vst.msk [vmem:[#allocation2 + $0xd8] sm:$0xff] %vm6536_vm9, %v12400_v42  ;;  %6566 = vst.msk [vmem:[#allocation2 + $0xe0] sm:$0xff] %vm6536_vm9, %v12400_v42 }
 0x35b   : > { %6568 = vst.msk [vmem:[#allocation2 + $0xf0] sm:$0xff] %vm6536_vm9, %v12400_v42  ;;  %6569 = vst.msk [vmem:[#allocation2 + $0xf8] sm:$0xff] %vm6536_vm9, %v12400_v42 }
 0x35c   : > { %6571 = vst.msk [vmem:[#allocation2 + $0x108] sm:$0xff] %vm6536_vm9, %v12400_v42  ;;  %6572 = vst.msk [vmem:[#allocation2 + $0x110] sm:$0xff] %vm6536_vm9, %v12400_v42 }
 0x35d   : > { %6574 = vst.msk [vmem:[#allocation2 + $0x120] sm:$0xff] %vm6536_vm9, %v12400_v42  ;;  %6575 = vst.msk [vmem:[#allocation2 + $0x128] sm:$0xff] %vm6536_vm9, %v12400_v42 }
 0x35e   : > { %11217 = vmatmul.mubr.msk.bf16.gmra.mrb[12].mxu0 %vm740_vm4, %v13960_v35  ;;  %6577 = vst.msk [vmem:[#allocation2 + $0x138] sm:$0xff] %vm6536_vm9, %v12400_v42  ;;  %6578 = vst.msk [vmem:[#allocation2 + $0x140] sm:$0xff] %vm6536_vm9, %v12400_v42  ;;  %v6657_v35 = vpack.c.bf16 %v6626_v41, %v6625_v21  ;;  %v14678_v41 = vld [vmem:[%s15273_s3 + $0x8] sm:$0xf] }
 0x35f   : > { %11220 = vmatprep.mubr.msk.bf16.mxu0 %vm740_vm4, %v13990_v8  ;;  %6580 = vst.msk [vmem:[#allocation2 + $0x150] sm:$0xff] %vm6536_vm9, %v12400_v42  ;;  %6581 = vst.msk [vmem:[#allocation2 + $0x158] sm:$0xff] %vm6536_vm9, %v12400_v42 }
 0x360   : > { %6583 = vst.msk [vmem:[#allocation2 + $0x168] sm:$0xff] %vm6536_vm9, %v12400_v42  ;;  %6584 = vst.msk [vmem:[#allocation2 + $0x170] sm:$0xff] %vm6536_vm9, %v12400_v42  ;;  %11272 = vmatprep.mubr.msk.bf16.mxu1 %vm6536_vm9, %v6657_v35 }
 0x361   : > { %6586 = vst.msk [vmem:[#allocation2 + $0x180] sm:$0xff] %vm6536_vm9, %v12400_v42  ;;  %6587 = vst.msk [vmem:[#allocation2 + $0x188] sm:$0xff] %vm6536_vm9, %v12400_v42 }
 0x362   : > { %6589 = vst.msk [vmem:[#allocation2 + $0x198] sm:$0xff] %vm6536_vm9, %v12400_v42  ;;  %6590 = vst.msk [vmem:[#allocation2 + $0x1a0] sm:$0xff] %vm6536_vm9, %v12400_v42 }
 0x363   : > { %6546 = vst.msk [vmem:[#allocation2 + $0x40] sm:$0x3] %vm6539_vm10, %v12400_v42  ;;  %6540 = vst.msk [vmem:[#allocation2 + $0x10] sm:$0x3] %vm6539_vm10, %v12400_v42 }
 0x364   : > { %6543 = vst.msk [vmem:[#allocation2 + $0x28] sm:$0x3] %vm6539_vm10, %v12400_v42  ;;  %6549 = vst.msk [vmem:[#allocation2 + $0x58] sm:$0x3] %vm6539_vm10, %v12400_v42 }
 0x365   : > { %6552 = vst.msk [vmem:[#allocation2 + $0x70] sm:$0x3] %vm6539_vm10, %v12400_v42  ;;  %6555 = vst.msk [vmem:[#allocation2 + $0x88] sm:$0x3] %vm6539_vm10, %v12400_v42 }
 0x366   : > { %11221 = vmatmul.mubr.msk.bf16.gmra.mrb[16].mxu0 %vm740_vm4, %v13986_v61  ;;  %6558 = vst.msk [vmem:[#allocation2 + $0xa0] sm:$0x3] %vm6539_vm10, %v12400_v42  ;;  %6561 = vst.msk [vmem:[#allocation2 + $0xb8] sm:$0x3] %vm6539_vm10, %v12400_v42  ;;  %v14651_v61 = vld [vmem:[%s15272_s2] ss:$0 sm:$0xff] }
 0x367   : > { %11224 = vmatprep.mubr.msk.bf16.mxu0 %vm740_vm4, %v14016_v52  ;;  %6564 = vst.msk [vmem:[#allocation2 + $0xd0] sm:$0x3] %vm6539_vm10, %v12400_v42  ;;  %6567 = vst.msk [vmem:[#allocation2 + $0xe8] sm:$0x3] %vm6539_vm10, %v12400_v42 }
 0x368   : > { %6570 = vst.msk [vmem:[#allocation2 + $0x100] sm:$0x3] %vm6539_vm10, %v12400_v42  ;;  %6573 = vst.msk [vmem:[#allocation2 + $0x118] sm:$0x3] %vm6539_vm10, %v12400_v42 }
 0x369   : > { %6576 = vst.msk [vmem:[#allocation2 + $0x130] sm:$0x3] %vm6539_vm10, %v12400_v42  ;;  %6579 = vst.msk [vmem:[#allocation2 + $0x148] sm:$0x3] %vm6539_vm10, %v12400_v42 }
 0x36a   : > { %6582 = vst.msk [vmem:[#allocation2 + $0x160] sm:$0x3] %vm6539_vm10, %v12400_v42  ;;  %6585 = vst.msk [vmem:[#allocation2 + $0x178] sm:$0x3] %vm6539_vm10, %v12400_v42 }
 0x36b   : > { %6588 = vst.msk [vmem:[#allocation2 + $0x190] sm:$0x3] %vm6539_vm10, %v12400_v42  ;;  %6591 = vst.msk [vmem:[#allocation2 + $0x1a8] sm:$0x3] %vm6539_vm10, %v12400_v42 }
 0x36e   : > { %11225 = vmatmul.mubr.msk.bf16.gmra.mrb[20].mxu0 %vm740_vm4, %v14012_v25 }
 0x36f   : > { %11228 = vmatprep.mubr.msk.bf16.mxu0 %vm740_vm4, %v14035_v36 }
 0x376   : > { %11229 = vmatmul.mubr.msk.bf16.gmra.mrb[24].mxu0 %vm740_vm4, %v14043_v59 }
 0x377   : > { %11232 = vmatprep.mubr.msk.bf16.mxu0 %vm740_vm4, %v14079_v28 }
 0x37e   : > { %11233 = vmatmul.mubr.msk.bf16.gmra.mrb[28].mxu0 %vm740_vm4, %v14083_v17 }
 0x419   : > { %v11206_v8 = vpop.f32.mrb[0].mxu0 }
 0x41a   : > { %v6474_v25 = vadd.f32 %v11206_v8, %v14651_v61  ;;  %v6116_v52 = vpop.f32.mrb[1].mxu0 }
 0x41b   : > { %v6472_v36 = vadd.f32 %v14651_v61, %v6116_v52  ;;  %v11207_v59 = vpop.f32.mrb[2].mxu0 }
 0x41c   : > { %v6506_v28 = vmax.f32 %v6474_v25, 0.0  ;;  %v6475_v17 = vadd.f32 %v11207_v59, %v14651_v61  ;;  %v6119_v58 = vpop.f32.mrb[3].mxu0 }
 0x41d   : > { %v6504_v33 = vmax.f32 %v6472_v36, 0.0  ;;  %v6473_v0 = vadd.f32 %v14651_v61, %v6119_v58 }
 0x41e   : > { %6595 = vst.msk [vmem:[#allocation2 + $0x31] sm:$0xff] %vm6536_vm9, %v6506_v28  ;;  %v6507_v53 = vmax.f32 %v6475_v17, 0.0 }
 0x41f   : > { %6593 = vst.msk [vmem:[#allocation2 + $0x19] sm:$0xff] %vm6536_vm9, %v6504_v33  ;;  %v6505_v4 = vmax.f32 %v6473_v0, 0.0 }
 0x420   : > { %6596 = vst.msk [vmem:[#allocation2 + $0x39] sm:$0xff] %vm6536_vm9, %v6507_v53 }
 0x421   : > { %6594 = vst.msk [vmem:[#allocation2 + $0x21] sm:$0xff] %vm6536_vm9, %v6505_v4  ;;  %v11210_v44 = vpop.f32.mrb[4].mxu0 }
 0x422   : > { %v6478_v14 = vadd.f32 %v11210_v44, %v14651_v61  ;;  %v6132_v31 = vpop.f32.mrb[5].mxu0 }
 0x423   : > { %v6476_v47 = vadd.f32 %v14651_v61, %v6132_v31  ;;  %v11211_v51 = vpop.f32.mrb[6].mxu0 }
 0x424   : > { %v6510_v19 = vmax.f32 %v6478_v14, 0.0  ;;  %v6479_v12 = vadd.f32 %v11211_v51, %v14651_v61  ;;  %v6135_v54 = vpop.f32.mrb[7].mxu0 }
 0x425   : > { %v6508_v32 = vmax.f32 %v6476_v47, 0.0  ;;  %v6477_v46 = vadd.f32 %v14651_v61, %v6135_v54  ;;  %v6629_v56 = vld [vmem:[#allocation2 + $0x30] sm:$0xff] }
 0x426   : > { %6599 = vst.msk [vmem:[#allocation2 + $0x61] sm:$0xff] %vm6536_vm9, %v6510_v19  ;;  %v6511_v38 = vmax.f32 %v6479_v12, 0.0  ;;  %v6627_v3 = vld [vmem:[#allocation2 + $0x18] sm:$0xff] }
 0x427   : > { %6597 = vst.msk [vmem:[#allocation2 + $0x49] sm:$0xff] %vm6536_vm9, %v6508_v32  ;;  %v6509_v60 = vmax.f32 %v6477_v46, 0.0  ;;  %v6630_v2 = vld [vmem:[#allocation2 + $0x38] sm:$0xff] }
 0x428   : > { %6600 = vst.msk [vmem:[#allocation2 + $0x69] sm:$0xff] %vm6536_vm9, %v6511_v38  ;;  %v6628_v5 = vld [vmem:[#allocation2 + $0x20] sm:$0xff]  ;;  %v14673_v21 = vpack.c.bf16 %v6630_v2, %v6629_v56 }
 0x429   : > { %6598 = vst.msk [vmem:[#allocation2 + $0x51] sm:$0xff] %vm6536_vm9, %v6509_v60  ;;  %v11214_v15 = vpop.f32.mrb[8].mxu0  ;;  %v14669_v11 = vpack.c.bf16 %v6628_v5, %v6627_v3 }
 0x42a   : > { %v6482_v22 = vadd.f32 %v11214_v15, %v14651_v61  ;;  %v6148_v42 = vpop.f32.mrb[9].mxu0 }
 0x42b   : > { %v6480_v35 = vadd.f32 %v14651_v61, %v6148_v42  ;;  %v11215_v8 = vpop.f32.mrb[10].mxu0  ;;  %11273 = vmatmul.mubr.msk.bf16.vlgmr.msra.gmra.mrb[60].mxu1 %vm6536_vm9, %v14669_v11 }
 0x42c   : > { %v6514_v25 = vmax.f32 %v6482_v22, 0.0  ;;  %v6483_v7 = vadd.f32 %v11215_v8, %v14651_v61  ;;  %11305 = vmatpush3.bf16.msra.mxu1 %v7010_v30  ;;  %v6151_v52 = vpop.f32.mrb[11].mxu0  ;;  %11276 = vmatprep.mubr.msk.bf16.mxu1 %vm6536_vm9, %v14673_v21 }
 0x42d   : > { %v6512_v36 = vmax.f32 %v6480_v35, 0.0  ;;  %v6481_v59 = vadd.f32 %v14651_v61, %v6151_v52  ;;  %12263 = vmatprep.subr.msk.bf16.mxu1 %vm6722_vm8, %v14678_v41  ;;  %v6633_v44 = vld [vmem:[#allocation2 + $0x60] sm:$0xff] }
 0x42e   : > { %6603 = vst.msk [vmem:[#allocation2 + $0x91] sm:$0xff] %vm6536_vm9, %v6514_v25  ;;  %v6515_v28 = vmax.f32 %v6483_v7, 0.0  ;;  %v6631_v33 = vld [vmem:[#allocation2 + $0x48] sm:$0xff] }
 0x42f   : > { %6601 = vst.msk [vmem:[#allocation2 + $0x79] sm:$0xff] %vm6536_vm9, %v6512_v36  ;;  %v6513_v17 = vmax.f32 %v6481_v59, 0.0  ;;  %v6634_v58 = vld [vmem:[#allocation2 + $0x68] sm:$0xff] }
 0x430   : > { %6604 = vst.msk [vmem:[#allocation2 + $0x99] sm:$0xff] %vm6536_vm9, %v6515_v28  ;;  %v6632_v0 = vld [vmem:[#allocation2 + $0x50] sm:$0xff]  ;;  %v14696_v47 = vpack.c.bf16 %v6634_v58, %v6633_v44 }
 0x431   : > { %6602 = vst.msk [vmem:[#allocation2 + $0x81] sm:$0xff] %vm6536_vm9, %v6513_v17  ;;  %v11218_v53 = vpop.f32.mrb[12].mxu0  ;;  %v14693_v4 = vpack.c.bf16 %v6632_v0, %v6631_v33 }
 0x432   : > { %v6486_v14 = vadd.f32 %v11218_v53, %v14651_v61  ;;  %v6164_v31 = vpop.f32.mrb[13].mxu0 }
 0x433   : > { %v6484_v51 = vadd.f32 %v14651_v61, %v6164_v31  ;;  %v11219_v19 = vpop.f32.mrb[14].mxu0  ;;  %11277 = vmatmul.mubr.msk.bf16.gmra.mrb[20].mxu1 %vm6536_vm9, %v14693_v4 }
 0x434   : > { %v6518_v12 = vmax.f32 %v6486_v14, 0.0  ;;  %v6487_v54 = vadd.f32 %v11219_v19, %v14651_v61  ;;  %v6167_v32 = vpop.f32.mrb[15].mxu0  ;;  %11280 = vmatprep.mubr.msk.bf16.mxu1 %vm6536_vm9, %v14696_v47 }
 0x435   : > { %v6516_v46 = vmax.f32 %v6484_v51, 0.0  ;;  %v6485_v38 = vadd.f32 %v14651_v61, %v6167_v32  ;;  %v6637_v22 = vld [vmem:[#allocation2 + $0x90] sm:$0xff] }
 0x436   : > { %6607 = vst.msk [vmem:[#allocation2 + $0xc1] sm:$0xff] %vm6536_vm9, %v6518_v12  ;;  %v6519_v60 = vmax.f32 %v6487_v54, 0.0  ;;  %v6635_v5 = vld [vmem:[#allocation2 + $0x78] sm:$0xff] }
 0x437   : > { %6605 = vst.msk [vmem:[#allocation2 + $0xa9] sm:$0xff] %vm6536_vm9, %v6516_v46  ;;  %v6517_v2 = vmax.f32 %v6485_v38, 0.0  ;;  %v6638_v3 = vld [vmem:[#allocation2 + $0x98] sm:$0xff] }
 0x438   : > { %6608 = vst.msk [vmem:[#allocation2 + $0xc9] sm:$0xff] %vm6536_vm9, %v6519_v60  ;;  %v6636_v15 = vld [vmem:[#allocation2 + $0x80] sm:$0xff]  ;;  %v14712_v8 = vpack.c.bf16 %v6638_v3, %v6637_v22 }
 0x439   : > { %6606 = vst.msk [vmem:[#allocation2 + $0xb1] sm:$0xff] %vm6536_vm9, %v6517_v2  ;;  %v11222_v30 = vpop.f32.mrb[16].mxu0  ;;  %v14709_v56 = vpack.c.bf16 %v6636_v15, %v6635_v5 }
 0x43a   : > { %v6490_v42 = vadd.f32 %v11222_v30, %v14651_v61  ;;  %v6180_v35 = vpop.f32.mrb[17].mxu0 }
 0x43b   : > { %v6488_v25 = vadd.f32 %v14651_v61, %v6180_v35  ;;  %v11223_v7 = vpop.f32.mrb[18].mxu0  ;;  %11281 = vmatmul.mubr.msk.bf16.gmra.mrb[24].mxu1 %vm6536_vm9, %v14709_v56 }
 0x43c   : > { %v6522_v52 = vmax.f32 %v6490_v42, 0.0  ;;  %v6491_v36 = vadd.f32 %v11223_v7, %v14651_v61  ;;  %v6183_v59 = vpop.f32.mrb[19].mxu0  ;;  %11284 = vmatprep.mubr.msk.bf16.mxu1 %vm6536_vm9, %v14712_v8 }
 0x43d   : > { %v6520_v28 = vmax.f32 %v6488_v25, 0.0  ;;  %v6489_v17 = vadd.f32 %v14651_v61, %v6183_v59  ;;  %v6641_v51 = vld [vmem:[#allocation2 + $0xc0] sm:$0xff] }
 0x43e   : > { %6611 = vst.msk [vmem:[#allocation2 + $0xf1] sm:$0xff] %vm6536_vm9, %v6522_v52  ;;  %v6523_v58 = vmax.f32 %v6491_v36, 0.0  ;;  %v6639_v53 = vld [vmem:[#allocation2 + $0xa8] sm:$0xff] }
 0x43f   : > { %6609 = vst.msk [vmem:[#allocation2 + $0xd9] sm:$0xff] %vm6536_vm9, %v6520_v28  ;;  %v6521_v33 = vmax.f32 %v6489_v17, 0.0  ;;  %v6642_v0 = vld [vmem:[#allocation2 + $0xc8] sm:$0xff] }
 0x440   : > { %6612 = vst.msk [vmem:[#allocation2 + $0xf9] sm:$0xff] %vm6536_vm9, %v6523_v58  ;;  %v6640_v44 = vld [vmem:[#allocation2 + $0xb0] sm:$0xff]  ;;  %v14728_v54 = vpack.c.bf16 %v6642_v0, %v6641_v51 }
 0x441   : > { %6610 = vst.msk [vmem:[#allocation2 + $0xe1] sm:$0xff] %vm6536_vm9, %v6521_v33  ;;  %v11226_v14 = vpop.f32.mrb[20].mxu0  ;;  %v14725_v31 = vpack.c.bf16 %v6640_v44, %v6639_v53 }
 0x442   : > { %v6494_v19 = vadd.f32 %v11226_v14, %v14651_v61  ;;  %v6196_v12 = vpop.f32.mrb[21].mxu0 }
 0x443   : > { %v6492_v32 = vadd.f32 %v14651_v61, %v6196_v12  ;;  %v11227_v46 = vpop.f32.mrb[22].mxu0  ;;  %11285 = vmatmul.mubr.msk.bf16.gmra.mrb[28].mxu1 %vm6536_vm9, %v14725_v31 }
 0x444   : > { %v6526_v38 = vmax.f32 %v6494_v19, 0.0  ;;  %v6495_v60 = vadd.f32 %v11227_v46, %v14651_v61  ;;  %v6199_v2 = vpop.f32.mrb[23].mxu0  ;;  %11288 = vmatprep.mubr.msk.bf16.mxu1 %vm6536_vm9, %v14728_v54 }
 0x445   : > { %v6524_v3 = vmax.f32 %v6492_v32, 0.0  ;;  %v6493_v5 = vadd.f32 %v14651_v61, %v6199_v2  ;;  %v6645_v52 = vld [vmem:[#allocation2 + $0xf0] sm:$0xff] }
 0x446   : > { %6615 = vst.msk [vmem:[#allocation2 + $0x121] sm:$0xff] %vm6536_vm9, %v6526_v38  ;;  %v6527_v15 = vmax.f32 %v6495_v60, 0.0  ;;  %v6643_v42 = vld [vmem:[#allocation2 + $0xd8] sm:$0xff] }
 0x447   : > { %6613 = vst.msk [vmem:[#allocation2 + $0x109] sm:$0xff] %vm6536_vm9, %v6524_v3  ;;  %v6525_v30 = vmax.f32 %v6493_v5, 0.0  ;;  %v6646_v22 = vld [vmem:[#allocation2 + $0xf8] sm:$0xff] }
 0x448   : > { %6616 = vst.msk [vmem:[#allocation2 + $0x129] sm:$0xff] %vm6536_vm9, %v6527_v15  ;;  %v6644_v35 = vld [vmem:[#allocation2 + $0xe0] sm:$0xff]  ;;  %v14744_v28 = vpack.c.bf16 %v6646_v22, %v6645_v52 }
 0x449   : > { %6614 = vst.msk [vmem:[#allocation2 + $0x111] sm:$0xff] %vm6536_vm9, %v6525_v30  ;;  %v11230_v25 = vpop.f32.mrb[24].mxu0  ;;  %v14741_v7 = vpack.c.bf16 %v6644_v35, %v6643_v42 }
 0x44a   : > { %v6498_v36 = vadd.f32 %v11230_v25, %v14651_v61  ;;  %v6212_v59 = vpop.f32.mrb[25].mxu0 }
 0x44b   : > { %v6496_v17 = vadd.f32 %v14651_v61, %v6212_v59  ;;  %v11231_v58 = vpop.f32.mrb[26].mxu0  ;;  %11289 = vmatmul.mubr.msk.bf16.gmra.mrb[0].mxu1 %vm6536_vm9, %v14741_v7 }
 0x44c   : > { %v6530_v33 = vmax.f32 %v6498_v36, 0.0  ;;  %v6499_v0 = vadd.f32 %v11231_v58, %v14651_v61  ;;  %v6215_v53 = vpop.f32.mrb[27].mxu0  ;;  %11292 = vmatprep.mubr.msk.bf16.mxu1 %vm6536_vm9, %v14744_v28 }
 0x44d   : > { %v6528_v44 = vmax.f32 %v6496_v17, 0.0  ;;  %v6497_v14 = vadd.f32 %v14651_v61, %v6215_v53  ;;  %v6649_v2 = vld [vmem:[#allocation2 + $0x120] sm:$0xff] }
 0x44e   : > { %6619 = vst.msk [vmem:[#allocation2 + $0x151] sm:$0xff] %vm6536_vm9, %v6530_v33  ;;  %v6531_v51 = vmax.f32 %v6499_v0, 0.0  ;;  %v6647_v32 = vld [vmem:[#allocation2 + $0x108] sm:$0xff] }
 0x44f   : > { %6617 = vst.msk [vmem:[#allocation2 + $0x139] sm:$0xff] %vm6536_vm9, %v6528_v44  ;;  %v6529_v19 = vmax.f32 %v6497_v14, 0.0  ;;  %v6650_v12 = vld [vmem:[#allocation2 + $0x128] sm:$0xff] }
 0x450   : > { %6620 = vst.msk [vmem:[#allocation2 + $0x159] sm:$0xff] %vm6536_vm9, %v6531_v51  ;;  %v6648_v46 = vld [vmem:[#allocation2 + $0x110] sm:$0xff]  ;;  %v14760_v15 = vpack.c.bf16 %v6650_v12, %v6649_v2  ;;  %v6916_v2 = vld [vmem:[#allocation2 + $0x39] sm:$0xff] }
 0x451   : > { %6618 = vst.msk [vmem:[#allocation2 + $0x141] sm:$0xff] %vm6536_vm9, %v6529_v19  ;;  %v11234_v38 = vpop.f32.mrb[28].mxu0  ;;  %v14757_v60 = vpack.c.bf16 %v6648_v46, %v6647_v32  ;;  %v6912_v51 = vld [vmem:[#allocation2 + $0x9] sm:$0xff] }
 0x452   : > { %v6502_v3 = vadd.f32 %v11234_v38, %v14651_v61  ;;  %v6228_v5 = vpop.f32.mrb[29].mxu0  ;;  %v6914_v38 = vld [vmem:[#allocation2 + $0x21] sm:$0xff] }
 0x453   : > { %v6500_v30 = vadd.f32 %v14651_v61, %v6228_v5  ;;  %v11235_v22 = vpop.f32.mrb[30].mxu0  ;;  %11293 = vmatmul.mubr.msk.bf16.gmra.mrb[4].mxu1 %vm6536_vm9, %v14757_v60 }
 0x454   : > { %v6534_v42 = vmax.f32 %v6502_v3, 0.0  ;;  %v6503_v35 = vadd.f32 %v11235_v22, %v14651_v61  ;;  %v6231_v25 = vpop.f32.mrb[31].mxu0  ;;  %11296 = vmatprep.mubr.msk.bf16.mxu1 %vm6536_vm9, %v14760_v15  ;;  %v6913_v3 = vld [vmem:[#allocation2 + $0x19] sm:$0xff]  ;;  %v6915_v22 = vld [vmem:[#allocation2 + $0x31] sm:$0xff] }
 0x455   : > { %v6532_v52 = vmax.f32 %v6500_v30, 0.0  ;;  %v6501_v36 = vadd.f32 %v14651_v61, %v6231_v25  ;;  %v6653_v44 = vld [vmem:[#allocation2 + $0x150] sm:$0xff]  ;;  %v6911_v61 = vld [vmem:[#allocation2 + $0x1] sm:$0xff]  ;;  %v14786_v5 = vpack.c.bf16 %v6914_v38, %v6913_v3  ;;  %v7296_v30 = vsel %vm6722_vm8, %v14678_v41, 0 }
 0x456   : > { %6623 = vst.msk [vmem:[#allocation2 + $0x181] sm:$0xff] %vm6536_vm9, %v6534_v42  ;;  %v6535_v59 = vmax.f32 %v6503_v35, 0.0  ;;  %v6651_v33 = vld [vmem:[#allocation2 + $0x138] sm:$0xff]  ;;  %v6943_v32 = vpack.c.bf16 %v6912_v51, %v6911_v61  ;;  %v14790_v42 = vpack.c.bf16 %v6916_v2, %v6915_v22  ;;  %v14795_v35 = vld [vmem:[%s15273_s3 + $0xc] sm:$0xf]  ;;  %v6927_v2 = vld [vmem:[#allocation2 + $0xc1] sm:$0xff] }
 0x457   : > { %6621 = vst.msk [vmem:[#allocation2 + $0x169] sm:$0xff] %vm6536_vm9, %v6532_v52  ;;  %v6533_v17 = vmax.f32 %v6501_v36, 0.0  ;;  %v6654_v58 = vld [vmem:[#allocation2 + $0x158] sm:$0xff]  ;;  %v6920_v41 = vld [vmem:[#allocation2 + $0x69] sm:$0xff]  ;;  %v7582_v26 = vsel %vm6722_vm8, %v14795_v35, 0 }
 0x458   : > { %6624 = vst.msk [vmem:[#allocation2 + $0x189] sm:$0xff] %vm6536_vm9, %v6535_v59  ;;  %v6652_v0 = vld [vmem:[#allocation2 + $0x140] sm:$0xff]  ;;  %v14775_v14 = vpack.c.bf16 %v6654_v58, %v6653_v44  ;;  %v6918_v25 = vld [vmem:[#allocation2 + $0x51] sm:$0xff]  ;;  %v6917_v52 = vld [vmem:[#allocation2 + $0x49] sm:$0xff] }
 0x459   : > { %6622 = vst.msk [vmem:[#allocation2 + $0x171] sm:$0xff] %vm6536_vm9, %v6533_v17  ;;  %v14773_v53 = vpack.c.bf16 %v6652_v0, %v6651_v33  ;;  %v14803_v36 = vpack.c.bf16 %v6918_v25, %v6917_v52  ;;  %v6919_v59 = vld [vmem:[#allocation2 + $0x61] sm:$0xff]  ;;  %v6924_v33 = vld [vmem:[#allocation2 + $0x99] sm:$0xff]  ;;  %v6923_v61 = vld [vmem:[#allocation2 + $0x91] sm:$0xff] }
 0x45a   : > { %v14805_v17 = vpack.c.bf16 %v6920_v41, %v6919_v59  ;;  %v6922_v58 = vld [vmem:[#allocation2 + $0x81] sm:$0xff]  ;;  %v6921_v0 = vld [vmem:[#allocation2 + $0x79] sm:$0xff]  ;;  %v14813_v51 = vpack.c.bf16 %v6924_v33, %v6923_v61  ;;  %v6931_v52 = vld [vmem:[#allocation2 + $0xf1] sm:$0xff] }
 0x45b   : > { %11297 = vmatmul.mubr.msk.bf16.gmra.mrb[8].mxu1 %vm6536_vm9, %v14773_v53  ;;  %v14811_v44 = vpack.c.bf16 %v6922_v58, %v6921_v0  ;;  %v6932_v22 = vld [vmem:[#allocation2 + $0xf9] sm:$0xff]  ;;  %v6934_v58 = vld [vmem:[#allocation2 + $0x111] sm:$0xff]  ;;  %v6936_v33 = vld [vmem:[#allocation2 + $0x129] sm:$0xff] }
 0x45c   : > { %11300 = vmatprep.mubr.msk.bf16.mxu1 %vm6536_vm9, %v14775_v14  ;;  %v6929_v25 = vld [vmem:[#allocation2 + $0xd9] sm:$0xff]  ;;  %v14829_v59 = vpack.c.bf16 %v6932_v22, %v6931_v52  ;;  %v6933_v0 = vld [vmem:[#allocation2 + $0x109] sm:$0xff] }
 0x45d   : > { %v14835_v61 = vpack.c.bf16 %v6934_v58, %v6933_v0  ;;  %v7197_v58 = vld [vmem:[#allocation2 + $0x2] sm:$0xff] }
 0x45e   : > { %v6655_v19 = vld [vmem:[#allocation2 + $0x168] sm:$0xff] }
 0x460   : > { %v6656_v12 = vld [vmem:[#allocation2 + $0x170] sm:$0xff] }
 0x461   : > { %v14781_v46 = vpack.c.bf16 %v6656_v12, %v6655_v19  ;;  %v6926_v19 = vld [vmem:[#allocation2 + $0xb1] sm:$0xff]  ;;  %v6928_v12 = vld [vmem:[#allocation2 + $0xc9] sm:$0xff] }
 0x462   : > { %v14821_v3 = vpack.c.bf16 %v6928_v12, %v6927_v2  ;;  %v6940_v2 = vld [vmem:[#allocation2 + $0x159] sm:$0xff]  ;;  %v6942_v0 = vld [vmem:[#allocation2 + $0x171] sm:$0xff] }
 0x463   : > { %11301 = vmatmul.mubr.msk.bf16.gmra.mrb[64].mxu1 %vm6536_vm9, %v14781_v46 }
 0x464   : > { %11306 = vmatprep.mubr.msk.bf16.mxu1 %vm6536_vm9, %v6943_v32  ;;  %v6925_v32 = vld [vmem:[#allocation2 + $0xa9] sm:$0xff] }
 0x465   : > { %v14819_v38 = vpack.c.bf16 %v6926_v19, %v6925_v32  ;;  %v6935_v19 = vld [vmem:[#allocation2 + $0x121] sm:$0xff] }
 0x466   : > { %v14837_v12 = vpack.c.bf16 %v6936_v33, %v6935_v19  ;;  %v6938_v32 = vld [vmem:[#allocation2 + $0x141] sm:$0xff]  ;;  %v7198_v33 = vld [vmem:[#allocation2 + $0xa] sm:$0xff] }
 0x467   : > { %v6941_v19 = vld [vmem:[#allocation2 + $0x169] sm:$0xff]  ;;  %v7229_v23 = vpack.c.bf16 %v7198_v33, %v7197_v58  ;;  %v7204_v33 = vld [vmem:[#allocation2 + $0x52] sm:$0xff] }
 0x468   : > { %v14851_v16 = vpack.c.bf16 %v6942_v0, %v6941_v19  ;;  %v10111_v58 = vld [vmem:[%s15273_s3 + $0x10] sm:$0xf]  ;;  %v7205_v0 = vld [vmem:[#allocation2 + $0x62] sm:$0xff] }
 0x469   : > { %v7206_v19 = vld [vmem:[#allocation2 + $0x6a] sm:$0xff] }
 0x46b   : > { %11307 = vmatmul.mubr.msk.bf16.vlgmr.msra.gmra.mrb[68].mxu1 %vm6536_vm9, %v14786_v5 }
 0x46c   : > { %11339 = vmatpush3.bf16.msra.mxu1 %v7296_v30  ;;  %11310 = vmatprep.mubr.msk.bf16.mxu1 %vm6536_vm9, %v14790_v42  ;;  %v6930_v30 = vld [vmem:[#allocation2 + $0xe1] sm:$0xff] }
 0x46d   : > { %12264 = vmatprep.subr.msk.bf16.mxu1 %vm6722_vm8, %v14795_v35  ;;  %v14827_v41 = vpack.c.bf16 %v6930_v30, %v6929_v25  ;;  %v6937_v30 = vld [vmem:[#allocation2 + $0x139] sm:$0xff]  ;;  %v6939_v25 = vld [vmem:[#allocation2 + $0x151] sm:$0xff] }
 0x46e   : > { %v14843_v22 = vpack.c.bf16 %v6938_v32, %v6937_v30  ;;  %v14845_v52 = vpack.c.bf16 %v6940_v2, %v6939_v25  ;;  %v7199_v32 = vld [vmem:[#allocation2 + $0x1a] sm:$0xff]  ;;  %v7200_v2 = vld [vmem:[#allocation2 + $0x22] sm:$0xff]  ;;  %v7201_v30 = vld [vmem:[#allocation2 + $0x32] sm:$0xff] }
 0x46f   : > { %v7202_v25 = vld [vmem:[#allocation2 + $0x3a] sm:$0xff]  ;;  %v14856_v27 = vpack.c.bf16 %v7200_v2, %v7199_v32  ;;  %v14872_v32 = vpack.c.bf16 %v7206_v19, %v7205_v0  ;;  %v7208_v2 = vld [vmem:[#allocation2 + $0x82] sm:$0xff]  ;;  %v7214_v19 = vld [vmem:[#allocation2 + $0xca] sm:$0xff] }
 0x470   : > { %v14860_v10 = vpack.c.bf16 %v7202_v25, %v7201_v30  ;;  %v7209_v30 = vld [vmem:[#allocation2 + $0x92] sm:$0xff]  ;;  %v7210_v25 = vld [vmem:[#allocation2 + $0x9a] sm:$0xff]  ;;  %v7213_v0 = vld [vmem:[#allocation2 + $0xc2] sm:$0xff] }
 0x471   : > { %v14880_v29 = vpack.c.bf16 %v7210_v25, %v7209_v30  ;;  %v14888_v6 = vpack.c.bf16 %v7214_v19, %v7213_v0  ;;  %v7217_v30 = vld [vmem:[#allocation2 + $0xf2] sm:$0xff]  ;;  %v7218_v25 = vld [vmem:[#allocation2 + $0xfa] sm:$0xff]  ;;  %v7221_v0 = vld [vmem:[#allocation2 + $0x122] sm:$0xff] }
 0x472   : > { %v14896_v63 = vpack.c.bf16 %v7218_v25, %v7217_v30  ;;  %v7222_v19 = vld [vmem:[#allocation2 + $0x12a] sm:$0xff]  ;;  %v7225_v30 = vld [vmem:[#allocation2 + $0x152] sm:$0xff]  ;;  %v7226_v25 = vld [vmem:[#allocation2 + $0x15a] sm:$0xff] }
 0x473   : > { %11311 = vmatmul.mubr.msk.bf16.gmra.mrb[20].mxu1 %vm6536_vm9, %v14803_v36  ;;  %v14904_v20 = vpack.c.bf16 %v7222_v19, %v7221_v0  ;;  %v14912_v39 = vpack.c.bf16 %v7226_v25, %v7225_v30  ;;  %v7868_v19 = vsel %vm6722_vm8, %v10111_v58, 0 }
 0x474   : > { %11314 = vmatprep.mubr.msk.bf16.mxu1 %vm6536_vm9, %v14805_v17 }
 0x47b   : > { %11315 = vmatmul.mubr.msk.bf16.gmra.mrb[24].mxu1 %vm6536_vm9, %v14811_v44 }
 0x47c   : > { %11318 = vmatprep.mubr.msk.bf16.mxu1 %vm6536_vm9, %v14813_v51 }
 0x483   : > { %11319 = vmatmul.mubr.msk.bf16.gmra.mrb[28].mxu1 %vm6536_vm9, %v14819_v38 }
 0x484   : > { %11322 = vmatprep.mubr.msk.bf16.mxu1 %vm6536_vm9, %v14821_v3 }
 0x48b   : > { %11323 = vmatmul.mubr.msk.bf16.gmra.mrb[0].mxu1 %vm6536_vm9, %v14827_v41 }
 0x48c   : > { %11326 = vmatprep.mubr.msk.bf16.mxu1 %vm6536_vm9, %v14829_v59 }
 0x493   : > { %11327 = vmatmul.mubr.msk.bf16.gmra.mrb[4].mxu1 %vm6536_vm9, %v14835_v61 }
 0x494   : > { %11330 = vmatprep.mubr.msk.bf16.mxu1 %vm6536_vm9, %v14837_v12 }
 0x49b   : > { %11331 = vmatmul.mubr.msk.bf16.gmra.mrb[8].mxu1 %vm6536_vm9, %v14843_v22 }
 0x49c   : > { %11334 = vmatprep.mubr.msk.bf16.mxu1 %vm6536_vm9, %v14845_v52 }
 0x4a3   : > { %11335 = vmatmul.mubr.msk.bf16.gmra.mrb[72].mxu1 %vm6536_vm9, %v14851_v16 }
 0x4a4   : > { %11340 = vmatprep.mubr.msk.bf16.mxu1 %vm6536_vm9, %v7229_v23  ;;  %v7203_v23 = vld [vmem:[#allocation2 + $0x4a] sm:$0xff] }
 0x4a5   : > { %v14870_v35 = vpack.c.bf16 %v7204_v33, %v7203_v23  ;;  %v7211_v23 = vld [vmem:[#allocation2 + $0xaa] sm:$0xff]  ;;  %v7212_v33 = vld [vmem:[#allocation2 + $0xb2] sm:$0xff] }
 0x4a6   : > { %v14886_v24 = vpack.c.bf16 %v7212_v33, %v7211_v23  ;;  %v7219_v23 = vld [vmem:[#allocation2 + $0x10a] sm:$0xff]  ;;  %v7220_v33 = vld [vmem:[#allocation2 + $0x112] sm:$0xff] }
 0x4a7   : > { %v14902_v13 = vpack.c.bf16 %v7220_v33, %v7219_v23  ;;  %v7227_v23 = vld [vmem:[#allocation2 + $0x16a] sm:$0xff]  ;;  %v7228_v33 = vld [vmem:[#allocation2 + $0x172] sm:$0xff] }
 0x4a8   : > { %v14918_v0 = vpack.c.bf16 %v7228_v33, %v7227_v23 }
 0x4ab   : > { %11341 = vmatmul.mubr.msk.bf16.vlgmr.msra.gmra.mrb[76].mxu1 %vm6536_vm9, %v14856_v27 }
 0x4ac   : > { %11373 = vmatpush3.bf16.msra.mxu1 %v7582_v26  ;;  %11344 = vmatprep.mubr.msk.bf16.mxu1 %vm6536_vm9, %v14860_v10  ;;  %v7207_v26 = vld [vmem:[#allocation2 + $0x7a] sm:$0xff] }
 0x4ad   : > { %12265 = vmatprep.subr.msk.bf16.mxu1 %vm6722_vm8, %v10111_v58  ;;  %v14878_v18 = vpack.c.bf16 %v7208_v2, %v7207_v26  ;;  %v7215_v26 = vld [vmem:[#allocation2 + $0xda] sm:$0xff]  ;;  %v7216_v2 = vld [vmem:[#allocation2 + $0xe2] sm:$0xff] }
 0x4ae   : > { %v14894_v37 = vpack.c.bf16 %v7216_v2, %v7215_v26  ;;  %v7223_v26 = vld [vmem:[#allocation2 + $0x13a] sm:$0xff]  ;;  %v7224_v2 = vld [vmem:[#allocation2 + $0x142] sm:$0xff] }
 0x4af   : > { %v14910_v43 = vpack.c.bf16 %v7224_v2, %v7223_v26  ;;  %v10128_v26 = vld [vmem:[%s15273_s3 + $0x14] sm:$0xf] }
 0x4b3   : > { %11345 = vmatmul.mubr.msk.bf16.gmra.mrb[20].mxu1 %vm6536_vm9, %v14870_v35 }
 0x4b4   : > { %11348 = vmatprep.mubr.msk.bf16.mxu1 %vm6536_vm9, %v14872_v32 }
 0x4bb   : > { %11349 = vmatmul.mubr.msk.bf16.gmra.mrb[24].mxu1 %vm6536_vm9, %v14878_v18 }
 0x4bc   : > { %11352 = vmatprep.mubr.msk.bf16.mxu1 %vm6536_vm9, %v14880_v29 }
 0x4c3   : > { %11353 = vmatmul.mubr.msk.bf16.gmra.mrb[28].mxu1 %vm6536_vm9, %v14886_v24 }
 0x4c4   : > { %11356 = vmatprep.mubr.msk.bf16.mxu1 %vm6536_vm9, %v14888_v6 }
 0x4cb   : > { %11357 = vmatmul.mubr.msk.bf16.gmra.mrb[0].mxu1 %vm6536_vm9, %v14894_v37 }
 0x4cc   : > { %11360 = vmatprep.mubr.msk.bf16.mxu1 %vm6536_vm9, %v14896_v63 }
 0x4d3   : > { %11361 = vmatmul.mubr.msk.bf16.gmra.mrb[4].mxu1 %vm6536_vm9, %v14902_v13 }
 0x4d4   : > { %11364 = vmatprep.mubr.msk.bf16.mxu1 %vm6536_vm9, %v14904_v20 }
 0x4db   : > { %11365 = vmatmul.mubr.msk.bf16.gmra.mrb[8].mxu1 %vm6536_vm9, %v14910_v43 }
 0x4dc   : > { %11368 = vmatprep.mubr.msk.bf16.mxu1 %vm6536_vm9, %v14912_v39 }
 0x4e3   : > { %11369 = vmatmul.mubr.msk.bf16.gmra.mrb[80].mxu1 %vm6536_vm9, %v14918_v0 }
 0x4e4   : > { %11374 = vmatprep.mubr.msk.bf16.mxu1 %vm6536_vm9, %v14669_v11 }
 0x4eb   : > { %11375 = vmatmul.mubr.msk.bf16.vlgmr.msra.gmra.mrb[84].mxu1 %vm6536_vm9, %v14673_v21 }
 0x4ec   : > { %11407 = vmatpush3.bf16.msra.mxu1 %v7868_v19  ;;  %11378 = vmatprep.mubr.msk.bf16.mxu1 %vm6536_vm9, %v14693_v4  ;;  %v8154_v19 = vsel %vm6722_vm8, %v10128_v26, 0 }
 0x4ed   : > { %12266 = vmatprep.subr.msk.bf16.mxu1 %vm6722_vm8, %v10128_v26 }
 0x4f3   : > { %11379 = vmatmul.mubr.msk.bf16.gmra.mrb[20].mxu1 %vm6536_vm9, %v14696_v47 }
 0x4f4   : > { %11382 = vmatprep.mubr.msk.bf16.mxu1 %vm6536_vm9, %v14709_v56 }
 0x4fb   : > { %11383 = vmatmul.mubr.msk.bf16.gmra.mrb[24].mxu1 %vm6536_vm9, %v14712_v8 }
 0x4fc   : > { %11386 = vmatprep.mubr.msk.bf16.mxu1 %vm6536_vm9, %v14725_v31 }
 0x4fe   : > { %v11274_v11 = vpop.f32.mrb[60].mxu1 }
 0x4ff   : > { %v6883_v58 = vadd.f32 %v11274_v11, %v14533_v45  ;;  %v6760_v2 = vpop.f32.mrb[61].mxu1  ;;  %v7514_v45 = vld [vmem:[#allocation2 + $0x188] sm:$0xff]  ;;  %v10145_v11 = vld [vmem:[%s15273_s3 + $0x18] sm:$0xf] }
 0x500   : > { %v11275_v30 = vpop.f32.mrb[62].mxu1 }
 0x501   : > { %v6884_v25 = vadd.f32 %v11275_v30, %v14541_v9  ;;  %v6762_v23 = vpop.f32.mrb[63].mxu1  ;;  %v7513_v9 = vld [vmem:[#allocation2 + $0x180] sm:$0xff] }
 0x502   : > { %v14959_v33 = vpack.c.bf16 %v7514_v45, %v7513_v9 }
 0x503   : > { %11387 = vmatmul.mubr.msk.bf16.gmra.mrb[28].mxu1 %vm6536_vm9, %v14728_v54 }
 0x504   : > { %11390 = vmatprep.mubr.msk.bf16.mxu1 %vm6536_vm9, %v14741_v7 }
 0x50b   : > { %11391 = vmatmul.mubr.msk.bf16.gmra.mrb[0].mxu1 %vm6536_vm9, %v14744_v28 }
 0x50c   : > { %11394 = vmatprep.mubr.msk.bf16.mxu1 %vm6536_vm9, %v14757_v60 }
 0x513   : > { %11395 = vmatmul.mubr.msk.bf16.gmra.mrb[4].mxu1 %vm6536_vm9, %v14760_v15 }
 0x514   : > { %11398 = vmatprep.mubr.msk.bf16.mxu1 %vm6536_vm9, %v14773_v53 }
 0x51b   : > { %11399 = vmatmul.mubr.msk.bf16.gmra.mrb[8].mxu1 %vm6536_vm9, %v14775_v14 }
 0x51c   : > { %11402 = vmatprep.mubr.msk.bf16.mxu1 %vm6536_vm9, %v14781_v46 }
 0x523   : > { %11403 = vmatmul.mubr.msk.bf16.gmra.mrb[88].mxu1 %vm6536_vm9, %v14959_v33 }
 0x524   : > { %11408 = vmatprep.mubr.msk.bf16.mxu1 %vm6536_vm9, %v14786_v5 }
 0x52b   : > { %11409 = vmatmul.mubr.msk.bf16.vlgmr.msra.gmra.mrb[92].mxu1 %vm6536_vm9, %v14790_v42 }
 0x52c   : > { %11441 = vmatpush3.bf16.msra.mxu1 %v8154_v19  ;;  %11412 = vmatprep.mubr.msk.bf16.mxu1 %vm6536_vm9, %v14803_v36 }
 0x52d   : > { %12267 = vmatprep.subr.msk.bf16.mxu1 %vm6722_vm8, %v10145_v11 }
 0x533   : > { %11413 = vmatmul.mubr.msk.bf16.gmra.mrb[20].mxu1 %vm6536_vm9, %v14805_v17 }
 0x534   : > { %11416 = vmatprep.mubr.msk.bf16.mxu1 %vm6536_vm9, %v14811_v44 }
 0x536   : > { %v11302_v5 = vpop.f32.mrb[64].mxu1 }
 0x537   : > { %v6870_v26 = vpop.f32.mrb[65].mxu1 }
 0x538   : > { %v6909_v2 = vadd.f32 %v6870_v26, %v14473_v50  ;;  %v11303_v30 = vpop.f32.mrb[66].mxu1  ;;  %v7800_v50 = vld [vmem:[#allocation2 + $0x189] sm:$0xff] }
 0x539   : > { %v6873_v23 = vpop.f32.mrb[67].mxu1 }
 0x53a   : > { %v6910_v45 = vadd.f32 %v6873_v23, %v14481_v1  ;;  %v7799_v1 = vld [vmem:[#allocation2 + $0x181] sm:$0xff] }
 0x53b   : > { %11417 = vmatmul.mubr.msk.bf16.gmra.mrb[24].mxu1 %vm6536_vm9, %v14813_v51 }
 0x53c   : > { %11420 = vmatprep.mubr.msk.bf16.mxu1 %vm6536_vm9, %v14819_v38 }
 0x53e   : > { %v11308_v9 = vpop.f32.mrb[68].mxu1 }
 0x53f   : > { %v7169_v19 = vadd.f32 %v11308_v9, %v6883_v58  ;;  %v7046_v34 = vpop.f32.mrb[69].mxu1 }
 0x540   : > { %v11309_v57 = vpop.f32.mrb[70].mxu1  ;;  %v10162_v34 = vld [vmem:[%s15273_s3 + $0x1c] sm:$0xf] }
 0x541   : > { %v7170_v48 = vadd.f32 %v11309_v57, %v6884_v25  ;;  %v7048_v49 = vpop.f32.mrb[71].mxu1  ;;  %v8441_v57 = vsel %vm6722_vm8, %v10145_v11, 0 }
 0x542   : > { %v15000_v49 = vpack.c.bf16 %v7800_v50, %v7799_v1 }
 0x543   : > { %11421 = vmatmul.mubr.msk.bf16.gmra.mrb[28].mxu1 %vm6536_vm9, %v14821_v3 }
 0x544   : > { %11424 = vmatprep.mubr.msk.bf16.mxu1 %vm6536_vm9, %v14827_v41 }
 0x54b   : > { %11425 = vmatmul.mubr.msk.bf16.gmra.mrb[0].mxu1 %vm6536_vm9, %v14829_v59 }
 0x54c   : > { %11428 = vmatprep.mubr.msk.bf16.mxu1 %vm6536_vm9, %v14835_v61 }
 0x553   : > { %11429 = vmatmul.mubr.msk.bf16.gmra.mrb[4].mxu1 %vm6536_vm9, %v14837_v12 }
 0x554   : > { %11432 = vmatprep.mubr.msk.bf16.mxu1 %vm6536_vm9, %v14843_v22 }
 0x55b   : > { %11433 = vmatmul.mubr.msk.bf16.gmra.mrb[8].mxu1 %vm6536_vm9, %v14845_v52 }
 0x55c   : > { %11436 = vmatprep.mubr.msk.bf16.mxu1 %vm6536_vm9, %v14851_v16 }
 0x563   : > { %11437 = vmatmul.mubr.msk.bf16.gmra.mrb[96].mxu1 %vm6536_vm9, %v15000_v49 }
 0x564   : > { %11442 = vmatprep.mubr.msk.bf16.mxu1 %vm6536_vm9, %v14856_v27 }
 0x56b   : > { %11443 = vmatmul.mubr.msk.bf16.vlgmr.msra.gmra.mrb[100].mxu1 %vm6536_vm9, %v14860_v10 }
 0x56c   : > { %11475 = vmatpush3.bf16.msra.mxu1 %v8441_v57  ;;  %11446 = vmatprep.mubr.msk.bf16.mxu1 %vm6536_vm9, %v14870_v35 }
 0x56d   : > { %12268 = vmatprep.subr.msk.bf16.mxu1 %vm6722_vm8, %v10162_v34 }
 0x573   : > { %11447 = vmatmul.mubr.msk.bf16.gmra.mrb[20].mxu1 %vm6536_vm9, %v14872_v32 }
 0x574   : > { %11450 = vmatprep.mubr.msk.bf16.mxu1 %vm6536_vm9, %v14878_v18 }
 0x576   : > { %v11336_v27 = vpop.f32.mrb[72].mxu1 }
 0x577   : > { %v7156_v58 = vpop.f32.mrb[73].mxu1  ;;  %v10179_v27 = vld [vmem:[%s15273_s3 + $0x20] sm:$0xf] }
 0x578   : > { %v7195_v25 = vadd.f32 %v7156_v58, %v6909_v2  ;;  %v11337_v11 = vpop.f32.mrb[74].mxu1  ;;  %v8086_v2 = vld [vmem:[#allocation2 + $0x18a] sm:$0xff] }
 0x579   : > { %v7159_v5 = vpop.f32.mrb[75].mxu1 }
 0x57a   : > { %v7196_v26 = vadd.f32 %v7159_v5, %v6910_v45 }
 0x57b   : > { %11451 = vmatmul.mubr.msk.bf16.gmra.mrb[24].mxu1 %vm6536_vm9, %v14880_v29 }
 0x57c   : > { %11454 = vmatprep.mubr.msk.bf16.mxu1 %vm6536_vm9, %v14886_v24 }
 0x57e   : > { %v11342_v30 = vpop.f32.mrb[76].mxu1 }
 0x57f   : > { %v7455_v23 = vadd.f32 %v11342_v30, %v7169_v19  ;;  %v7332_v9 = vpop.f32.mrb[77].mxu1  ;;  %v8727_v19 = vsel %vm6722_vm8, %v10162_v34, 0 }
 0x580   : > { %v11343_v50 = vpop.f32.mrb[78].mxu1 }
 0x581   : > { %v7456_v1 = vadd.f32 %v11343_v50, %v7170_v48  ;;  %v7334_v57 = vpop.f32.mrb[79].mxu1  ;;  %v8085_v48 = vld [vmem:[#allocation2 + $0x182] sm:$0xff] }
 0x582   : > { %v15039_v45 = vpack.c.bf16 %v8086_v2, %v8085_v48 }
 0x583   : > { %11455 = vmatmul.mubr.msk.bf16.gmra.mrb[28].mxu1 %vm6536_vm9, %v14888_v6 }
 0x584   : > { %11458 = vmatprep.mubr.msk.bf16.mxu1 %vm6536_vm9, %v14894_v37 }
 0x58b   : > { %11459 = vmatmul.mubr.msk.bf16.gmra.mrb[0].mxu1 %vm6536_vm9, %v14896_v63 }
 0x58c   : > { %11462 = vmatprep.mubr.msk.bf16.mxu1 %vm6536_vm9, %v14902_v13 }
 0x593   : > { %11463 = vmatmul.mubr.msk.bf16.gmra.mrb[4].mxu1 %vm6536_vm9, %v14904_v20 }
 0x594   : > { %11466 = vmatprep.mubr.msk.bf16.mxu1 %vm6536_vm9, %v14910_v43 }
 0x59b   : > { %11467 = vmatmul.mubr.msk.bf16.gmra.mrb[8].mxu1 %vm6536_vm9, %v14912_v39 }
 0x59c   : > { %11470 = vmatprep.mubr.msk.bf16.mxu1 %vm6536_vm9, %v14918_v0 }
 0x5a3   : > { %11471 = vmatmul.mubr.msk.bf16.gmra.mrb[104].mxu1 %vm6536_vm9, %v15039_v45 }
 0x5a4   : > { %11476 = vmatprep.mubr.msk.bf16.mxu1 %vm6536_vm9, %v14673_v21 }
 0x5ab   : > { %11477 = vmatmul.mubr.msk.bf16.vlgmr.msra.gmra.mrb[108].mxu1 %vm6536_vm9, %v14693_v4 }
 0x5ac   : > { %11509 = vmatpush3.bf16.msra.mxu1 %v8727_v19  ;;  %11480 = vmatprep.mubr.msk.bf16.mxu1 %vm6536_vm9, %v14696_v47 }
 0x5ad   : > { %12269 = vmatprep.subr.msk.bf16.mxu1 %vm6722_vm8, %v10179_v27 }
 0x5b3   : > { %11481 = vmatmul.mubr.msk.bf16.gmra.mrb[20].mxu1 %vm6536_vm9, %v14709_v56 }
 0x5b4   : > { %11484 = vmatprep.mubr.msk.bf16.mxu1 %vm6536_vm9, %v14712_v8  ;;  %v8372_v8 = vld [vmem:[#allocation2 + $0x198] sm:$0xff] }
 0x5b6   : > { %v11370_v21 = vpop.f32.mrb[80].mxu1 }
 0x5b7   : > { %v7442_v34 = vpop.f32.mrb[81].mxu1 }
 0x5b8   : > { %v7481_v58 = vadd.f32 %v7442_v34, %v7195_v25  ;;  %v11371_v11 = vpop.f32.mrb[82].mxu1 }
 0x5b9   : > { %v7445_v5 = vpop.f32.mrb[83].mxu1 }
 0x5ba   : > { %v7482_v30 = vadd.f32 %v7445_v5, %v7196_v26 }
 0x5bb   : > { %11485 = vmatmul.mubr.msk.bf16.gmra.mrb[24].mxu1 %vm6536_vm9, %v14725_v31  ;;  %v8373_v31 = vld [vmem:[#allocation2 + $0x1a0] sm:$0xff] }
 0x5bc   : > { %11488 = vmatprep.mubr.msk.bf16.mxu1 %vm6536_vm9, %v14728_v54  ;;  %v8389_v54 = vpack.c.bf16 %v8373_v31, %v8372_v8 }
 0x5be   : > { %v11376_v4 = vpop.f32.mrb[84].mxu1 }
 0x5bf   : > { %v7741_v47 = vadd.f32 %v11376_v4, %v7455_v23  ;;  %v7618_v9 = vpop.f32.mrb[85].mxu1 }
 0x5c0   : > { %v11377_v50 = vpop.f32.mrb[86].mxu1 }
 0x5c1   : > { %v7742_v56 = vadd.f32 %v11377_v50, %v7456_v1  ;;  %v7620_v57 = vpop.f32.mrb[87].mxu1 }
 0x5c3   : > { %11489 = vmatmul.mubr.msk.bf16.gmra.mrb[28].mxu1 %vm6536_vm9, %v14741_v7  ;;  %v9013_v7 = vsel %vm6722_vm8, %v10179_v27, 0 }
 0x5c4   : > { %11492 = vmatprep.mubr.msk.bf16.mxu1 %vm6536_vm9, %v14744_v28 }
 0x5cb   : > { %11493 = vmatmul.mubr.msk.bf16.gmra.mrb[0].mxu1 %vm6536_vm9, %v14757_v60 }
 0x5cc   : > { %11496 = vmatprep.mubr.msk.bf16.mxu1 %vm6536_vm9, %v14760_v15 }
 0x5d3   : > { %11497 = vmatmul.mubr.msk.bf16.gmra.mrb[4].mxu1 %vm6536_vm9, %v14773_v53 }
 0x5d4   : > { %11500 = vmatprep.mubr.msk.bf16.mxu1 %vm6536_vm9, %v14775_v14 }
 0x5db   : > { %11501 = vmatmul.mubr.msk.bf16.gmra.mrb[8].mxu1 %vm6536_vm9, %v14781_v46 }
 0x5dc   : > { %11504 = vmatprep.mubr.msk.bf16.mxu1 %vm6536_vm9, %v14959_v33 }
 0x5e3   : > { %11505 = vmatmul.mubr.msk.bf16.gmra.mrb[112].mxu1 %vm6536_vm9, %v8389_v54 }
 0x5e4   : > { %11510 = vmatprep.mubr.msk.bf16.mxu1 %vm6536_vm9, %v14790_v42 }
 0x5eb   : > { %11511 = vmatmul.mubr.msk.bf16.vlgmr.msra.gmra.mrb[116].mxu1 %vm6536_vm9, %v14803_v36 }
 0x5ec   : > { %11543 = vmatpush3.bf16.msra.mxu1 %v9013_v7  ;;  %11514 = vmatprep.mubr.msk.bf16.mxu1 %vm6536_vm9, %v14805_v17 }
 0x5f3   : > { %11515 = vmatmul.mubr.msk.bf16.gmra.mrb[20].mxu1 %vm6536_vm9, %v14811_v44 }
 0x5f4   : > { %11518 = vmatprep.mubr.msk.bf16.mxu1 %vm6536_vm9, %v14813_v51  ;;  %v8658_v51 = vld [vmem:[#allocation2 + $0x199] sm:$0xff] }
 0x5f6   : > { %v11404_v28 = vpop.f32.mrb[88].mxu1 }
 0x5f7   : > { %v7728_v60 = vpop.f32.mrb[89].mxu1  ;;  %v15150_v28 = vld [vmem:[%s15275_s5] ss:$0 sm:$0xff] }
 0x5f8   : > { %v7767_v15 = vadd.f32 %v7728_v60, %v7481_v58  ;;  %v11405_v53 = vpop.f32.mrb[90].mxu1 }
 0x5f9   : > { %v7731_v14 = vpop.f32.mrb[91].mxu1 }
 0x5fa   : > { %v7768_v46 = vadd.f32 %v7731_v14, %v7482_v30 }
 0x5fb   : > { %11519 = vmatmul.mubr.msk.bf16.gmra.mrb[24].mxu1 %vm6536_vm9, %v14819_v38  ;;  %v8659_v38 = vld [vmem:[#allocation2 + $0x1a1] sm:$0xff] }
 0x5fc   : > { %11522 = vmatprep.mubr.msk.bf16.mxu1 %vm6536_vm9, %v14821_v3  ;;  %v8675_v3 = vpack.c.bf16 %v8659_v38, %v8658_v51 }
 0x5fe   : > { %v11410_v42 = vpop.f32.mrb[92].mxu1 }
 0x5ff   : > { %v8027_v36 = vadd.f32 %v11410_v42, %v7741_v47  ;;  %v7904_v17 = vpop.f32.mrb[93].mxu1 }
 0x600   : > { %v11411_v33 = vpop.f32.mrb[94].mxu1 }
 0x601   : > { %v8028_v44 = vadd.f32 %v11411_v33, %v7742_v56  ;;  %v7906_v25 = vpop.f32.mrb[95].mxu1 }
 0x603   : > { %11523 = vmatmul.mubr.msk.bf16.gmra.mrb[28].mxu1 %vm6536_vm9, %v14827_v41 }
 0x604   : > { %11526 = vmatprep.mubr.msk.bf16.mxu1 %vm6536_vm9, %v14829_v59 }
 0x60b   : > { %11527 = vmatmul.mubr.msk.bf16.gmra.mrb[0].mxu1 %vm6536_vm9, %v14835_v61 }
 0x60c   : > { %11530 = vmatprep.mubr.msk.bf16.mxu1 %vm6536_vm9, %v14837_v12 }
 0x613   : > { %11531 = vmatmul.mubr.msk.bf16.gmra.mrb[4].mxu1 %vm6536_vm9, %v14843_v22 }
 0x614   : > { %11534 = vmatprep.mubr.msk.bf16.mxu1 %vm6536_vm9, %v14845_v52 }
 0x61b   : > { %11535 = vmatmul.mubr.msk.bf16.gmra.mrb[8].mxu1 %vm6536_vm9, %v14851_v16 }
 0x61c   : > { %11538 = vmatprep.mubr.msk.bf16.mxu1 %vm6536_vm9, %v15000_v49 }
 0x623   : > { %11539 = vmatmul.mubr.msk.bf16.gmra.mrb[120].mxu1 %vm6536_vm9, %v8675_v3 }
 0x624   : > { %11544 = vmatprep.mubr.msk.bf16.mxu1 %vm6536_vm9, %v14860_v10 }
 0x62b   : > { %11545 = vmatmul.mubr.msk.bf16.vlgmr.msra.gmra.mrb[124].mxu1 %vm6536_vm9, %v14870_v35 }
 0x62c   : > { %11548 = vmatprep.mubr.msk.bf16.mxu1 %vm6536_vm9, %v14872_v32 }
 0x633   : > { %11549 = vmatmul.mubr.msk.bf16.gmra.mrb[20].mxu1 %vm6536_vm9, %v14878_v18 }
 0x634   : > { %11552 = vmatprep.mubr.msk.bf16.mxu1 %vm6536_vm9, %v14880_v29 }
 0x636   : > { %v11438_v16 = vpop.f32.mrb[96].mxu1 }
 0x637   : > { %v8014_v41 = vpop.f32.mrb[97].mxu1 }
 0x638   : > { %v8053_v59 = vadd.f32 %v8014_v41, %v7767_v15  ;;  %v11439_v61 = vpop.f32.mrb[98].mxu1 }
 0x639   : > { %v8017_v12 = vpop.f32.mrb[99].mxu1 }
 0x63a   : > { %v8054_v22 = vadd.f32 %v8017_v12, %v7768_v46  ;;  %v15468_v12 = vld [vmem:[#allocation19_spill] sm:$0xff] }
 0x63b   : > { %11553 = vmatmul.mubr.msk.bf16.gmra.mrb[24].mxu1 %vm6536_vm9, %v14886_v24 }
 0x63c   : > { %11556 = vmatprep.mubr.msk.bf16.mxu1 %vm6536_vm9, %v14888_v6  ;;  %v8945_v6 = vld [vmem:[#allocation2 + $0x1a2] sm:$0xff] }
 0x63e   : > { %v11444_v10 = vpop.f32.mrb[100].mxu1 }
 0x63f   : > { %v8313_v52 = vadd.f32 %v11444_v10, %v8027_v36  ;;  %v8190_v35 = vpop.f32.mrb[101].mxu1 }
 0x640   : > { %v11445_v32 = vpop.f32.mrb[102].mxu1 }
 0x641   : > { %v8314_v18 = vadd.f32 %v11445_v32, %v8028_v44  ;;  %v8192_v49 = vpop.f32.mrb[103].mxu1 }
 0x643   : > { %11557 = vmatmul.mubr.msk.bf16.gmra.mrb[28].mxu1 %vm6536_vm9, %v14894_v37  ;;  %v8944_v37 = vld [vmem:[#allocation2 + $0x19a] sm:$0xff] }
 0x644   : > { %11560 = vmatprep.mubr.msk.bf16.mxu1 %vm6536_vm9, %v14896_v63  ;;  %v8961_v24 = vpack.c.bf16 %v8945_v6, %v8944_v37  ;;  %v15470_v6 = vld [vmem:[#allocation3_spill] sm:$0xff] }
 0x64b   : > { %11561 = vmatmul.mubr.msk.bf16.gmra.mrb[0].mxu1 %vm6536_vm9, %v14902_v13 }
 0x64c   : > { %11564 = vmatprep.mubr.msk.bf16.mxu1 %vm6536_vm9, %v14904_v20 }
 0x653   : > { %11565 = vmatmul.mubr.msk.bf16.gmra.mrb[4].mxu1 %vm6536_vm9, %v14910_v43 }
 0x654   : > { %11568 = vmatprep.mubr.msk.bf16.mxu1 %vm6536_vm9, %v14912_v39 }
 0x65b   : > { %11569 = vmatmul.mubr.msk.bf16.gmra.mrb[8].mxu1 %vm6536_vm9, %v14918_v0 }
 0x65c   : > { %11572 = vmatprep.mubr.msk.bf16.mxu1 %vm6536_vm9, %v15039_v45 }
 0x663   : > { %11573 = vmatmul.mubr.msk.bf16.gmra.mrb[128].mxu1 %vm6536_vm9, %v8961_v24 }
 0x676   : > { %v11472_v29 = vpop.f32.mrb[104].mxu1 }
 0x677   : > { %v8300_v13 = vpop.f32.mrb[105].mxu1 }
 0x678   : > { %v8339_v20 = vadd.f32 %v8300_v13, %v8053_v59  ;;  %v11473_v63 = vpop.f32.mrb[106].mxu1 }
 0x679   : > { %v8303_v26 = vpop.f32.mrb[107].mxu1 }
 0x67a   : > { %v8340_v43 = vadd.f32 %v8303_v26, %v8054_v22 }
 0x67e   : > { %v11478_v23 = vpop.f32.mrb[108].mxu1 }
 0x67f   : > { %v8600_v1 = vadd.f32 %v11478_v23, %v8313_v52  ;;  %v8477_v39 = vpop.f32.mrb[109].mxu1  ;;  %v15472_v23 = vld [vmem:[#allocation5_spill] sm:$0xff] }
 0x680   : > { %v11479_v48 = vpop.f32.mrb[110].mxu1 }
 0x681   : > { %v8601_v2 = vadd.f32 %v11479_v48, %v8314_v18  ;;  %v8479_v0 = vpop.f32.mrb[111].mxu1 }
 0x6b6   : > { %v11506_v19 = vpop.f32.mrb[112].mxu1 }
 0x6b7   : > { %v8587_v27 = vpop.f32.mrb[113].mxu1 }
 0x6b8   : > { %v8626_v45 = vadd.f32 %v8587_v27, %v8339_v20  ;;  %v11507_v21 = vpop.f32.mrb[114].mxu1  ;;  %v15471_v20 = vld [vmem:[#allocation4_spill] sm:$0xff] }
 0x6b9   : > { %v8590_v34 = vpop.f32.mrb[115].mxu1  ;;  %v15473_v21 = vld [vmem:[#allocation6_spill] sm:$0xff] }
 0x6ba   : > { %v8627_v58 = vadd.f32 %v8590_v34, %v8340_v43 }
 0x6be   : > { %v11512_v11 = vpop.f32.mrb[116].mxu1 }
 0x6bf   : > { %v8886_v5 = vadd.f32 %v11512_v11, %v8600_v1  ;;  %v8763_v30 = vpop.f32.mrb[117].mxu1  ;;  %v15474_v11 = vld [vmem:[#allocation7_spill] sm:$0xff] }
 0x6c0   : > { %v11513_v4 = vpop.f32.mrb[118].mxu1 }
 0x6c1   : > { %v8887_v47 = vadd.f32 %v11513_v4, %v8601_v2  ;;  %v8765_v9 = vpop.f32.mrb[119].mxu1 }
 0x6f6   : > { %v11540_v50 = vpop.f32.mrb[120].mxu1 }
 0x6f7   : > { %v8873_v56 = vpop.f32.mrb[121].mxu1 }
 0x6f8   : > { %v15142_v57 = vadd.f32 %v8873_v56, %v8626_v45  ;;  %v11541_v8 = vpop.f32.mrb[122].mxu1 }
 0x6f9   : > { %v8876_v31 = vpop.f32.mrb[123].mxu1  ;;  %v15476_v8 = vld [vmem:[#allocation9_spill] sm:$0xff] }
 0x6fa   : > { %v15144_v54 = vadd.f32 %v8876_v31, %v8627_v58 }
 0x6fe   : > { %v11546_v7 = vpop.f32.mrb[124].mxu1 }
 0x6ff   : > { %v9172_v60 = vadd.f32 %v11546_v7, %v8886_v5  ;;  %v9049_v15 = vpop.f32.mrb[125].mxu1 }
 0x700   : > { %v11547_v53 = vpop.f32.mrb[126].mxu1 }
 0x701   : > { %v9207_v14 = vadd.f32 %v15150_v28, %v9172_v60  ;;  %v9173_v46 = vadd.f32 %v11547_v53, %v8887_v47  ;;  %v9051_v42 = vpop.f32.mrb[127].mxu1  ;;  %v15475_v47 = vld [vmem:[#allocation8_spill] sm:$0xff] }
 0x703   : > { %v9235_v36 = vmax.f32 %v9207_v14, 0.0  ;;  %v9208_v17 = vadd.f32 %v15150_v28, %v9173_v46 }
 0x705   : > { %9264 = vst.msk [vmem:[%s15156_s24 - $0x1] sm:$0xfe] %vm9263_vm11, %v9235_v36  ;;  %v9236_v33 = vmax.f32 %v9208_v17, 0.0  ;;  %v15477_v36 = vld [vmem:[#allocation38_spill] sm:$0xff] }
 0x706   : > { %v11550_v44 = vpop.f32.mrb[20].mxu1 }
 0x707   : > { %9266 = vst.msk [vmem:[%s15156_s24 + $0x7] sm:$0x7f] %vm9265_vm12, %v9236_v33  ;;  %v11578_v25 = vadd.f32 %v11550_v44, %v14528_v40  ;;  %v9063_v51 = vpop.f32.mrb[21].mxu1  ;;  %v15478_v44 = vld [vmem:[#allocation39_spill] sm:$0xff] }
 0x708   : > { %v11579_v38 = vadd.f32 %v9063_v51, %v14530_v62  ;;  %v11551_v3 = vpop.f32.mrb[22].mxu1 }
 0x709   : > { %v9211_v16 = vadd.f32 %v11578_v25, %v15150_v28  ;;  %v11580_v41 = vadd.f32 %v11551_v3, %v14536_v55  ;;  %v9066_v59 = vpop.f32.mrb[23].mxu1  ;;  %v15469_v55 = vld [vmem:[#allocation20_spill] sm:$0xff] }
 0x70a   : > { %v9209_v61 = vadd.f32 %v11579_v38, %v15150_v28  ;;  %v11581_v22 = vadd.f32 %v9066_v59, %v15468_v12  ;;  %v15479_v3 = vld [vmem:[#allocation28_spill] sm:$0xff] }
 0x70b   : > { %v9239_v10 = vmax.f32 %v9211_v16, 0.0  ;;  %v9212_v52 = vadd.f32 %v11580_v41, %v15150_v28 }
 0x70c   : > { %v9237_v35 = vmax.f32 %v9209_v61, 0.0  ;;  %v9210_v40 = vadd.f32 %v11581_v22, %v15150_v28  ;;  %v15480_v61 = vld [vmem:[#allocation30_spill] sm:$0xff] }
 0x70d   : > { %9269 = vst.msk [vmem:[%s15156_s24 + $0x1f] sm:$0xfe] %vm9263_vm11, %v9239_v10  ;;  %v9240_v62 = vmax.f32 %v9212_v52, 0.0 }
 0x70e   : > { %9267 = vst.msk [vmem:[%s15156_s24 + $0xf] sm:$0xfe] %vm9263_vm11, %v9237_v35  ;;  %v9238_v32 = vmax.f32 %v9210_v40, 0.0  ;;  %v11554_v18 = vpop.f32.mrb[24].mxu1 }
 0x70f   : > { %9270 = vst.msk [vmem:[%s15156_s24 + $0x27] sm:$0x7f] %vm9265_vm12, %v9240_v62  ;;  %v11582_v49 = vadd.f32 %v11554_v18, %v15469_v55  ;;  %v9079_v37 = vpop.f32.mrb[25].mxu1  ;;  %v15481_v18 = vld [vmem:[#allocation41_spill] sm:$0xff] }
 0x710   : > { %9268 = vst.msk [vmem:[%s15156_s24 + $0x17] sm:$0x7f] %vm9265_vm12, %v9238_v32  ;;  %v11583_v24 = vadd.f32 %v9079_v37, %v15470_v6  ;;  %v11555_v29 = vpop.f32.mrb[26].mxu1  ;;  %v15482_v37 = vld [vmem:[#allocation45_spill] sm:$0xff] }
 0x711   : > { %v9215_v13 = vadd.f32 %v11582_v49, %v15150_v28  ;;  %v11584_v63 = vadd.f32 %v11555_v29, %v15471_v20  ;;  %v9082_v26 = vpop.f32.mrb[27].mxu1 }
 0x712   : > { %v9213_v43 = vadd.f32 %v11583_v24, %v15150_v28  ;;  %v11585_v1 = vadd.f32 %v9082_v26, %v15472_v23 }
 0x713   : > { %v9243_v39 = vmax.f32 %v9215_v13, 0.0  ;;  %v9216_v48 = vadd.f32 %v11584_v63, %v15150_v28  ;;  %v15483_v13 = vld [vmem:[#allocation13_spill] sm:$0xff] }
 0x714   : > { %v9241_v2 = vmax.f32 %v9213_v43, 0.0  ;;  %v9214_v0 = vadd.f32 %v11585_v1, %v15150_v28  ;;  %v15484_v43 = vld [vmem:[#allocation14_spill] sm:$0xff] }
 0x715   : > { %9273 = vst.msk [vmem:[%s15156_s24 + $0x3f] sm:$0xfe] %vm9263_vm11, %v9243_v39  ;;  %v9244_v19 = vmax.f32 %v9216_v48, 0.0 }
 0x716   : > { %9271 = vst.msk [vmem:[%s15156_s24 + $0x2f] sm:$0xfe] %vm9263_vm11, %v9241_v2  ;;  %v9242_v27 = vmax.f32 %v9214_v0, 0.0  ;;  %v11558_v45 = vpop.f32.mrb[28].mxu1 }
 0x717   : > { %9274 = vst.msk [vmem:[%s15156_s24 + $0x47] sm:$0x7f] %vm9265_vm12, %v9244_v19  ;;  %v11586_v34 = vadd.f32 %v11558_v45, %v15473_v21  ;;  %v9095_v58 = vpop.f32.mrb[29].mxu1  ;;  %v15485_v45 = vld [vmem:[#allocation15_spill] sm:$0xff] }
 0x718   : > { %9272 = vst.msk [vmem:[%s15156_s24 + $0x37] sm:$0x7f] %vm9265_vm12, %v9242_v27  ;;  %v11587_v5 = vadd.f32 %v9095_v58, %v15474_v11  ;;  %v11559_v30 = vpop.f32.mrb[30].mxu1  ;;  %v15486_v58 = vld [vmem:[#allocation16_spill] sm:$0xff] }
 0x719   : > { %v9219_v4 = vadd.f32 %v11586_v34, %v15150_v28  ;;  %v11588_v9 = vadd.f32 %v11559_v30, %v15475_v47  ;;  %v9098_v50 = vpop.f32.mrb[31].mxu1 }
 0x71a   : > { %v9217_v56 = vadd.f32 %v11587_v5, %v15150_v28  ;;  %v11589_v31 = vadd.f32 %v9098_v50, %v15476_v8 }
 0x71b   : > { %v9247_v7 = vmax.f32 %v9219_v4, 0.0  ;;  %v9220_v60 = vadd.f32 %v11588_v9, %v15150_v28  ;;  %v15487_v4 = vld [vmem:[#allocation17_spill] sm:$0xff] }
 0x71c   : > { %v9245_v15 = vmax.f32 %v9217_v56, 0.0  ;;  %v9218_v53 = vadd.f32 %v11589_v31, %v15150_v28  ;;  %v15488_v56 = vld [vmem:[#allocation18_spill] sm:$0xff] }
 0x71d   : > { %9277 = vst.msk [vmem:[%s15156_s24 + $0x5f] sm:$0xfe] %vm9263_vm11, %v9247_v7  ;;  %v9248_v14 = vmax.f32 %v9220_v60, 0.0 }
 0x71e   : > { %9275 = vst.msk [vmem:[%s15156_s24 + $0x4f] sm:$0xfe] %vm9263_vm11, %v9245_v15  ;;  %v9246_v46 = vmax.f32 %v9218_v53, 0.0  ;;  %v11562_v42 = vpop.f32.mrb[0].mxu1 }
 0x71f   : > { %9278 = vst.msk [vmem:[%s15156_s24 + $0x67] sm:$0x7f] %vm9265_vm12, %v9248_v14  ;;  %v11590_v17 = vadd.f32 %v11562_v42, %v15477_v36  ;;  %v9111_v33 = vpop.f32.mrb[1].mxu1 }
 0x720   : > { %9276 = vst.msk [vmem:[%s15156_s24 + $0x57] sm:$0x7f] %vm9265_vm12, %v9246_v46  ;;  %v11591_v25 = vadd.f32 %v9111_v33, %v15478_v44  ;;  %v11563_v51 = vpop.f32.mrb[2].mxu1 }
 0x721   : > { %v9223_v38 = vadd.f32 %v11590_v17, %v15150_v28  ;;  %v11592_v16 = vadd.f32 %v11563_v51, %v15479_v3  ;;  %v9114_v41 = vpop.f32.mrb[3].mxu1 }
 0x722   : > { %v9221_v59 = vadd.f32 %v11591_v25, %v15150_v28  ;;  %v11593_v12 = vadd.f32 %v9114_v41, %v15480_v61 }
 0x723   : > { %v9251_v22 = vmax.f32 %v9223_v38, 0.0  ;;  %v9224_v10 = vadd.f32 %v11592_v16, %v15150_v28 }
 0x724   : > { %v9249_v52 = vmax.f32 %v9221_v59, 0.0  ;;  %v9222_v35 = vadd.f32 %v11593_v12, %v15150_v28 }
 0x725   : > { %9281 = vst.msk [vmem:[%s15156_s24 + $0x7f] sm:$0xfe] %vm9263_vm11, %v9251_v22  ;;  %v9252_v40 = vmax.f32 %v9224_v10, 0.0 }
 0x726   : > { %9279 = vst.msk [vmem:[%s15156_s24 + $0x6f] sm:$0xfe] %vm9263_vm11, %v9249_v52  ;;  %v9250_v62 = vmax.f32 %v9222_v35, 0.0  ;;  %v11566_v32 = vpop.f32.mrb[4].mxu1 }
 0x727   : > { %9282 = vst.msk [vmem:[%s15156_s24 + $0x87] sm:$0x7f] %vm9265_vm12, %v9252_v40  ;;  %v11594_v55 = vadd.f32 %v11566_v32, %v15481_v18  ;;  %v9127_v49 = vpop.f32.mrb[5].mxu1 }
 0x728   : > { %9280 = vst.msk [vmem:[%s15156_s24 + $0x77] sm:$0x7f] %vm9265_vm12, %v9250_v62  ;;  %v11595_v6 = vadd.f32 %v9127_v49, %v15482_v37  ;;  %v11567_v24 = vpop.f32.mrb[6].mxu1 }
 0x729   : > { %v9227_v29 = vadd.f32 %v11594_v55, %v15150_v28  ;;  %v11596_v20 = vadd.f32 %v11567_v24, %v15483_v13  ;;  %v9130_v63 = vpop.f32.mrb[7].mxu1 }
 0x72a   : > { %v9225_v26 = vadd.f32 %v11595_v6, %v15150_v28  ;;  %v11597_v23 = vadd.f32 %v9130_v63, %v15484_v43 }
 0x72b   : > { %v9255_v1 = vmax.f32 %v9227_v29, 0.0  ;;  %v9228_v39 = vadd.f32 %v11596_v20, %v15150_v28 }
 0x72c   : > { %v9253_v48 = vmax.f32 %v9225_v26, 0.0  ;;  %v9226_v2 = vadd.f32 %v11597_v23, %v15150_v28 }
 0x72d   : > { %9285 = vst.msk [vmem:[%s15156_s24 + $0x9f] sm:$0xfe] %vm9263_vm11, %v9255_v1  ;;  %v9256_v0 = vmax.f32 %v9228_v39, 0.0 }
 0x72e   : > { %9283 = vst.msk [vmem:[%s15156_s24 + $0x8f] sm:$0xfe] %vm9263_vm11, %v9253_v48  ;;  %v9254_v19 = vmax.f32 %v9226_v2, 0.0  ;;  %v11570_v27 = vpop.f32.mrb[8].mxu1 }
 0x72f   : > { %9286 = vst.msk [vmem:[%s15156_s24 + $0xa7] sm:$0x7f] %vm9265_vm12, %v9256_v0  ;;  %v11598_v21 = vadd.f32 %v11570_v27, %v15485_v45  ;;  %v9143_v34 = vpop.f32.mrb[9].mxu1 }
 0x730   : > { %9284 = vst.msk [vmem:[%s15156_s24 + $0x97] sm:$0x7f] %vm9265_vm12, %v9254_v19  ;;  %v11599_v11 = vadd.f32 %v9143_v34, %v15486_v58  ;;  %v11571_v5 = vpop.f32.mrb[10].mxu1 }
 0x731   : > { %v9231_v30 = vadd.f32 %v11598_v21, %v15150_v28  ;;  %v11600_v47 = vadd.f32 %v11571_v5, %v15487_v4  ;;  %v9146_v9 = vpop.f32.mrb[11].mxu1 }
 0x732   : > { %v9229_v50 = vadd.f32 %v11599_v11, %v15150_v28  ;;  %v11601_v8 = vadd.f32 %v9146_v9, %v15488_v56 }
 0x733   : > { %v9259_v31 = vmax.f32 %v9231_v30, 0.0  ;;  %v9232_v7 = vadd.f32 %v11600_v47, %v15150_v28 }
 0x734   : > { %v9257_v60 = vmax.f32 %v9229_v50, 0.0  ;;  %v9230_v15 = vadd.f32 %v11601_v8, %v15150_v28 }
 0x735   : > { %9289 = vst.msk [vmem:[%s15156_s24 + $0xbf] sm:$0xfe] %vm9263_vm11, %v9259_v31  ;;  %v9260_v53 = vmax.f32 %v9232_v7, 0.0 }
 0x736   : > { %9287 = vst.msk [vmem:[%s15156_s24 + $0xaf] sm:$0xfe] %vm9263_vm11, %v9257_v60  ;;  %v9258_v14 = vmax.f32 %v9230_v15, 0.0  ;;  %v11574_v46 = vpop.f32.mrb[128].mxu1 }
 0x737   : > { %9290 = vst.msk [vmem:[%s15156_s24 + $0xc7] sm:$0x7f] %vm9265_vm12, %v9260_v53  ;;  %v9159_v42 = vpop.f32.mrb[129].mxu1 }
 0x738   : > { %9288 = vst.msk [vmem:[%s15156_s24 + $0xb7] sm:$0x7f] %vm9265_vm12, %v9258_v14  ;;  %v9198_v36 = vadd.f32 %v9159_v42, %v15142_v57  ;;  %v11575_v17 = vpop.f32.mrb[130].mxu1 }
 0x739   : > { %v9162_v33 = vpop.f32.mrb[131].mxu1 }
 0x73a   : > { %v9233_v44 = vadd.f32 %v15150_v28, %v9198_v36  ;;  %v9199_v25 = vadd.f32 %v9162_v33, %v15144_v54 }
 0x73c   : > { %v9261_v51 = vmax.f32 %v9233_v44, 0.0  ;;  %v9234_v38 = vadd.f32 %v15150_v28, %v9199_v25 }
 0x73e   : > { %9291 = vst.msk [vmem:[%s15156_s24 + $0xcf] sm:$0xfe] %vm9263_vm11, %v9261_v51  ;;  %v9262_v3 = vmax.f32 %v9234_v38, 0.0 }
 0x740   : > { %9292 = vst.msk [vmem:[%s15156_s24 + $0xd7] sm:$0x7f] %vm9265_vm12, %v9262_v3 }
 0x741 PF: > { %s16_s21 = sadd.s32 1, %s12398_s21  }
 0x742   : > { %p13_p4 = scmp.ge.s32.totalorder %s16_s21, 4  }
 0x744   :  { %15 = sbr.rel (!%p13_p4) target bundleno = 1 (0x1), region = 102 }

</bundles_post_ra>
